<compile_context>
chip_gen: v7x
topology: tpu7x:2x2x1
jax: 0.10.0
libtpu: 0.0.40
codegen_flags: <defaults>
</compile_context>

<pallas_src>
import functools
import math

import jax
import jax.numpy as jnp
from jax.experimental import pallas as pl
from jax.experimental.pallas import tpu as pltpu


# ----------------------------------------------------------------------------
# Kernel
# ----------------------------------------------------------------------------
def _attention_composition_kernel(
        x_ref,        # (T*B, D)   bf16   time-major flattened children
        mask_ref,     # (T, B, 1)  f32    1.0 where t < len[b]
        wih_ref,      # (D, 8D)    bf16   [W_ih_fwd^T | W_ih_bwd^T], gates (i,f,o,g)
        bias_ref,     # (1, 8D)    f32    summed LSTM biases, same ordering
        whh_f_ref,    # (D, 4D)    bf16
        whh_b_ref,    # (D, 4D)    bf16
        rhs_ref,      # (B, 2D)    bf16   concat([nt_emb[nt_id], stack_state])
        vw_ref,       # (2D, 2D)   bf16   V weight (PyTorch layout)
        nt2_ref,      # (B, 2D)    f32    nt_emb2[nt_id]
        wg_nt_ref,    # (2D, 2D)   bf16   gate weight rows acting on nt2
        wg_wc_ref,    # (2D, 2D)   bf16   gate weight rows acting on weighted_child
        bg_ref,       # (1, 2D)    f32
        wo_ref,       # (2D, D)    bf16   output head weight^T
        bo_ref,       # (1, D)     f32
        out_ref,      # (B, D)     f32
        attn_ref,     # (T, B, 1)  f32
        g_ref,        # (B, 2D)    f32
        hf_sc,        # scratch (T, B, D) f32  forward hidden sequence
        hb_sc,        # scratch (T, B, D) f32  backward hidden sequence
        *, seq_len, batch, w_dim):
    T, B, D = seq_len, batch, w_dim
    f32, bf16 = jnp.float32, jnp.bfloat16

    # ---- Phase A: hoisted, non-recurrent input projections (both directions,
    #      all timesteps) as ONE bf16 MXU matmul; biases folded in here. ----
    xg = jnp.dot(x_ref[...], wih_ref[...], preferred_element_type=f32)  # (T*B, 8D)
    xg = xg + bias_ref[...]
    xg_f = xg[:, :4 * D]          # forward-direction pre-gates   (T*B, 4D)
    xg_b = xg[:, 4 * D:]          # backward-direction pre-gates  (T*B, 4D)

    w_hh_f = whh_f_ref[...]       # (D, 4D) bf16
    w_hh_b = whh_b_ref[...]

    def lstm_cell(gates, c_prev, m_t):
        # gates: (B, 4D) f32 in (i, f, o, g) order; m_t: (B, 1) validity mask.
        sg = jax.nn.sigmoid(gates[:, :3 * D])       # one pass for i, f, o
        g_gate = jnp.tanh(gates[:, 3 * D:])         # one pass for g
        i_g = sg[:, :D]
        f_g = sg[:, D:2 * D]
        o_g = sg[:, 2 * D:3 * D]
        c_new = (f_g * c_prev + i_g * g_gate) * m_t
        h_new = o_g * jnp.tanh(c_new) * m_t
        return h_new, c_new

    # ---- Phase B: the sequential recurrences (only h @ W_hh on this path). ----
    h = jnp.zeros((B, D), f32)
    c = jnp.zeros((B, D), f32)
    for t in range(T):                                       # forward direction
        gates = (xg_f[t * B:(t + 1) * B, :]
                 + jnp.dot(h.astype(bf16), w_hh_f, preferred_element_type=f32))
        h, c = lstm_cell(gates, c, mask_ref[t])
        hf_sc[t] = h

    h = jnp.zeros((B, D), f32)
    c = jnp.zeros((B, D), f32)
    for t in range(T - 1, -1, -1):                           # backward direction
        gates = (xg_b[t * B:(t + 1) * B, :]
                 + jnp.dot(h.astype(bf16), w_hh_b, preferred_element_type=f32))
        h, c = lstm_cell(gates, c, mask_ref[t])              # state held at 0 on pad
        hb_sc[t] = h

    # ---- Phase C: attention over the BiLSTM outputs. ----
    hf = hf_sc[...]               # (T, B, D)  zeros at padded positions
    hb = hb_sc[...]
    mask3 = mask_ref[...]         # (T, B, 1)

    # (V(h) * rhs).sum(-1) == h . (rhs @ V_w)   (V has no bias)
    rproj = jnp.dot(rhs_ref[...], vw_ref[...], preferred_element_type=f32)  # (B, 2D)
    rp_f = rproj[:, :D][None, :, :]
    rp_b = rproj[:, D:][None, :, :]
    logit = (jnp.sum(hf * rp_f, axis=-1, keepdims=True)
             + jnp.sum(hb * rp_b, axis=-1, keepdims=True))                  # (T, B, 1)
    logit = jnp.where(mask3 > 0.5, logit, -jnp.inf)
    m = jnp.max(logit, axis=0, keepdims=True)
    p = jnp.exp(logit - m)                                                  # 0 at pad
    attn = p / jnp.sum(p, axis=0, keepdims=True)                            # (T, B, 1)

    wc_f = jnp.sum(attn * hf, axis=0)            # (B, D)
    wc_b = jnp.sum(attn * hb, axis=0)            # (B, D)
    wc = jnp.concatenate([wc_f, wc_b], axis=-1)  # (B, 2D)

    # ---- Phase D: gate + output head (eval-mode dropout == identity). ----
    nt2 = nt2_ref[...]                           # (B, 2D) f32
    g_pre = (jnp.dot(nt2.astype(bf16), wg_nt_ref[...], preferred_element_type=f32)
             + jnp.dot(wc.astype(bf16), wg_wc_ref[...], preferred_element_type=f32)
             + bg_ref[...])
    g = jax.nn.sigmoid(g_pre)                    # (B, 2D)
    comp = g * nt2 + (1.0 - g) * wc              # (B, 2D)
    out = (jnp.dot(comp.astype(bf16), wo_ref[...], preferred_element_type=f32)
           + bo_ref[...])                        # (B, D)

    out_ref[...] = jnp.maximum(out, 0.0)
    attn_ref[...] = attn
    g_ref[...] = g


# ----------------------------------------------------------------------------
# Wrapper
# ----------------------------------------------------------------------------
def attention_composition(children, ch_lengths, nt, nt_id, stack_state, params):
    """Pallas forward of AttentionComposition (eval mode).

    children:    (B, T, w_dim) f32, padded child embeddings
    ch_lengths:  (B,) int32, number of valid children per row
    nt:          unused (the PyTorch forward also ignores it)
    nt_id:       (B,) int32
    stack_state: (B, w_dim) f32
    returns (output (B, w_dim), attn (B, T), gate (B, 2*w_dim))
    """
    del nt  # unused, kept for signature fidelity
    B, T, D = children.shape
    f32, bf16 = jnp.float32, jnp.bfloat16

    # -- parameter packing (glue): bf16 MXU operands, gate reorder (i,f,g,o)->(i,f,o,g)
    def pack_dir(w_ih, w_hh, b_ih, b_hh):
        order = jnp.concatenate([jnp.arange(0, 2 * D),
                                 jnp.arange(3 * D, 4 * D),
                                 jnp.arange(2 * D, 3 * D)])
        return w_ih[order].T, w_hh[order].T, (b_ih + b_hh)[order]

    wih_f, whh_f, b_f = pack_dir(params["w_ih_f"], params["w_hh_f"],
                                 params["b_ih_f"], params["b_hh_f"])
    wih_b, whh_b, b_b = pack_dir(params["w_ih_b"], params["w_hh_b"],
                                 params["b_ih_b"], params["b_hh_b"])
    wih_cat = jnp.concatenate([wih_f, wih_b], axis=1).astype(bf16)    # (D, 8D)
    bias_cat = jnp.concatenate([b_f, b_b])[None, :].astype(f32)       # (1, 8D)
    whh_f = whh_f.astype(bf16)
    whh_b = whh_b.astype(bf16)

    # Embedding gathers + concats stay in the wrapper (pure indexing glue).
    rhs = jnp.concatenate([params["nt_emb"][nt_id], stack_state], axis=1).astype(bf16)
    nt2 = params["nt_emb2"][nt_id].astype(f32)                        # (B, 2D)
    v_w = params["v_w"].astype(bf16)                                  # (2D, 2D)
    wg_t = params["gate_w"].T                                         # (4D, 2D)
    wg_nt = wg_t[:2 * D].astype(bf16)
    wg_wc = wg_t[2 * D:].astype(bf16)
    bg = params["gate_b"][None, :].astype(f32)
    wo = params["out_w"].T.astype(bf16)                               # (2D, D)
    bo = params["out_b"][None, :].astype(f32)

    # Time-major, flattened children so the hoisted projection is one matmul.
    x_flat = jnp.transpose(children, (1, 0, 2)).reshape(T * B, D).astype(bf16)
    # Validity mask (t < len[b]): drives packed-LSTM masking and attention.
    mask3 = (jnp.arange(T)[:, None] < ch_lengths[None, :]).astype(f32)[:, :, None]

    kernel = functools.partial(_attention_composition_kernel,
                               seq_len=T, batch=B, w_dim=D)

    def full(shape):
        nd = len(shape)
        return pl.BlockSpec(shape, lambda i, _nd=nd: (0,) * _nd)

    args = (x_flat, mask3, wih_cat, bias_cat, whh_f, whh_b, rhs, v_w, nt2,
            wg_nt, wg_wc, bg, wo, bo)

    flops = 2 * (T * B * D * 8 * D          # hoisted input projection
                 + 2 * T * B * D * 4 * D    # the two recurrences
                 + B * 2 * D * 2 * D        # rhs @ V
                 + 2 * B * 2 * D * 2 * D    # gate
                 + B * 2 * D * D)           # output head
    transcendentals = 2 * T * B * 4 * D + T * B + B * 2 * D
    bytes_accessed = (sum(a.size * a.dtype.itemsize for a in args)
                      + (B * D + T * B + B * 2 * D) * 4)

    out, attn_tb1, g = pl.pallas_call(
        kernel,
        out_shape=(jax.ShapeDtypeStruct((B, D), f32),
                   jax.ShapeDtypeStruct((T, B, 1), f32),
                   jax.ShapeDtypeStruct((B, 2 * D), f32)),
        grid=(1,),
        in_specs=[full(a.shape) for a in args],
        out_specs=(full((B, D)), full((T, B, 1)), full((B, 2 * D))),
        scratch_shapes=[
            pltpu.VMEM((T, B, D), f32),   # forward hidden sequence
            pltpu.VMEM((T, B, D), f32),   # backward hidden sequence
        ],
        compiler_params=pltpu.CompilerParams(dimension_semantics=("arbitrary",)),
        cost_estimate=pl.CostEstimate(flops=flops, transcendentals=transcendentals,
                                      bytes_accessed=bytes_accessed),
    )(*args)

    attn = jnp.transpose(attn_tb1[:, :, 0], (1, 0))                   # (B, T)
    return out, attn, g


# ----------------------------------------------------------------------------
# Pure-JAX reference (mirrors the kernel's bf16-matmul / f32-accumulate policy;
# mathematically identical to the PyTorch module in eval mode).
# ----------------------------------------------------------------------------
def _mm(a, b):
    return jnp.dot(a.astype(jnp.bfloat16), b.astype(jnp.bfloat16),
                   preferred_element_type=jnp.float32)


def _reference_forward(children, ch_lengths, nt, nt_id, stack_state, params):
    del nt
    B, T, D = children.shape
    lens = ch_lengths

    def run_dir(w_ih, w_hh, b_ih, b_hh, reverse):
        bias = (b_ih + b_hh)[None, :]
        h = jnp.zeros((B, D), jnp.float32)
        c = jnp.zeros((B, D), jnp.float32)
        hs = [None] * T
        order = range(T - 1, -1, -1) if reverse else range(T)
        for t in order:
            gates = _mm(children[:, t, :], w_ih.T) + _mm(h, w_hh.T) + bias
            i_g = jax.nn.sigmoid(gates[:, 0 * D:1 * D])
            f_g = jax.nn.sigmoid(gates[:, 1 * D:2 * D])
            g_g = jnp.tanh(gates[:, 2 * D:3 * D])
            o_g = jax.nn.sigmoid(gates[:, 3 * D:4 * D])
            m_t = (t < lens).astype(jnp.float32)[:, None]
            c = (f_g * c + i_g * g_g) * m_t
            h = o_g * jnp.tanh(c) * m_t          # packed semantics: zero at pad
            hs[t] = h
        return jnp.stack(hs, axis=1)             # (B, T, D)

    hf = run_dir(params["w_ih_f"], params["w_hh_f"],
                 params["b_ih_f"], params["b_hh_f"], reverse=False)
    hb = run_dir(params["w_ih_b"], params["w_hh_b"],
                 params["b_ih_b"], params["b_hh_b"], reverse=True)
    h = jnp.concatenate([hf, hb], axis=-1)       # (B, T, 2D)

    rhs = jnp.concatenate([params["nt_emb"][nt_id], stack_state], axis=1)
    # (V(h) * rhs).sum(-1) == h . (rhs @ V_w) since V has no bias.
    rproj = _mm(rhs, params["v_w"])
    logit = jnp.sum(h * rproj[:, None, :], axis=-1)                      # (B, T)
    valid = jnp.arange(T)[None, :] < lens[:, None]
    logit = jnp.where(valid, logit, -jnp.inf)
    attn = jax.nn.softmax(logit, axis=-1)
    wc = jnp.sum(h * attn[:, :, None], axis=1)                           # (B, 2D)

    nt2 = params["nt_emb2"][nt_id]
    wg_t = params["gate_w"].T
    g = jax.nn.sigmoid(_mm(nt2, wg_t[:2 * D]) + _mm(wc, wg_t[2 * D:])
                       + params["gate_b"][None, :])
    comp = g * nt2 + (1.0 - g) * wc
    out = jnp.maximum(_mm(comp, params["out_w"].T) + params["out_b"][None, :], 0.0)
    return out, attn, g


# ----------------------------------------------------------------------------
# Deterministic parameters + demo
# ----------------------------------------------------------------------------
def _init_params(key, w_dim, num_labels):
    D = w_dim
    ks = jax.random.split(key, 15)

    def u(k, shape, fan_in):
        b = 1.0 / math.sqrt(fan_in)
        return jax.random.uniform(k, shape, jnp.float32, -b, b)

    return {
        "w_ih_f": u(ks[0], (4 * D, D), D), "w_hh_f": u(ks[1], (4 * D, D), D),
        "b_ih_f": u(ks[2], (4 * D,), D),   "b_hh_f": u(ks[3], (4 * D,), D),
        "w_ih_b": u(ks[4], (4 * D, D), D), "w_hh_b": u(ks[5], (4 * D, D), D),
        "b_ih_b": u(ks[6], (4 * D,), D),   "b_hh_b": u(ks[7], (4 * D,), D),
        "v_w":    u(ks[8], (2 * D, 2 * D), 2 * D),
        "nt_emb":  jax.random.normal(ks[9], (num_labels, D), jnp.float32),
        "nt_emb2": jax.random.normal(ks[10], (num_labels, 2 * D), jnp.float32),
        "gate_w": u(ks[11], (2 * D, 4 * D), 4 * D),
        "gate_b": u(ks[12], (2 * D,), 4 * D),
        "out_w":  u(ks[13], (D, 2 * D), 2 * D),
        "out_b":  u(ks[14], (D,), 2 * D),
    }


if __name__ == "__main__":
    key = jax.random.PRNGKey(0)
    B, T, D, num_labels = 2, 8, 32, 10

    k1, k2, k3, kp = jax.random.split(key, 4)
    children = jax.random.normal(k1, (B, T, D), jnp.float32)
    ch_lengths = jnp.array([8, 5], dtype=jnp.int32)       # second row is padded
    nt_id = jax.random.randint(k2, (B,), 0, num_labels)
    stack_state = jax.random.normal(k3, (B, D), jnp.float32)
    params = _init_params(kp, D, num_labels)

    out, attn, g = attention_composition(children, ch_lengths, None, nt_id,
                                         stack_state, params)
    jax.block_until_ready((out, attn, g))

    out_r, attn_r, g_r = _reference_forward(children, ch_lengths, None, nt_id,
                                            stack_state, params)

    assert out.shape == (B, D) and attn.shape == (B, T) and g.shape == (B, 2 * D)
    assert jnp.allclose(out, out_r, atol=5e-3, rtol=5e-3)
    assert jnp.allclose(attn, attn_r, atol=5e-3, rtol=5e-3)
    assert jnp.allclose(g, g_r, atol=5e-3, rtol=5e-3)
    # Padded positions (row 1 has length 5) must receive (exactly) zero attention.
    assert float(jnp.max(jnp.abs(attn[1, 5:]))) <= 1e-6

    print("KERNEL_OK")
</pallas_src>

<mosaic_0001>
module attributes {stable_mosaic.version = 11 : i64} {
  func.func @_attention_composition_kernel(%arg0: i32, %arg1: memref<16x32xbf16, #tpu.memory_space<vmem>>, %arg2: memref<8x2x1xf32, #tpu.memory_space<vmem>>, %arg3: memref<32x256xbf16, #tpu.memory_space<vmem>>, %arg4: memref<1x256xf32, #tpu.memory_space<vmem>>, %arg5: memref<32x128xbf16, #tpu.memory_space<vmem>>, %arg6: memref<32x128xbf16, #tpu.memory_space<vmem>>, %arg7: memref<2x64xbf16, #tpu.memory_space<vmem>>, %arg8: memref<64x64xbf16, #tpu.memory_space<vmem>>, %arg9: memref<2x64xf32, #tpu.memory_space<vmem>>, %arg10: memref<64x64xbf16, #tpu.memory_space<vmem>>, %arg11: memref<64x64xbf16, #tpu.memory_space<vmem>>, %arg12: memref<1x64xf32, #tpu.memory_space<vmem>>, %arg13: memref<64x32xbf16, #tpu.memory_space<vmem>>, %arg14: memref<1x32xf32, #tpu.memory_space<vmem>>, %arg15: memref<2x32xf32, #tpu.memory_space<vmem>>, %arg16: memref<8x2x1xf32, #tpu.memory_space<vmem>>, %arg17: memref<2x64xf32, #tpu.memory_space<vmem>>, %arg18: memref<8x2x32xf32, #tpu.memory_space<vmem>>, %arg19: memref<8x2x32xf32, #tpu.memory_space<vmem>>) attributes {dimension_semantics = [#tpu.dimension_semantics<arbitrary>], iteration_bounds = array<i64: 1>, scalar_prefetch = 0 : i64, scratch_operands = 2 : i64, tpu.core_type = #tpu.core_type<tc>, window_params = [{pipeline_mode = #tpu.pipeline_mode<synchronous>, transform_indices = @transform_0, window_bounds = array<i64: 16, 32>}, {pipeline_mode = #tpu.pipeline_mode<synchronous>, transform_indices = @transform_1, window_bounds = array<i64: 8, 2, 1>}, {pipeline_mode = #tpu.pipeline_mode<synchronous>, transform_indices = @transform_2, window_bounds = array<i64: 32, 256>}, {pipeline_mode = #tpu.pipeline_mode<synchronous>, transform_indices = @transform_3, window_bounds = array<i64: 1, 256>}, {pipeline_mode = #tpu.pipeline_mode<synchronous>, transform_indices = @transform_4, window_bounds = array<i64: 32, 128>}, {pipeline_mode = #tpu.pipeline_mode<synchronous>, transform_indices = @transform_5, window_bounds = array<i64: 32, 128>}, {pipeline_mode = #tpu.pipeline_mode<synchronous>, transform_indices = @transform_6, window_bounds = array<i64: 2, 64>}, {pipeline_mode = #tpu.pipeline_mode<synchronous>, transform_indices = @transform_7, window_bounds = array<i64: 64, 64>}, {pipeline_mode = #tpu.pipeline_mode<synchronous>, transform_indices = @transform_8, window_bounds = array<i64: 2, 64>}, {pipeline_mode = #tpu.pipeline_mode<synchronous>, transform_indices = @transform_9, window_bounds = array<i64: 64, 64>}, {pipeline_mode = #tpu.pipeline_mode<synchronous>, transform_indices = @transform_10, window_bounds = array<i64: 64, 64>}, {pipeline_mode = #tpu.pipeline_mode<synchronous>, transform_indices = @transform_11, window_bounds = array<i64: 1, 64>}, {pipeline_mode = #tpu.pipeline_mode<synchronous>, transform_indices = @transform_12, window_bounds = array<i64: 64, 32>}, {pipeline_mode = #tpu.pipeline_mode<synchronous>, transform_indices = @transform_13, window_bounds = array<i64: 1, 32>}, {pipeline_mode = #tpu.pipeline_mode<synchronous>, transform_indices = @transform_14, window_bounds = array<i64: 2, 32>}, {pipeline_mode = #tpu.pipeline_mode<synchronous>, transform_indices = @transform_15, window_bounds = array<i64: 8, 2, 1>}, {pipeline_mode = #tpu.pipeline_mode<synchronous>, transform_indices = @transform_16, window_bounds = array<i64: 2, 64>}]} {
    %c0 = arith.constant 0 : index
    %c0_0 = arith.constant 0 : index
    %0 = vector.load %arg1[%c0, %c0_0] : memref<16x32xbf16, #tpu.memory_space<vmem>>, vector<16x32xbf16>
    %c0_1 = arith.constant 0 : index
    %c0_2 = arith.constant 0 : index
    %1 = vector.load %arg3[%c0_1, %c0_2] : memref<32x256xbf16, #tpu.memory_space<vmem>>, vector<32x256xbf16>
    %cst = arith.constant dense<0.000000e+00> : vector<16x256xf32>
    %2 = tpu.matmul %0, %1, %cst {dimension_numbers = #tpu.dot_dimension_numbers<[1], [0], [0], [1], [0, 0, 1, 1], [], []>} : vector<16x32xbf16>, vector<32x256xbf16>, vector<16x256xf32> -> vector<16x256xf32>
    %c0_3 = arith.constant 0 : index
    %c0_4 = arith.constant 0 : index
    %3 = vector.load %arg4[%c0_3, %c0_4] : memref<1x256xf32, #tpu.memory_space<vmem>>, vector<1x256xf32>
    %4 = vector.broadcast %3 : vector<1x256xf32> to vector<16x256xf32>
    %5 = arith.addf %2, %4 : vector<16x256xf32>
    %6 = vector.extract_strided_slice %5 {offsets = [0, 0], sizes = [16, 128], strides = [1, 1]} : vector<16x256xf32> to vector<16x128xf32>
    %7 = vector.extract_strided_slice %5 {offsets = [0, 128], sizes = [16, 128], strides = [1, 1]} : vector<16x256xf32> to vector<16x128xf32>
    %c0_5 = arith.constant 0 : index
    %c0_6 = arith.constant 0 : index
    %8 = vector.load %arg5[%c0_5, %c0_6] : memref<32x128xbf16, #tpu.memory_space<vmem>>, vector<32x128xbf16>
    %c0_7 = arith.constant 0 : index
    %c0_8 = arith.constant 0 : index
    %9 = vector.load %arg6[%c0_7, %c0_8] : memref<32x128xbf16, #tpu.memory_space<vmem>>, vector<32x128xbf16>
    %cst_9 = arith.constant 0.000000e+00 : f32
    %10 = vector.broadcast %cst_9 : f32 to vector<2x32xf32>
    %cst_10 = arith.constant 0.000000e+00 : f32
    %11 = vector.broadcast %cst_10 : f32 to vector<2x32xf32>
    %12 = vector.extract_strided_slice %6 {offsets = [0, 0], sizes = [2, 128], strides = [1, 1]} : vector<16x128xf32> to vector<2x128xf32>
    %13 = arith.truncf %10 : vector<2x32xf32> to vector<2x32xbf16>
    %cst_11 = arith.constant dense<0.000000e+00> : vector<2x128xf32>
    %14 = tpu.matmul %13, %8, %cst_11 {dimension_numbers = #tpu.dot_dimension_numbers<[1], [0], [0], [1], [0, 0, 1, 1], [], []>} : vector<2x32xbf16>, vector<32x128xbf16>, vector<2x128xf32> -> vector<2x128xf32>
    %15 = arith.addf %12, %14 : vector<2x128xf32>
    %c0_12 = arith.constant 0 : index
    %c0_13 = arith.constant 0 : index
    %c0_14 = arith.constant 0 : index
    %16 = vector.load %arg2[%c0_12, %c0_13, %c0_14] : memref<8x2x1xf32, #tpu.memory_space<vmem>>, vector<1x2x1xf32>
    %17 = vector.shape_cast %16 : vector<1x2x1xf32> to vector<2x1xf32>
    %18 = vector.extract_strided_slice %15 {offsets = [0, 0], sizes = [2, 96], strides = [1, 1]} : vector<2x128xf32> to vector<2x96xf32>
    %19 = arith.negf %18 : vector<2x96xf32>
    %20 = math.exp %19 : vector<2x96xf32>
    %cst_15 = arith.constant 1.000000e+00 : f32
    %21 = vector.broadcast %cst_15 : f32 to vector<2x96xf32>
    %22 = arith.addf %21, %20 : vector<2x96xf32>
    %23 = arith.divf %21, %22 : vector<2x96xf32>
    %24 = vector.extract_strided_slice %15 {offsets = [0, 96], sizes = [2, 32], strides = [1, 1]} : vector<2x128xf32> to vector<2x32xf32>
    %25 = math.tanh %24 : vector<2x32xf32>
    %26 = vector.extract_strided_slice %23 {offsets = [0, 0], sizes = [2, 32], strides = [1, 1]} : vector<2x96xf32> to vector<2x32xf32>
    %27 = vector.extract_strided_slice %23 {offsets = [0, 32], sizes = [2, 32], strides = [1, 1]} : vector<2x96xf32> to vector<2x32xf32>
    %28 = vector.extract_strided_slice %23 {offsets = [0, 64], sizes = [2, 32], strides = [1, 1]} : vector<2x96xf32> to vector<2x32xf32>
    %29 = arith.mulf %27, %11 : vector<2x32xf32>
    %30 = arith.mulf %26, %25 : vector<2x32xf32>
    %31 = arith.addf %29, %30 : vector<2x32xf32>
    %32 = vector.broadcast %17 : vector<2x1xf32> to vector<2x32xf32>
    %33 = arith.mulf %31, %32 : vector<2x32xf32>
    %34 = math.tanh %33 : vector<2x32xf32>
    %35 = arith.mulf %28, %34 : vector<2x32xf32>
    %36 = vector.broadcast %17 : vector<2x1xf32> to vector<2x32xf32>
    %37 = arith.mulf %35, %36 : vector<2x32xf32>
    %c0_16 = arith.constant 0 : index
    %c0_17 = arith.constant 0 : index
    %c0_18 = arith.constant 0 : index
    %38 = vector.load %arg18[%c0_16, %c0_17, %c0_18] : memref<8x2x32xf32, #tpu.memory_space<vmem>>, vector<1x2x32xf32>
    %39 = vector.shape_cast %38 : vector<1x2x32xf32> to vector<2x32xf32>
    %40 = vector.shape_cast %37 : vector<2x32xf32> to vector<1x2x32xf32>
    tpu.vector_store %arg18[%c0_16, %c0_17, %c0_18], %40 {strides = array<i32>} : memref<8x2x32xf32, #tpu.memory_space<vmem>>, vector<1x2x32xf32>,
    %41 = vector.extract_strided_slice %6 {offsets = [2, 0], sizes = [2, 128], strides = [1, 1]} : vector<16x128xf32> to vector<2x128xf32>
    %42 = arith.truncf %37 : vector<2x32xf32> to vector<2x32xbf16>
    %cst_19 = arith.constant dense<0.000000e+00> : vector<2x128xf32>
    %43 = tpu.matmul %42, %8, %cst_19 {dimension_numbers = #tpu.dot_dimension_numbers<[1], [0], [0], [1], [0, 0, 1, 1], [], []>} : vector<2x32xbf16>, vector<32x128xbf16>, vector<2x128xf32> -> vector<2x128xf32>
    %44 = arith.addf %41, %43 : vector<2x128xf32>
    %c1 = arith.constant 1 : index
    %c0_20 = arith.constant 0 : index
    %c0_21 = arith.constant 0 : index
    %45 = vector.load %arg2[%c1, %c0_20, %c0_21] : memref<8x2x1xf32, #tpu.memory_space<vmem>>, vector<1x2x1xf32>
    %46 = vector.shape_cast %45 : vector<1x2x1xf32> to vector<2x1xf32>
    %47 = vector.extract_strided_slice %44 {offsets = [0, 0], sizes = [2, 96], strides = [1, 1]} : vector<2x128xf32> to vector<2x96xf32>
    %48 = arith.negf %47 : vector<2x96xf32>
    %49 = math.exp %48 : vector<2x96xf32>
    %cst_22 = arith.constant 1.000000e+00 : f32
    %50 = vector.broadcast %cst_22 : f32 to vector<2x96xf32>
    %51 = arith.addf %50, %49 : vector<2x96xf32>
    %52 = arith.divf %50, %51 : vector<2x96xf32>
    %53 = vector.extract_strided_slice %44 {offsets = [0, 96], sizes = [2, 32], strides = [1, 1]} : vector<2x128xf32> to vector<2x32xf32>
    %54 = math.tanh %53 : vector<2x32xf32>
    %55 = vector.extract_strided_slice %52 {offsets = [0, 0], sizes = [2, 32], strides = [1, 1]} : vector<2x96xf32> to vector<2x32xf32>
    %56 = vector.extract_strided_slice %52 {offsets = [0, 32], sizes = [2, 32], strides = [1, 1]} : vector<2x96xf32> to vector<2x32xf32>
    %57 = vector.extract_strided_slice %52 {offsets = [0, 64], sizes = [2, 32], strides = [1, 1]} : vector<2x96xf32> to vector<2x32xf32>
    %58 = arith.mulf %56, %33 : vector<2x32xf32>
    %59 = arith.mulf %55, %54 : vector<2x32xf32>
    %60 = arith.addf %58, %59 : vector<2x32xf32>
    %61 = vector.broadcast %46 : vector<2x1xf32> to vector<2x32xf32>
    %62 = arith.mulf %60, %61 : vector<2x32xf32>
    %63 = math.tanh %62 : vector<2x32xf32>
    %64 = arith.mulf %57, %63 : vector<2x32xf32>
    %65 = vector.broadcast %46 : vector<2x1xf32> to vector<2x32xf32>
    %66 = arith.mulf %64, %65 : vector<2x32xf32>
    %c1_23 = arith.constant 1 : index
    %c0_24 = arith.constant 0 : index
    %c0_25 = arith.constant 0 : index
    %67 = vector.load %arg18[%c1_23, %c0_24, %c0_25] : memref<8x2x32xf32, #tpu.memory_space<vmem>>, vector<1x2x32xf32>
    %68 = vector.shape_cast %67 : vector<1x2x32xf32> to vector<2x32xf32>
    %69 = vector.shape_cast %66 : vector<2x32xf32> to vector<1x2x32xf32>
    tpu.vector_store %arg18[%c1_23, %c0_24, %c0_25], %69 {strides = array<i32>} : memref<8x2x32xf32, #tpu.memory_space<vmem>>, vector<1x2x32xf32>,
    %70 = vector.extract_strided_slice %6 {offsets = [4, 0], sizes = [2, 128], strides = [1, 1]} : vector<16x128xf32> to vector<2x128xf32>
    %71 = arith.truncf %66 : vector<2x32xf32> to vector<2x32xbf16>
    %cst_26 = arith.constant dense<0.000000e+00> : vector<2x128xf32>
    %72 = tpu.matmul %71, %8, %cst_26 {dimension_numbers = #tpu.dot_dimension_numbers<[1], [0], [0], [1], [0, 0, 1, 1], [], []>} : vector<2x32xbf16>, vector<32x128xbf16>, vector<2x128xf32> -> vector<2x128xf32>
    %73 = arith.addf %70, %72 : vector<2x128xf32>
    %c2 = arith.constant 2 : index
    %c0_27 = arith.constant 0 : index
    %c0_28 = arith.constant 0 : index
    %74 = vector.load %arg2[%c2, %c0_27, %c0_28] : memref<8x2x1xf32, #tpu.memory_space<vmem>>, vector<1x2x1xf32>
    %75 = vector.shape_cast %74 : vector<1x2x1xf32> to vector<2x1xf32>
    %76 = vector.extract_strided_slice %73 {offsets = [0, 0], sizes = [2, 96], strides = [1, 1]} : vector<2x128xf32> to vector<2x96xf32>
    %77 = arith.negf %76 : vector<2x96xf32>
    %78 = math.exp %77 : vector<2x96xf32>
    %cst_29 = arith.constant 1.000000e+00 : f32
    %79 = vector.broadcast %cst_29 : f32 to vector<2x96xf32>
    %80 = arith.addf %79, %78 : vector<2x96xf32>
    %81 = arith.divf %79, %80 : vector<2x96xf32>
    %82 = vector.extract_strided_slice %73 {offsets = [0, 96], sizes = [2, 32], strides = [1, 1]} : vector<2x128xf32> to vector<2x32xf32>
    %83 = math.tanh %82 : vector<2x32xf32>
    %84 = vector.extract_strided_slice %81 {offsets = [0, 0], sizes = [2, 32], strides = [1, 1]} : vector<2x96xf32> to vector<2x32xf32>
    %85 = vector.extract_strided_slice %81 {offsets = [0, 32], sizes = [2, 32], strides = [1, 1]} : vector<2x96xf32> to vector<2x32xf32>
    %86 = vector.extract_strided_slice %81 {offsets = [0, 64], sizes = [2, 32], strides = [1, 1]} : vector<2x96xf32> to vector<2x32xf32>
    %87 = arith.mulf %85, %62 : vector<2x32xf32>
    %88 = arith.mulf %84, %83 : vector<2x32xf32>
    %89 = arith.addf %87, %88 : vector<2x32xf32>
    %90 = vector.broadcast %75 : vector<2x1xf32> to vector<2x32xf32>
    %91 = arith.mulf %89, %90 : vector<2x32xf32>
    %92 = math.tanh %91 : vector<2x32xf32>
    %93 = arith.mulf %86, %92 : vector<2x32xf32>
    %94 = vector.broadcast %75 : vector<2x1xf32> to vector<2x32xf32>
    %95 = arith.mulf %93, %94 : vector<2x32xf32>
    %c2_30 = arith.constant 2 : index
    %c0_31 = arith.constant 0 : index
    %c0_32 = arith.constant 0 : index
    %96 = vector.load %arg18[%c2_30, %c0_31, %c0_32] : memref<8x2x32xf32, #tpu.memory_space<vmem>>, vector<1x2x32xf32>
    %97 = vector.shape_cast %96 : vector<1x2x32xf32> to vector<2x32xf32>
    %98 = vector.shape_cast %95 : vector<2x32xf32> to vector<1x2x32xf32>
    tpu.vector_store %arg18[%c2_30, %c0_31, %c0_32], %98 {strides = array<i32>} : memref<8x2x32xf32, #tpu.memory_space<vmem>>, vector<1x2x32xf32>,
    %99 = vector.extract_strided_slice %6 {offsets = [6, 0], sizes = [2, 128], strides = [1, 1]} : vector<16x128xf32> to vector<2x128xf32>
    %100 = arith.truncf %95 : vector<2x32xf32> to vector<2x32xbf16>
    %cst_33 = arith.constant dense<0.000000e+00> : vector<2x128xf32>
    %101 = tpu.matmul %100, %8, %cst_33 {dimension_numbers = #tpu.dot_dimension_numbers<[1], [0], [0], [1], [0, 0, 1, 1], [], []>} : vector<2x32xbf16>, vector<32x128xbf16>, vector<2x128xf32> -> vector<2x128xf32>
    %102 = arith.addf %99, %101 : vector<2x128xf32>
    %c3 = arith.constant 3 : index
    %c0_34 = arith.constant 0 : index
    %c0_35 = arith.constant 0 : index
    %103 = vector.load %arg2[%c3, %c0_34, %c0_35] : memref<8x2x1xf32, #tpu.memory_space<vmem>>, vector<1x2x1xf32>
    %104 = vector.shape_cast %103 : vector<1x2x1xf32> to vector<2x1xf32>
    %105 = vector.extract_strided_slice %102 {offsets = [0, 0], sizes = [2, 96], strides = [1, 1]} : vector<2x128xf32> to vector<2x96xf32>
    %106 = arith.negf %105 : vector<2x96xf32>
    %107 = math.exp %106 : vector<2x96xf32>
    %cst_36 = arith.constant 1.000000e+00 : f32
    %108 = vector.broadcast %cst_36 : f32 to vector<2x96xf32>
    %109 = arith.addf %108, %107 : vector<2x96xf32>
    %110 = arith.divf %108, %109 : vector<2x96xf32>
    %111 = vector.extract_strided_slice %102 {offsets = [0, 96], sizes = [2, 32], strides = [1, 1]} : vector<2x128xf32> to vector<2x32xf32>
    %112 = math.tanh %111 : vector<2x32xf32>
    %113 = vector.extract_strided_slice %110 {offsets = [0, 0], sizes = [2, 32], strides = [1, 1]} : vector<2x96xf32> to vector<2x32xf32>
    %114 = vector.extract_strided_slice %110 {offsets = [0, 32], sizes = [2, 32], strides = [1, 1]} : vector<2x96xf32> to vector<2x32xf32>
    %115 = vector.extract_strided_slice %110 {offsets = [0, 64], sizes = [2, 32], strides = [1, 1]} : vector<2x96xf32> to vector<2x32xf32>
    %116 = arith.mulf %114, %91 : vector<2x32xf32>
    %117 = arith.mulf %113, %112 : vector<2x32xf32>
    %118 = arith.addf %116, %117 : vector<2x32xf32>
    %119 = vector.broadcast %104 : vector<2x1xf32> to vector<2x32xf32>
    %120 = arith.mulf %118, %119 : vector<2x32xf32>
    %121 = math.tanh %120 : vector<2x32xf32>
    %122 = arith.mulf %115, %121 : vector<2x32xf32>
    %123 = vector.broadcast %104 : vector<2x1xf32> to vector<2x32xf32>
    %124 = arith.mulf %122, %123 : vector<2x32xf32>
    %c3_37 = arith.constant 3 : index
    %c0_38 = arith.constant 0 : index
    %c0_39 = arith.constant 0 : index
    %125 = vector.load %arg18[%c3_37, %c0_38, %c0_39] : memref<8x2x32xf32, #tpu.memory_space<vmem>>, vector<1x2x32xf32>
    %126 = vector.shape_cast %125 : vector<1x2x32xf32> to vector<2x32xf32>
    %127 = vector.shape_cast %124 : vector<2x32xf32> to vector<1x2x32xf32>
    tpu.vector_store %arg18[%c3_37, %c0_38, %c0_39], %127 {strides = array<i32>} : memref<8x2x32xf32, #tpu.memory_space<vmem>>, vector<1x2x32xf32>,
    %128 = vector.extract_strided_slice %6 {offsets = [8, 0], sizes = [2, 128], strides = [1, 1]} : vector<16x128xf32> to vector<2x128xf32>
    %129 = arith.truncf %124 : vector<2x32xf32> to vector<2x32xbf16>
    %cst_40 = arith.constant dense<0.000000e+00> : vector<2x128xf32>
    %130 = tpu.matmul %129, %8, %cst_40 {dimension_numbers = #tpu.dot_dimension_numbers<[1], [0], [0], [1], [0, 0, 1, 1], [], []>} : vector<2x32xbf16>, vector<32x128xbf16>, vector<2x128xf32> -> vector<2x128xf32>
    %131 = arith.addf %128, %130 : vector<2x128xf32>
    %c4 = arith.constant 4 : index
    %c0_41 = arith.constant 0 : index
    %c0_42 = arith.constant 0 : index
    %132 = vector.load %arg2[%c4, %c0_41, %c0_42] : memref<8x2x1xf32, #tpu.memory_space<vmem>>, vector<1x2x1xf32>
    %133 = vector.shape_cast %132 : vector<1x2x1xf32> to vector<2x1xf32>
    %134 = vector.extract_strided_slice %131 {offsets = [0, 0], sizes = [2, 96], strides = [1, 1]} : vector<2x128xf32> to vector<2x96xf32>
    %135 = arith.negf %134 : vector<2x96xf32>
    %136 = math.exp %135 : vector<2x96xf32>
    %cst_43 = arith.constant 1.000000e+00 : f32
    %137 = vector.broadcast %cst_43 : f32 to vector<2x96xf32>
    %138 = arith.addf %137, %136 : vector<2x96xf32>
    %139 = arith.divf %137, %138 : vector<2x96xf32>
    %140 = vector.extract_strided_slice %131 {offsets = [0, 96], sizes = [2, 32], strides = [1, 1]} : vector<2x128xf32> to vector<2x32xf32>
    %141 = math.tanh %140 : vector<2x32xf32>
    %142 = vector.extract_strided_slice %139 {offsets = [0, 0], sizes = [2, 32], strides = [1, 1]} : vector<2x96xf32> to vector<2x32xf32>
    %143 = vector.extract_strided_slice %139 {offsets = [0, 32], sizes = [2, 32], strides = [1, 1]} : vector<2x96xf32> to vector<2x32xf32>
    %144 = vector.extract_strided_slice %139 {offsets = [0, 64], sizes = [2, 32], strides = [1, 1]} : vector<2x96xf32> to vector<2x32xf32>
    %145 = arith.mulf %143, %120 : vector<2x32xf32>
    %146 = arith.mulf %142, %141 : vector<2x32xf32>
    %147 = arith.addf %145, %146 : vector<2x32xf32>
    %148 = vector.broadcast %133 : vector<2x1xf32> to vector<2x32xf32>
    %149 = arith.mulf %147, %148 : vector<2x32xf32>
    %150 = math.tanh %149 : vector<2x32xf32>
    %151 = arith.mulf %144, %150 : vector<2x32xf32>
    %152 = vector.broadcast %133 : vector<2x1xf32> to vector<2x32xf32>
    %153 = arith.mulf %151, %152 : vector<2x32xf32>
    %c4_44 = arith.constant 4 : index
    %c0_45 = arith.constant 0 : index
    %c0_46 = arith.constant 0 : index
    %154 = vector.load %arg18[%c4_44, %c0_45, %c0_46] : memref<8x2x32xf32, #tpu.memory_space<vmem>>, vector<1x2x32xf32>
    %155 = vector.shape_cast %154 : vector<1x2x32xf32> to vector<2x32xf32>
    %156 = vector.shape_cast %153 : vector<2x32xf32> to vector<1x2x32xf32>
    tpu.vector_store %arg18[%c4_44, %c0_45, %c0_46], %156 {strides = array<i32>} : memref<8x2x32xf32, #tpu.memory_space<vmem>>, vector<1x2x32xf32>,
    %157 = vector.extract_strided_slice %6 {offsets = [10, 0], sizes = [2, 128], strides = [1, 1]} : vector<16x128xf32> to vector<2x128xf32>
    %158 = arith.truncf %153 : vector<2x32xf32> to vector<2x32xbf16>
    %cst_47 = arith.constant dense<0.000000e+00> : vector<2x128xf32>
    %159 = tpu.matmul %158, %8, %cst_47 {dimension_numbers = #tpu.dot_dimension_numbers<[1], [0], [0], [1], [0, 0, 1, 1], [], []>} : vector<2x32xbf16>, vector<32x128xbf16>, vector<2x128xf32> -> vector<2x128xf32>
    %160 = arith.addf %157, %159 : vector<2x128xf32>
    %c5 = arith.constant 5 : index
    %c0_48 = arith.constant 0 : index
    %c0_49 = arith.constant 0 : index
    %161 = vector.load %arg2[%c5, %c0_48, %c0_49] : memref<8x2x1xf32, #tpu.memory_space<vmem>>, vector<1x2x1xf32>
    %162 = vector.shape_cast %161 : vector<1x2x1xf32> to vector<2x1xf32>
    %163 = vector.extract_strided_slice %160 {offsets = [0, 0], sizes = [2, 96], strides = [1, 1]} : vector<2x128xf32> to vector<2x96xf32>
    %164 = arith.negf %163 : vector<2x96xf32>
    %165 = math.exp %164 : vector<2x96xf32>
    %cst_50 = arith.constant 1.000000e+00 : f32
    %166 = vector.broadcast %cst_50 : f32 to vector<2x96xf32>
    %167 = arith.addf %166, %165 : vector<2x96xf32>
    %168 = arith.divf %166, %167 : vector<2x96xf32>
    %169 = vector.extract_strided_slice %160 {offsets = [0, 96], sizes = [2, 32], strides = [1, 1]} : vector<2x128xf32> to vector<2x32xf32>
    %170 = math.tanh %169 : vector<2x32xf32>
    %171 = vector.extract_strided_slice %168 {offsets = [0, 0], sizes = [2, 32], strides = [1, 1]} : vector<2x96xf32> to vector<2x32xf32>
    %172 = vector.extract_strided_slice %168 {offsets = [0, 32], sizes = [2, 32], strides = [1, 1]} : vector<2x96xf32> to vector<2x32xf32>
    %173 = vector.extract_strided_slice %168 {offsets = [0, 64], sizes = [2, 32], strides = [1, 1]} : vector<2x96xf32> to vector<2x32xf32>
    %174 = arith.mulf %172, %149 : vector<2x32xf32>
    %175 = arith.mulf %171, %170 : vector<2x32xf32>
    %176 = arith.addf %174, %175 : vector<2x32xf32>
    %177 = vector.broadcast %162 : vector<2x1xf32> to vector<2x32xf32>
    %178 = arith.mulf %176, %177 : vector<2x32xf32>
    %179 = math.tanh %178 : vector<2x32xf32>
    %180 = arith.mulf %173, %179 : vector<2x32xf32>
    %181 = vector.broadcast %162 : vector<2x1xf32> to vector<2x32xf32>
    %182 = arith.mulf %180, %181 : vector<2x32xf32>
    %c5_51 = arith.constant 5 : index
    %c0_52 = arith.constant 0 : index
    %c0_53 = arith.constant 0 : index
    %183 = vector.load %arg18[%c5_51, %c0_52, %c0_53] : memref<8x2x32xf32, #tpu.memory_space<vmem>>, vector<1x2x32xf32>
    %184 = vector.shape_cast %183 : vector<1x2x32xf32> to vector<2x32xf32>
    %185 = vector.shape_cast %182 : vector<2x32xf32> to vector<1x2x32xf32>
    tpu.vector_store %arg18[%c5_51, %c0_52, %c0_53], %185 {strides = array<i32>} : memref<8x2x32xf32, #tpu.memory_space<vmem>>, vector<1x2x32xf32>,
    %186 = vector.extract_strided_slice %6 {offsets = [12, 0], sizes = [2, 128], strides = [1, 1]} : vector<16x128xf32> to vector<2x128xf32>
    %187 = arith.truncf %182 : vector<2x32xf32> to vector<2x32xbf16>
    %cst_54 = arith.constant dense<0.000000e+00> : vector<2x128xf32>
    %188 = tpu.matmul %187, %8, %cst_54 {dimension_numbers = #tpu.dot_dimension_numbers<[1], [0], [0], [1], [0, 0, 1, 1], [], []>} : vector<2x32xbf16>, vector<32x128xbf16>, vector<2x128xf32> -> vector<2x128xf32>
    %189 = arith.addf %186, %188 : vector<2x128xf32>
    %c6 = arith.constant 6 : index
    %c0_55 = arith.constant 0 : index
    %c0_56 = arith.constant 0 : index
    %190 = vector.load %arg2[%c6, %c0_55, %c0_56] : memref<8x2x1xf32, #tpu.memory_space<vmem>>, vector<1x2x1xf32>
    %191 = vector.shape_cast %190 : vector<1x2x1xf32> to vector<2x1xf32>
    %192 = vector.extract_strided_slice %189 {offsets = [0, 0], sizes = [2, 96], strides = [1, 1]} : vector<2x128xf32> to vector<2x96xf32>
    %193 = arith.negf %192 : vector<2x96xf32>
    %194 = math.exp %193 : vector<2x96xf32>
    %cst_57 = arith.constant 1.000000e+00 : f32
    %195 = vector.broadcast %cst_57 : f32 to vector<2x96xf32>
    %196 = arith.addf %195, %194 : vector<2x96xf32>
    %197 = arith.divf %195, %196 : vector<2x96xf32>
    %198 = vector.extract_strided_slice %189 {offsets = [0, 96], sizes = [2, 32], strides = [1, 1]} : vector<2x128xf32> to vector<2x32xf32>
    %199 = math.tanh %198 : vector<2x32xf32>
    %200 = vector.extract_strided_slice %197 {offsets = [0, 0], sizes = [2, 32], strides = [1, 1]} : vector<2x96xf32> to vector<2x32xf32>
    %201 = vector.extract_strided_slice %197 {offsets = [0, 32], sizes = [2, 32], strides = [1, 1]} : vector<2x96xf32> to vector<2x32xf32>
    %202 = vector.extract_strided_slice %197 {offsets = [0, 64], sizes = [2, 32], strides = [1, 1]} : vector<2x96xf32> to vector<2x32xf32>
    %203 = arith.mulf %201, %178 : vector<2x32xf32>
    %204 = arith.mulf %200, %199 : vector<2x32xf32>
    %205 = arith.addf %203, %204 : vector<2x32xf32>
    %206 = vector.broadcast %191 : vector<2x1xf32> to vector<2x32xf32>
    %207 = arith.mulf %205, %206 : vector<2x32xf32>
    %208 = math.tanh %207 : vector<2x32xf32>
    %209 = arith.mulf %202, %208 : vector<2x32xf32>
    %210 = vector.broadcast %191 : vector<2x1xf32> to vector<2x32xf32>
    %211 = arith.mulf %209, %210 : vector<2x32xf32>
    %c6_58 = arith.constant 6 : index
    %c0_59 = arith.constant 0 : index
    %c0_60 = arith.constant 0 : index
    %212 = vector.load %arg18[%c6_58, %c0_59, %c0_60] : memref<8x2x32xf32, #tpu.memory_space<vmem>>, vector<1x2x32xf32>
    %213 = vector.shape_cast %212 : vector<1x2x32xf32> to vector<2x32xf32>
    %214 = vector.shape_cast %211 : vector<2x32xf32> to vector<1x2x32xf32>
    tpu.vector_store %arg18[%c6_58, %c0_59, %c0_60], %214 {strides = array<i32>} : memref<8x2x32xf32, #tpu.memory_space<vmem>>, vector<1x2x32xf32>,
    %215 = vector.extract_strided_slice %6 {offsets = [14, 0], sizes = [2, 128], strides = [1, 1]} : vector<16x128xf32> to vector<2x128xf32>
    %216 = arith.truncf %211 : vector<2x32xf32> to vector<2x32xbf16>
    %cst_61 = arith.constant dense<0.000000e+00> : vector<2x128xf32>
    %217 = tpu.matmul %216, %8, %cst_61 {dimension_numbers = #tpu.dot_dimension_numbers<[1], [0], [0], [1], [0, 0, 1, 1], [], []>} : vector<2x32xbf16>, vector<32x128xbf16>, vector<2x128xf32> -> vector<2x128xf32>
    %218 = arith.addf %215, %217 : vector<2x128xf32>
    %c7 = arith.constant 7 : index
    %c0_62 = arith.constant 0 : index
    %c0_63 = arith.constant 0 : index
    %219 = vector.load %arg2[%c7, %c0_62, %c0_63] : memref<8x2x1xf32, #tpu.memory_space<vmem>>, vector<1x2x1xf32>
    %220 = vector.shape_cast %219 : vector<1x2x1xf32> to vector<2x1xf32>
    %221 = vector.extract_strided_slice %218 {offsets = [0, 0], sizes = [2, 96], strides = [1, 1]} : vector<2x128xf32> to vector<2x96xf32>
    %222 = arith.negf %221 : vector<2x96xf32>
    %223 = math.exp %222 : vector<2x96xf32>
    %cst_64 = arith.constant 1.000000e+00 : f32
    %224 = vector.broadcast %cst_64 : f32 to vector<2x96xf32>
    %225 = arith.addf %224, %223 : vector<2x96xf32>
    %226 = arith.divf %224, %225 : vector<2x96xf32>
    %227 = vector.extract_strided_slice %218 {offsets = [0, 96], sizes = [2, 32], strides = [1, 1]} : vector<2x128xf32> to vector<2x32xf32>
    %228 = math.tanh %227 : vector<2x32xf32>
    %229 = vector.extract_strided_slice %226 {offsets = [0, 0], sizes = [2, 32], strides = [1, 1]} : vector<2x96xf32> to vector<2x32xf32>
    %230 = vector.extract_strided_slice %226 {offsets = [0, 32], sizes = [2, 32], strides = [1, 1]} : vector<2x96xf32> to vector<2x32xf32>
    %231 = vector.extract_strided_slice %226 {offsets = [0, 64], sizes = [2, 32], strides = [1, 1]} : vector<2x96xf32> to vector<2x32xf32>
    %232 = arith.mulf %230, %207 : vector<2x32xf32>
    %233 = arith.mulf %229, %228 : vector<2x32xf32>
    %234 = arith.addf %232, %233 : vector<2x32xf32>
    %235 = vector.broadcast %220 : vector<2x1xf32> to vector<2x32xf32>
    %236 = arith.mulf %234, %235 : vector<2x32xf32>
    %237 = math.tanh %236 : vector<2x32xf32>
    %238 = arith.mulf %231, %237 : vector<2x32xf32>
    %239 = vector.broadcast %220 : vector<2x1xf32> to vector<2x32xf32>
    %240 = arith.mulf %238, %239 : vector<2x32xf32>
    %c7_65 = arith.constant 7 : index
    %c0_66 = arith.constant 0 : index
    %c0_67 = arith.constant 0 : index
    %241 = vector.load %arg18[%c7_65, %c0_66, %c0_67] : memref<8x2x32xf32, #tpu.memory_space<vmem>>, vector<1x2x32xf32>
    %242 = vector.shape_cast %241 : vector<1x2x32xf32> to vector<2x32xf32>
    %243 = vector.shape_cast %240 : vector<2x32xf32> to vector<1x2x32xf32>
    tpu.vector_store %arg18[%c7_65, %c0_66, %c0_67], %243 {strides = array<i32>} : memref<8x2x32xf32, #tpu.memory_space<vmem>>, vector<1x2x32xf32>,
    %cst_68 = arith.constant 0.000000e+00 : f32
    %244 = vector.broadcast %cst_68 : f32 to vector<2x32xf32>
    %cst_69 = arith.constant 0.000000e+00 : f32
    %245 = vector.broadcast %cst_69 : f32 to vector<2x32xf32>
    %246 = vector.extract_strided_slice %7 {offsets = [14, 0], sizes = [2, 128], strides = [1, 1]} : vector<16x128xf32> to vector<2x128xf32>
    %247 = arith.truncf %244 : vector<2x32xf32> to vector<2x32xbf16>
    %cst_70 = arith.constant dense<0.000000e+00> : vector<2x128xf32>
    %248 = tpu.matmul %247, %9, %cst_70 {dimension_numbers = #tpu.dot_dimension_numbers<[1], [0], [0], [1], [0, 0, 1, 1], [], []>} : vector<2x32xbf16>, vector<32x128xbf16>, vector<2x128xf32> -> vector<2x128xf32>
    %249 = arith.addf %246, %248 : vector<2x128xf32>
    %c7_71 = arith.constant 7 : index
    %c0_72 = arith.constant 0 : index
    %c0_73 = arith.constant 0 : index
    %250 = vector.load %arg2[%c7_71, %c0_72, %c0_73] : memref<8x2x1xf32, #tpu.memory_space<vmem>>, vector<1x2x1xf32>
    %251 = vector.shape_cast %250 : vector<1x2x1xf32> to vector<2x1xf32>
    %252 = vector.extract_strided_slice %249 {offsets = [0, 0], sizes = [2, 96], strides = [1, 1]} : vector<2x128xf32> to vector<2x96xf32>
    %253 = arith.negf %252 : vector<2x96xf32>
    %254 = math.exp %253 : vector<2x96xf32>
    %cst_74 = arith.constant 1.000000e+00 : f32
    %255 = vector.broadcast %cst_74 : f32 to vector<2x96xf32>
    %256 = arith.addf %255, %254 : vector<2x96xf32>
    %257 = arith.divf %255, %256 : vector<2x96xf32>
    %258 = vector.extract_strided_slice %249 {offsets = [0, 96], sizes = [2, 32], strides = [1, 1]} : vector<2x128xf32> to vector<2x32xf32>
    %259 = math.tanh %258 : vector<2x32xf32>
    %260 = vector.extract_strided_slice %257 {offsets = [0, 0], sizes = [2, 32], strides = [1, 1]} : vector<2x96xf32> to vector<2x32xf32>
    %261 = vector.extract_strided_slice %257 {offsets = [0, 32], sizes = [2, 32], strides = [1, 1]} : vector<2x96xf32> to vector<2x32xf32>
    %262 = vector.extract_strided_slice %257 {offsets = [0, 64], sizes = [2, 32], strides = [1, 1]} : vector<2x96xf32> to vector<2x32xf32>
    %263 = arith.mulf %261, %245 : vector<2x32xf32>
    %264 = arith.mulf %260, %259 : vector<2x32xf32>
    %265 = arith.addf %263, %264 : vector<2x32xf32>
    %266 = vector.broadcast %251 : vector<2x1xf32> to vector<2x32xf32>
    %267 = arith.mulf %265, %266 : vector<2x32xf32>
    %268 = math.tanh %267 : vector<2x32xf32>
    %269 = arith.mulf %262, %268 : vector<2x32xf32>
    %270 = vector.broadcast %251 : vector<2x1xf32> to vector<2x32xf32>
    %271 = arith.mulf %269, %270 : vector<2x32xf32>
    %c7_75 = arith.constant 7 : index
    %c0_76 = arith.constant 0 : index
    %c0_77 = arith.constant 0 : index
    %272 = vector.load %arg19[%c7_75, %c0_76, %c0_77] : memref<8x2x32xf32, #tpu.memory_space<vmem>>, vector<1x2x32xf32>
    %273 = vector.shape_cast %272 : vector<1x2x32xf32> to vector<2x32xf32>
    %274 = vector.shape_cast %271 : vector<2x32xf32> to vector<1x2x32xf32>
    tpu.vector_store %arg19[%c7_75, %c0_76, %c0_77], %274 {strides = array<i32>} : memref<8x2x32xf32, #tpu.memory_space<vmem>>, vector<1x2x32xf32>,
    %275 = vector.extract_strided_slice %7 {offsets = [12, 0], sizes = [2, 128], strides = [1, 1]} : vector<16x128xf32> to vector<2x128xf32>
    %276 = arith.truncf %271 : vector<2x32xf32> to vector<2x32xbf16>
    %cst_78 = arith.constant dense<0.000000e+00> : vector<2x128xf32>
    %277 = tpu.matmul %276, %9, %cst_78 {dimension_numbers = #tpu.dot_dimension_numbers<[1], [0], [0], [1], [0, 0, 1, 1], [], []>} : vector<2x32xbf16>, vector<32x128xbf16>, vector<2x128xf32> -> vector<2x128xf32>
    %278 = arith.addf %275, %277 : vector<2x128xf32>
    %c6_79 = arith.constant 6 : index
    %c0_80 = arith.constant 0 : index
    %c0_81 = arith.constant 0 : index
    %279 = vector.load %arg2[%c6_79, %c0_80, %c0_81] : memref<8x2x1xf32, #tpu.memory_space<vmem>>, vector<1x2x1xf32>
    %280 = vector.shape_cast %279 : vector<1x2x1xf32> to vector<2x1xf32>
    %281 = vector.extract_strided_slice %278 {offsets = [0, 0], sizes = [2, 96], strides = [1, 1]} : vector<2x128xf32> to vector<2x96xf32>
    %282 = arith.negf %281 : vector<2x96xf32>
    %283 = math.exp %282 : vector<2x96xf32>
    %cst_82 = arith.constant 1.000000e+00 : f32
    %284 = vector.broadcast %cst_82 : f32 to vector<2x96xf32>
    %285 = arith.addf %284, %283 : vector<2x96xf32>
    %286 = arith.divf %284, %285 : vector<2x96xf32>
    %287 = vector.extract_strided_slice %278 {offsets = [0, 96], sizes = [2, 32], strides = [1, 1]} : vector<2x128xf32> to vector<2x32xf32>
    %288 = math.tanh %287 : vector<2x32xf32>
    %289 = vector.extract_strided_slice %286 {offsets = [0, 0], sizes = [2, 32], strides = [1, 1]} : vector<2x96xf32> to vector<2x32xf32>
    %290 = vector.extract_strided_slice %286 {offsets = [0, 32], sizes = [2, 32], strides = [1, 1]} : vector<2x96xf32> to vector<2x32xf32>
    %291 = vector.extract_strided_slice %286 {offsets = [0, 64], sizes = [2, 32], strides = [1, 1]} : vector<2x96xf32> to vector<2x32xf32>
    %292 = arith.mulf %290, %267 : vector<2x32xf32>
    %293 = arith.mulf %289, %288 : vector<2x32xf32>
    %294 = arith.addf %292, %293 : vector<2x32xf32>
    %295 = vector.broadcast %280 : vector<2x1xf32> to vector<2x32xf32>
    %296 = arith.mulf %294, %295 : vector<2x32xf32>
    %297 = math.tanh %296 : vector<2x32xf32>
    %298 = arith.mulf %291, %297 : vector<2x32xf32>
    %299 = vector.broadcast %280 : vector<2x1xf32> to vector<2x32xf32>
    %300 = arith.mulf %298, %299 : vector<2x32xf32>
    %c6_83 = arith.constant 6 : index
    %c0_84 = arith.constant 0 : index
    %c0_85 = arith.constant 0 : index
    %301 = vector.load %arg19[%c6_83, %c0_84, %c0_85] : memref<8x2x32xf32, #tpu.memory_space<vmem>>, vector<1x2x32xf32>
    %302 = vector.shape_cast %301 : vector<1x2x32xf32> to vector<2x32xf32>
    %303 = vector.shape_cast %300 : vector<2x32xf32> to vector<1x2x32xf32>
    tpu.vector_store %arg19[%c6_83, %c0_84, %c0_85], %303 {strides = array<i32>} : memref<8x2x32xf32, #tpu.memory_space<vmem>>, vector<1x2x32xf32>,
    %304 = vector.extract_strided_slice %7 {offsets = [10, 0], sizes = [2, 128], strides = [1, 1]} : vector<16x128xf32> to vector<2x128xf32>
    %305 = arith.truncf %300 : vector<2x32xf32> to vector<2x32xbf16>
    %cst_86 = arith.constant dense<0.000000e+00> : vector<2x128xf32>
    %306 = tpu.matmul %305, %9, %cst_86 {dimension_numbers = #tpu.dot_dimension_numbers<[1], [0], [0], [1], [0, 0, 1, 1], [], []>} : vector<2x32xbf16>, vector<32x128xbf16>, vector<2x128xf32> -> vector<2x128xf32>
    %307 = arith.addf %304, %306 : vector<2x128xf32>
    %c5_87 = arith.constant 5 : index
    %c0_88 = arith.constant 0 : index
    %c0_89 = arith.constant 0 : index
    %308 = vector.load %arg2[%c5_87, %c0_88, %c0_89] : memref<8x2x1xf32, #tpu.memory_space<vmem>>, vector<1x2x1xf32>
    %309 = vector.shape_cast %308 : vector<1x2x1xf32> to vector<2x1xf32>
    %310 = vector.extract_strided_slice %307 {offsets = [0, 0], sizes = [2, 96], strides = [1, 1]} : vector<2x128xf32> to vector<2x96xf32>
    %311 = arith.negf %310 : vector<2x96xf32>
    %312 = math.exp %311 : vector<2x96xf32>
    %cst_90 = arith.constant 1.000000e+00 : f32
    %313 = vector.broadcast %cst_90 : f32 to vector<2x96xf32>
    %314 = arith.addf %313, %312 : vector<2x96xf32>
    %315 = arith.divf %313, %314 : vector<2x96xf32>
    %316 = vector.extract_strided_slice %307 {offsets = [0, 96], sizes = [2, 32], strides = [1, 1]} : vector<2x128xf32> to vector<2x32xf32>
    %317 = math.tanh %316 : vector<2x32xf32>
    %318 = vector.extract_strided_slice %315 {offsets = [0, 0], sizes = [2, 32], strides = [1, 1]} : vector<2x96xf32> to vector<2x32xf32>
    %319 = vector.extract_strided_slice %315 {offsets = [0, 32], sizes = [2, 32], strides = [1, 1]} : vector<2x96xf32> to vector<2x32xf32>
    %320 = vector.extract_strided_slice %315 {offsets = [0, 64], sizes = [2, 32], strides = [1, 1]} : vector<2x96xf32> to vector<2x32xf32>
    %321 = arith.mulf %319, %296 : vector<2x32xf32>
    %322 = arith.mulf %318, %317 : vector<2x32xf32>
    %323 = arith.addf %321, %322 : vector<2x32xf32>
    %324 = vector.broadcast %309 : vector<2x1xf32> to vector<2x32xf32>
    %325 = arith.mulf %323, %324 : vector<2x32xf32>
    %326 = math.tanh %325 : vector<2x32xf32>
    %327 = arith.mulf %320, %326 : vector<2x32xf32>
    %328 = vector.broadcast %309 : vector<2x1xf32> to vector<2x32xf32>
    %329 = arith.mulf %327, %328 : vector<2x32xf32>
    %c5_91 = arith.constant 5 : index
    %c0_92 = arith.constant 0 : index
    %c0_93 = arith.constant 0 : index
    %330 = vector.load %arg19[%c5_91, %c0_92, %c0_93] : memref<8x2x32xf32, #tpu.memory_space<vmem>>, vector<1x2x32xf32>
    %331 = vector.shape_cast %330 : vector<1x2x32xf32> to vector<2x32xf32>
    %332 = vector.shape_cast %329 : vector<2x32xf32> to vector<1x2x32xf32>
    tpu.vector_store %arg19[%c5_91, %c0_92, %c0_93], %332 {strides = array<i32>} : memref<8x2x32xf32, #tpu.memory_space<vmem>>, vector<1x2x32xf32>,
    %333 = vector.extract_strided_slice %7 {offsets = [8, 0], sizes = [2, 128], strides = [1, 1]} : vector<16x128xf32> to vector<2x128xf32>
    %334 = arith.truncf %329 : vector<2x32xf32> to vector<2x32xbf16>
    %cst_94 = arith.constant dense<0.000000e+00> : vector<2x128xf32>
    %335 = tpu.matmul %334, %9, %cst_94 {dimension_numbers = #tpu.dot_dimension_numbers<[1], [0], [0], [1], [0, 0, 1, 1], [], []>} : vector<2x32xbf16>, vector<32x128xbf16>, vector<2x128xf32> -> vector<2x128xf32>
    %336 = arith.addf %333, %335 : vector<2x128xf32>
    %c4_95 = arith.constant 4 : index
    %c0_96 = arith.constant 0 : index
    %c0_97 = arith.constant 0 : index
    %337 = vector.load %arg2[%c4_95, %c0_96, %c0_97] : memref<8x2x1xf32, #tpu.memory_space<vmem>>, vector<1x2x1xf32>
    %338 = vector.shape_cast %337 : vector<1x2x1xf32> to vector<2x1xf32>
    %339 = vector.extract_strided_slice %336 {offsets = [0, 0], sizes = [2, 96], strides = [1, 1]} : vector<2x128xf32> to vector<2x96xf32>
    %340 = arith.negf %339 : vector<2x96xf32>
    %341 = math.exp %340 : vector<2x96xf32>
    %cst_98 = arith.constant 1.000000e+00 : f32
    %342 = vector.broadcast %cst_98 : f32 to vector<2x96xf32>
    %343 = arith.addf %342, %341 : vector<2x96xf32>
    %344 = arith.divf %342, %343 : vector<2x96xf32>
    %345 = vector.extract_strided_slice %336 {offsets = [0, 96], sizes = [2, 32], strides = [1, 1]} : vector<2x128xf32> to vector<2x32xf32>
    %346 = math.tanh %345 : vector<2x32xf32>
    %347 = vector.extract_strided_slice %344 {offsets = [0, 0], sizes = [2, 32], strides = [1, 1]} : vector<2x96xf32> to vector<2x32xf32>
    %348 = vector.extract_strided_slice %344 {offsets = [0, 32], sizes = [2, 32], strides = [1, 1]} : vector<2x96xf32> to vector<2x32xf32>
    %349 = vector.extract_strided_slice %344 {offsets = [0, 64], sizes = [2, 32], strides = [1, 1]} : vector<2x96xf32> to vector<2x32xf32>
    %350 = arith.mulf %348, %325 : vector<2x32xf32>
    %351 = arith.mulf %347, %346 : vector<2x32xf32>
    %352 = arith.addf %350, %351 : vector<2x32xf32>
    %353 = vector.broadcast %338 : vector<2x1xf32> to vector<2x32xf32>
    %354 = arith.mulf %352, %353 : vector<2x32xf32>
    %355 = math.tanh %354 : vector<2x32xf32>
    %356 = arith.mulf %349, %355 : vector<2x32xf32>
    %357 = vector.broadcast %338 : vector<2x1xf32> to vector<2x32xf32>
    %358 = arith.mulf %356, %357 : vector<2x32xf32>
    %c4_99 = arith.constant 4 : index
    %c0_100 = arith.constant 0 : index
    %c0_101 = arith.constant 0 : index
    %359 = vector.load %arg19[%c4_99, %c0_100, %c0_101] : memref<8x2x32xf32, #tpu.memory_space<vmem>>, vector<1x2x32xf32>
    %360 = vector.shape_cast %359 : vector<1x2x32xf32> to vector<2x32xf32>
    %361 = vector.shape_cast %358 : vector<2x32xf32> to vector<1x2x32xf32>
    tpu.vector_store %arg19[%c4_99, %c0_100, %c0_101], %361 {strides = array<i32>} : memref<8x2x32xf32, #tpu.memory_space<vmem>>, vector<1x2x32xf32>,
    %362 = vector.extract_strided_slice %7 {offsets = [6, 0], sizes = [2, 128], strides = [1, 1]} : vector<16x128xf32> to vector<2x128xf32>
    %363 = arith.truncf %358 : vector<2x32xf32> to vector<2x32xbf16>
    %cst_102 = arith.constant dense<0.000000e+00> : vector<2x128xf32>
    %364 = tpu.matmul %363, %9, %cst_102 {dimension_numbers = #tpu.dot_dimension_numbers<[1], [0], [0], [1], [0, 0, 1, 1], [], []>} : vector<2x32xbf16>, vector<32x128xbf16>, vector<2x128xf32> -> vector<2x128xf32>
    %365 = arith.addf %362, %364 : vector<2x128xf32>
    %c3_103 = arith.constant 3 : index
    %c0_104 = arith.constant 0 : index
    %c0_105 = arith.constant 0 : index
    %366 = vector.load %arg2[%c3_103, %c0_104, %c0_105] : memref<8x2x1xf32, #tpu.memory_space<vmem>>, vector<1x2x1xf32>
    %367 = vector.shape_cast %366 : vector<1x2x1xf32> to vector<2x1xf32>
    %368 = vector.extract_strided_slice %365 {offsets = [0, 0], sizes = [2, 96], strides = [1, 1]} : vector<2x128xf32> to vector<2x96xf32>
    %369 = arith.negf %368 : vector<2x96xf32>
    %370 = math.exp %369 : vector<2x96xf32>
    %cst_106 = arith.constant 1.000000e+00 : f32
    %371 = vector.broadcast %cst_106 : f32 to vector<2x96xf32>
    %372 = arith.addf %371, %370 : vector<2x96xf32>
    %373 = arith.divf %371, %372 : vector<2x96xf32>
    %374 = vector.extract_strided_slice %365 {offsets = [0, 96], sizes = [2, 32], strides = [1, 1]} : vector<2x128xf32> to vector<2x32xf32>
    %375 = math.tanh %374 : vector<2x32xf32>
    %376 = vector.extract_strided_slice %373 {offsets = [0, 0], sizes = [2, 32], strides = [1, 1]} : vector<2x96xf32> to vector<2x32xf32>
    %377 = vector.extract_strided_slice %373 {offsets = [0, 32], sizes = [2, 32], strides = [1, 1]} : vector<2x96xf32> to vector<2x32xf32>
    %378 = vector.extract_strided_slice %373 {offsets = [0, 64], sizes = [2, 32], strides = [1, 1]} : vector<2x96xf32> to vector<2x32xf32>
    %379 = arith.mulf %377, %354 : vector<2x32xf32>
    %380 = arith.mulf %376, %375 : vector<2x32xf32>
    %381 = arith.addf %379, %380 : vector<2x32xf32>
    %382 = vector.broadcast %367 : vector<2x1xf32> to vector<2x32xf32>
    %383 = arith.mulf %381, %382 : vector<2x32xf32>
    %384 = math.tanh %383 : vector<2x32xf32>
    %385 = arith.mulf %378, %384 : vector<2x32xf32>
    %386 = vector.broadcast %367 : vector<2x1xf32> to vector<2x32xf32>
    %387 = arith.mulf %385, %386 : vector<2x32xf32>
    %c3_107 = arith.constant 3 : index
    %c0_108 = arith.constant 0 : index
    %c0_109 = arith.constant 0 : index
    %388 = vector.load %arg19[%c3_107, %c0_108, %c0_109] : memref<8x2x32xf32, #tpu.memory_space<vmem>>, vector<1x2x32xf32>
    %389 = vector.shape_cast %388 : vector<1x2x32xf32> to vector<2x32xf32>
    %390 = vector.shape_cast %387 : vector<2x32xf32> to vector<1x2x32xf32>
    tpu.vector_store %arg19[%c3_107, %c0_108, %c0_109], %390 {strides = array<i32>} : memref<8x2x32xf32, #tpu.memory_space<vmem>>, vector<1x2x32xf32>,
    %391 = vector.extract_strided_slice %7 {offsets = [4, 0], sizes = [2, 128], strides = [1, 1]} : vector<16x128xf32> to vector<2x128xf32>
    %392 = arith.truncf %387 : vector<2x32xf32> to vector<2x32xbf16>
    %cst_110 = arith.constant dense<0.000000e+00> : vector<2x128xf32>
    %393 = tpu.matmul %392, %9, %cst_110 {dimension_numbers = #tpu.dot_dimension_numbers<[1], [0], [0], [1], [0, 0, 1, 1], [], []>} : vector<2x32xbf16>, vector<32x128xbf16>, vector<2x128xf32> -> vector<2x128xf32>
    %394 = arith.addf %391, %393 : vector<2x128xf32>
    %c2_111 = arith.constant 2 : index
    %c0_112 = arith.constant 0 : index
    %c0_113 = arith.constant 0 : index
    %395 = vector.load %arg2[%c2_111, %c0_112, %c0_113] : memref<8x2x1xf32, #tpu.memory_space<vmem>>, vector<1x2x1xf32>
    %396 = vector.shape_cast %395 : vector<1x2x1xf32> to vector<2x1xf32>
    %397 = vector.extract_strided_slice %394 {offsets = [0, 0], sizes = [2, 96], strides = [1, 1]} : vector<2x128xf32> to vector<2x96xf32>
    %398 = arith.negf %397 : vector<2x96xf32>
    %399 = math.exp %398 : vector<2x96xf32>
    %cst_114 = arith.constant 1.000000e+00 : f32
    %400 = vector.broadcast %cst_114 : f32 to vector<2x96xf32>
    %401 = arith.addf %400, %399 : vector<2x96xf32>
    %402 = arith.divf %400, %401 : vector<2x96xf32>
    %403 = vector.extract_strided_slice %394 {offsets = [0, 96], sizes = [2, 32], strides = [1, 1]} : vector<2x128xf32> to vector<2x32xf32>
    %404 = math.tanh %403 : vector<2x32xf32>
    %405 = vector.extract_strided_slice %402 {offsets = [0, 0], sizes = [2, 32], strides = [1, 1]} : vector<2x96xf32> to vector<2x32xf32>
    %406 = vector.extract_strided_slice %402 {offsets = [0, 32], sizes = [2, 32], strides = [1, 1]} : vector<2x96xf32> to vector<2x32xf32>
    %407 = vector.extract_strided_slice %402 {offsets = [0, 64], sizes = [2, 32], strides = [1, 1]} : vector<2x96xf32> to vector<2x32xf32>
    %408 = arith.mulf %406, %383 : vector<2x32xf32>
    %409 = arith.mulf %405, %404 : vector<2x32xf32>
    %410 = arith.addf %408, %409 : vector<2x32xf32>
    %411 = vector.broadcast %396 : vector<2x1xf32> to vector<2x32xf32>
    %412 = arith.mulf %410, %411 : vector<2x32xf32>
    %413 = math.tanh %412 : vector<2x32xf32>
    %414 = arith.mulf %407, %413 : vector<2x32xf32>
    %415 = vector.broadcast %396 : vector<2x1xf32> to vector<2x32xf32>
    %416 = arith.mulf %414, %415 : vector<2x32xf32>
    %c2_115 = arith.constant 2 : index
    %c0_116 = arith.constant 0 : index
    %c0_117 = arith.constant 0 : index
    %417 = vector.load %arg19[%c2_115, %c0_116, %c0_117] : memref<8x2x32xf32, #tpu.memory_space<vmem>>, vector<1x2x32xf32>
    %418 = vector.shape_cast %417 : vector<1x2x32xf32> to vector<2x32xf32>
    %419 = vector.shape_cast %416 : vector<2x32xf32> to vector<1x2x32xf32>
    tpu.vector_store %arg19[%c2_115, %c0_116, %c0_117], %419 {strides = array<i32>} : memref<8x2x32xf32, #tpu.memory_space<vmem>>, vector<1x2x32xf32>,
    %420 = vector.extract_strided_slice %7 {offsets = [2, 0], sizes = [2, 128], strides = [1, 1]} : vector<16x128xf32> to vector<2x128xf32>
    %421 = arith.truncf %416 : vector<2x32xf32> to vector<2x32xbf16>
    %cst_118 = arith.constant dense<0.000000e+00> : vector<2x128xf32>
    %422 = tpu.matmul %421, %9, %cst_118 {dimension_numbers = #tpu.dot_dimension_numbers<[1], [0], [0], [1], [0, 0, 1, 1], [], []>} : vector<2x32xbf16>, vector<32x128xbf16>, vector<2x128xf32> -> vector<2x128xf32>
    %423 = arith.addf %420, %422 : vector<2x128xf32>
    %c1_119 = arith.constant 1 : index
    %c0_120 = arith.constant 0 : index
    %c0_121 = arith.constant 0 : index
    %424 = vector.load %arg2[%c1_119, %c0_120, %c0_121] : memref<8x2x1xf32, #tpu.memory_space<vmem>>, vector<1x2x1xf32>
    %425 = vector.shape_cast %424 : vector<1x2x1xf32> to vector<2x1xf32>
    %426 = vector.extract_strided_slice %423 {offsets = [0, 0], sizes = [2, 96], strides = [1, 1]} : vector<2x128xf32> to vector<2x96xf32>
    %427 = arith.negf %426 : vector<2x96xf32>
    %428 = math.exp %427 : vector<2x96xf32>
    %cst_122 = arith.constant 1.000000e+00 : f32
    %429 = vector.broadcast %cst_122 : f32 to vector<2x96xf32>
    %430 = arith.addf %429, %428 : vector<2x96xf32>
    %431 = arith.divf %429, %430 : vector<2x96xf32>
    %432 = vector.extract_strided_slice %423 {offsets = [0, 96], sizes = [2, 32], strides = [1, 1]} : vector<2x128xf32> to vector<2x32xf32>
    %433 = math.tanh %432 : vector<2x32xf32>
    %434 = vector.extract_strided_slice %431 {offsets = [0, 0], sizes = [2, 32], strides = [1, 1]} : vector<2x96xf32> to vector<2x32xf32>
    %435 = vector.extract_strided_slice %431 {offsets = [0, 32], sizes = [2, 32], strides = [1, 1]} : vector<2x96xf32> to vector<2x32xf32>
    %436 = vector.extract_strided_slice %431 {offsets = [0, 64], sizes = [2, 32], strides = [1, 1]} : vector<2x96xf32> to vector<2x32xf32>
    %437 = arith.mulf %435, %412 : vector<2x32xf32>
    %438 = arith.mulf %434, %433 : vector<2x32xf32>
    %439 = arith.addf %437, %438 : vector<2x32xf32>
    %440 = vector.broadcast %425 : vector<2x1xf32> to vector<2x32xf32>
    %441 = arith.mulf %439, %440 : vector<2x32xf32>
    %442 = math.tanh %441 : vector<2x32xf32>
    %443 = arith.mulf %436, %442 : vector<2x32xf32>
    %444 = vector.broadcast %425 : vector<2x1xf32> to vector<2x32xf32>
    %445 = arith.mulf %443, %444 : vector<2x32xf32>
    %c1_123 = arith.constant 1 : index
    %c0_124 = arith.constant 0 : index
    %c0_125 = arith.constant 0 : index
    %446 = vector.load %arg19[%c1_123, %c0_124, %c0_125] : memref<8x2x32xf32, #tpu.memory_space<vmem>>, vector<1x2x32xf32>
    %447 = vector.shape_cast %446 : vector<1x2x32xf32> to vector<2x32xf32>
    %448 = vector.shape_cast %445 : vector<2x32xf32> to vector<1x2x32xf32>
    tpu.vector_store %arg19[%c1_123, %c0_124, %c0_125], %448 {strides = array<i32>} : memref<8x2x32xf32, #tpu.memory_space<vmem>>, vector<1x2x32xf32>,
    %449 = vector.extract_strided_slice %7 {offsets = [0, 0], sizes = [2, 128], strides = [1, 1]} : vector<16x128xf32> to vector<2x128xf32>
    %450 = arith.truncf %445 : vector<2x32xf32> to vector<2x32xbf16>
    %cst_126 = arith.constant dense<0.000000e+00> : vector<2x128xf32>
    %451 = tpu.matmul %450, %9, %cst_126 {dimension_numbers = #tpu.dot_dimension_numbers<[1], [0], [0], [1], [0, 0, 1, 1], [], []>} : vector<2x32xbf16>, vector<32x128xbf16>, vector<2x128xf32> -> vector<2x128xf32>
    %452 = arith.addf %449, %451 : vector<2x128xf32>
    %c0_127 = arith.constant 0 : index
    %c0_128 = arith.constant 0 : index
    %c0_129 = arith.constant 0 : index
    %453 = vector.load %arg2[%c0_127, %c0_128, %c0_129] : memref<8x2x1xf32, #tpu.memory_space<vmem>>, vector<1x2x1xf32>
    %454 = vector.shape_cast %453 : vector<1x2x1xf32> to vector<2x1xf32>
    %455 = vector.extract_strided_slice %452 {offsets = [0, 0], sizes = [2, 96], strides = [1, 1]} : vector<2x128xf32> to vector<2x96xf32>
    %456 = arith.negf %455 : vector<2x96xf32>
    %457 = math.exp %456 : vector<2x96xf32>
    %cst_130 = arith.constant 1.000000e+00 : f32
    %458 = vector.broadcast %cst_130 : f32 to vector<2x96xf32>
    %459 = arith.addf %458, %457 : vector<2x96xf32>
    %460 = arith.divf %458, %459 : vector<2x96xf32>
    %461 = vector.extract_strided_slice %452 {offsets = [0, 96], sizes = [2, 32], strides = [1, 1]} : vector<2x128xf32> to vector<2x32xf32>
    %462 = math.tanh %461 : vector<2x32xf32>
    %463 = vector.extract_strided_slice %460 {offsets = [0, 0], sizes = [2, 32], strides = [1, 1]} : vector<2x96xf32> to vector<2x32xf32>
    %464 = vector.extract_strided_slice %460 {offsets = [0, 32], sizes = [2, 32], strides = [1, 1]} : vector<2x96xf32> to vector<2x32xf32>
    %465 = vector.extract_strided_slice %460 {offsets = [0, 64], sizes = [2, 32], strides = [1, 1]} : vector<2x96xf32> to vector<2x32xf32>
    %466 = arith.mulf %464, %441 : vector<2x32xf32>
    %467 = arith.mulf %463, %462 : vector<2x32xf32>
    %468 = arith.addf %466, %467 : vector<2x32xf32>
    %469 = vector.broadcast %454 : vector<2x1xf32> to vector<2x32xf32>
    %470 = arith.mulf %468, %469 : vector<2x32xf32>
    %471 = math.tanh %470 : vector<2x32xf32>
    %472 = arith.mulf %465, %471 : vector<2x32xf32>
    %473 = vector.broadcast %454 : vector<2x1xf32> to vector<2x32xf32>
    %474 = arith.mulf %472, %473 : vector<2x32xf32>
    %c0_131 = arith.constant 0 : index
    %c0_132 = arith.constant 0 : index
    %c0_133 = arith.constant 0 : index
    %475 = vector.load %arg19[%c0_131, %c0_132, %c0_133] : memref<8x2x32xf32, #tpu.memory_space<vmem>>, vector<1x2x32xf32>
    %476 = vector.shape_cast %475 : vector<1x2x32xf32> to vector<2x32xf32>
    %477 = vector.shape_cast %474 : vector<2x32xf32> to vector<1x2x32xf32>
    tpu.vector_store %arg19[%c0_131, %c0_132, %c0_133], %477 {strides = array<i32>} : memref<8x2x32xf32, #tpu.memory_space<vmem>>, vector<1x2x32xf32>,
    %c0_134 = arith.constant 0 : index
    %c0_135 = arith.constant 0 : index
    %c0_136 = arith.constant 0 : index
    %478 = vector.load %arg18[%c0_134, %c0_135, %c0_136] : memref<8x2x32xf32, #tpu.memory_space<vmem>>, vector<8x2x32xf32>
    %c0_137 = arith.constant 0 : index
    %c0_138 = arith.constant 0 : index
    %c0_139 = arith.constant 0 : index
    %479 = vector.load %arg19[%c0_137, %c0_138, %c0_139] : memref<8x2x32xf32, #tpu.memory_space<vmem>>, vector<8x2x32xf32>
    %c0_140 = arith.constant 0 : index
    %c0_141 = arith.constant 0 : index
    %c0_142 = arith.constant 0 : index
    %480 = vector.load %arg2[%c0_140, %c0_141, %c0_142] : memref<8x2x1xf32, #tpu.memory_space<vmem>>, vector<8x2x1xf32>
    %c0_143 = arith.constant 0 : index
    %c0_144 = arith.constant 0 : index
    %481 = vector.load %arg7[%c0_143, %c0_144] : memref<2x64xbf16, #tpu.memory_space<vmem>>, vector<2x64xbf16>
    %c0_145 = arith.constant 0 : index
    %c0_146 = arith.constant 0 : index
    %482 = vector.load %arg8[%c0_145, %c0_146] : memref<64x64xbf16, #tpu.memory_space<vmem>>, vector<64x64xbf16>
    %cst_147 = arith.constant dense<0.000000e+00> : vector<2x64xf32>
    %483 = tpu.matmul %481, %482, %cst_147 {dimension_numbers = #tpu.dot_dimension_numbers<[1], [0], [0], [1], [0, 0, 1, 1], [], []>} : vector<2x64xbf16>, vector<64x64xbf16>, vector<2x64xf32> -> vector<2x64xf32>
    %484 = vector.extract_strided_slice %483 {offsets = [0, 0], sizes = [2, 32], strides = [1, 1]} : vector<2x64xf32> to vector<2x32xf32>
    %485 = vector.shape_cast %484 : vector<2x32xf32> to vector<1x2x32xf32>
    %486 = vector.extract_strided_slice %483 {offsets = [0, 32], sizes = [2, 32], strides = [1, 1]} : vector<2x64xf32> to vector<2x32xf32>
    %487 = vector.shape_cast %486 : vector<2x32xf32> to vector<1x2x32xf32>
    %488 = vector.broadcast %485 : vector<1x2x32xf32> to vector<8x2x32xf32>
    %489 = arith.mulf %478, %488 : vector<8x2x32xf32>
    %cst_148 = arith.constant dense<0.000000e+00> : vector<8x2xf32>
    %490 = vector.multi_reduction <add>, %489, %cst_148 [2] : vector<8x2x32xf32> to vector<8x2xf32>
    %491 = vector.shape_cast %490 : vector<8x2xf32> to vector<8x2x1xf32>
    %492 = vector.broadcast %487 : vector<1x2x32xf32> to vector<8x2x32xf32>
    %493 = arith.mulf %479, %492 : vector<8x2x32xf32>
    %cst_149 = arith.constant dense<0.000000e+00> : vector<8x2xf32>
    %494 = vector.multi_reduction <add>, %493, %cst_149 [2] : vector<8x2x32xf32> to vector<8x2xf32>
    %495 = vector.shape_cast %494 : vector<8x2xf32> to vector<8x2x1xf32>
    %496 = arith.addf %491, %495 : vector<8x2x1xf32>
    %cst_150 = arith.constant 5.000000e-01 : f32
    %497 = vector.broadcast %cst_150 : f32 to vector<8x2x1xf32>
    %498 = arith.cmpf ogt, %480, %497 : vector<8x2x1xf32>
    %cst_151 = arith.constant 0xFF800000 : f32
    %499 = vector.broadcast %cst_151 : f32 to vector<8x2x1xf32>
    %500 = arith.select %498, %496, %499 : vector<8x2x1xi1>, vector<8x2x1xf32>
    %cst_152 = arith.constant dense<0xFF800000> : vector<2x1xf32>
    %501 = vector.multi_reduction <maximumf>, %500, %cst_152 [0] : vector<8x2x1xf32> to vector<2x1xf32>
    %502 = vector.shape_cast %501 : vector<2x1xf32> to vector<1x2x1xf32>
    %503 = vector.broadcast %502 : vector<1x2x1xf32> to vector<8x2x1xf32>
    %504 = arith.subf %500, %503 : vector<8x2x1xf32>
    %505 = math.exp %504 : vector<8x2x1xf32>
    %cst_153 = arith.constant dense<0.000000e+00> : vector<2x1xf32>
    %506 = vector.multi_reduction <add>, %505, %cst_153 [0] : vector<8x2x1xf32> to vector<2x1xf32>
    %507 = vector.shape_cast %506 : vector<2x1xf32> to vector<1x2x1xf32>
    %508 = vector.broadcast %507 : vector<1x2x1xf32> to vector<8x2x1xf32>
    %509 = arith.divf %505, %508 : vector<8x2x1xf32>
    %510 = vector.broadcast %509 : vector<8x2x1xf32> to vector<8x2x32xf32>
    %511 = arith.mulf %510, %478 : vector<8x2x32xf32>
    %cst_154 = arith.constant dense<0.000000e+00> : vector<2x32xf32>
    %512 = vector.multi_reduction <add>, %511, %cst_154 [0] : vector<8x2x32xf32> to vector<2x32xf32>
    %513 = vector.broadcast %509 : vector<8x2x1xf32> to vector<8x2x32xf32>
    %514 = arith.mulf %513, %479 : vector<8x2x32xf32>
    %cst_155 = arith.constant dense<0.000000e+00> : vector<2x32xf32>
    %515 = vector.multi_reduction <add>, %514, %cst_155 [0] : vector<8x2x32xf32> to vector<2x32xf32>
    %516 = tpu.concatenate %512, %515 in 1 : vector<2x32xf32>, vector<2x32xf32> -> vector<2x64xf32>
    %c0_156 = arith.constant 0 : index
    %c0_157 = arith.constant 0 : index
    %517 = vector.load %arg9[%c0_156, %c0_157] : memref<2x64xf32, #tpu.memory_space<vmem>>, vector<2x64xf32>
    %518 = arith.truncf %517 : vector<2x64xf32> to vector<2x64xbf16>
    %c0_158 = arith.constant 0 : index
    %c0_159 = arith.constant 0 : index
    %519 = vector.load %arg10[%c0_158, %c0_159] : memref<64x64xbf16, #tpu.memory_space<vmem>>, vector<64x64xbf16>
    %cst_160 = arith.constant dense<0.000000e+00> : vector<2x64xf32>
    %520 = tpu.matmul %518, %519, %cst_160 {dimension_numbers = #tpu.dot_dimension_numbers<[1], [0], [0], [1], [0, 0, 1, 1], [], []>} : vector<2x64xbf16>, vector<64x64xbf16>, vector<2x64xf32> -> vector<2x64xf32>
    %521 = arith.truncf %516 : vector<2x64xf32> to vector<2x64xbf16>
    %c0_161 = arith.constant 0 : index
    %c0_162 = arith.constant 0 : index
    %522 = vector.load %arg11[%c0_161, %c0_162] : memref<64x64xbf16, #tpu.memory_space<vmem>>, vector<64x64xbf16>
    %cst_163 = arith.constant dense<0.000000e+00> : vector<2x64xf32>
    %523 = tpu.matmul %521, %522, %cst_163 {dimension_numbers = #tpu.dot_dimension_numbers<[1], [0], [0], [1], [0, 0, 1, 1], [], []>} : vector<2x64xbf16>, vector<64x64xbf16>, vector<2x64xf32> -> vector<2x64xf32>
    %524 = arith.addf %520, %523 : vector<2x64xf32>
    %c0_164 = arith.constant 0 : index
    %c0_165 = arith.constant 0 : index
    %525 = vector.load %arg12[%c0_164, %c0_165] : memref<1x64xf32, #tpu.memory_space<vmem>>, vector<1x64xf32>
    %526 = vector.broadcast %525 : vector<1x64xf32> to vector<2x64xf32>
    %527 = arith.addf %524, %526 : vector<2x64xf32>
    %528 = arith.negf %527 : vector<2x64xf32>
    %529 = math.exp %528 : vector<2x64xf32>
    %cst_166 = arith.constant 1.000000e+00 : f32
    %530 = vector.broadcast %cst_166 : f32 to vector<2x64xf32>
    %531 = arith.addf %530, %529 : vector<2x64xf32>
    %532 = arith.divf %530, %531 : vector<2x64xf32>
    %533 = arith.mulf %532, %517 : vector<2x64xf32>
    %cst_167 = arith.constant 1.000000e+00 : f32
    %534 = vector.broadcast %cst_167 : f32 to vector<2x64xf32>
    %535 = arith.subf %534, %532 : vector<2x64xf32>
    %536 = arith.mulf %535, %516 : vector<2x64xf32>
    %537 = arith.addf %533, %536 : vector<2x64xf32>
    %538 = arith.truncf %537 : vector<2x64xf32> to vector<2x64xbf16>
    %c0_168 = arith.constant 0 : index
    %c0_169 = arith.constant 0 : index
    %539 = vector.load %arg13[%c0_168, %c0_169] : memref<64x32xbf16, #tpu.memory_space<vmem>>, vector<64x32xbf16>
    %cst_170 = arith.constant dense<0.000000e+00> : vector<2x32xf32>
    %540 = tpu.matmul %538, %539, %cst_170 {dimension_numbers = #tpu.dot_dimension_numbers<[1], [0], [0], [1], [0, 0, 1, 1], [], []>} : vector<2x64xbf16>, vector<64x32xbf16>, vector<2x32xf32> -> vector<2x32xf32>
    %c0_171 = arith.constant 0 : index
    %c0_172 = arith.constant 0 : index
    %541 = vector.load %arg14[%c0_171, %c0_172] : memref<1x32xf32, #tpu.memory_space<vmem>>, vector<1x32xf32>
    %542 = vector.broadcast %541 : vector<1x32xf32> to vector<2x32xf32>
    %543 = arith.addf %540, %542 : vector<2x32xf32>
    %cst_173 = arith.constant 0.000000e+00 : f32
    %544 = vector.broadcast %cst_173 : f32 to vector<2x32xf32>
    %545 = arith.maximumf %543, %544 : vector<2x32xf32>
    %c0_174 = arith.constant 0 : index
    %c0_175 = arith.constant 0 : index
    %546 = vector.load %arg15[%c0_174, %c0_175] : memref<2x32xf32, #tpu.memory_space<vmem>>, vector<2x32xf32>
    tpu.vector_store %arg15[%c0_174, %c0_175], %545 {strides = array<i32>} : memref<2x32xf32, #tpu.memory_space<vmem>>, vector<2x32xf32>,
    %c0_176 = arith.constant 0 : index
    %c0_177 = arith.constant 0 : index
    %c0_178 = arith.constant 0 : index
    %547 = vector.load %arg16[%c0_176, %c0_177, %c0_178] : memref<8x2x1xf32, #tpu.memory_space<vmem>>, vector<8x2x1xf32>
    tpu.vector_store %arg16[%c0_176, %c0_177, %c0_178], %509 {strides = array<i32>} : memref<8x2x1xf32, #tpu.memory_space<vmem>>, vector<8x2x1xf32>,
    %c0_179 = arith.constant 0 : index
    %c0_180 = arith.constant 0 : index
    %548 = vector.load %arg17[%c0_179, %c0_180] : memref<2x64xf32, #tpu.memory_space<vmem>>, vector<2x64xf32>
    tpu.vector_store %arg17[%c0_179, %c0_180], %532 {strides = array<i32>} : memref<2x64xf32, #tpu.memory_space<vmem>>, vector<2x64xf32>,
    return
  }
  func.func @transform_0(%arg0: i32) -> (i32, i32) {
    %c0_i32 = arith.constant 0 : i32
    %c0_i32_0 = arith.constant 0 : i32
    %c0_i32_1 = arith.constant 0 : i32
    return %c0_i32, %c0_i32_0 : i32, i32
  }
  func.func @transform_1(%arg0: i32) -> (i32, i32, i32) {
    %c0_i32 = arith.constant 0 : i32
    %c0_i32_0 = arith.constant 0 : i32
    %c0_i32_1 = arith.constant 0 : i32
    %c0_i32_2 = arith.constant 0 : i32
    return %c0_i32, %c0_i32_0, %c0_i32_1 : i32, i32, i32
  }
  func.func @transform_2(%arg0: i32) -> (i32, i32) {
    %c0_i32 = arith.constant 0 : i32
    %c0_i32_0 = arith.constant 0 : i32
    %c0_i32_1 = arith.constant 0 : i32
    return %c0_i32, %c0_i32_0 : i32, i32
  }
  func.func @transform_3(%arg0: i32) -> (i32, i32) {
    %c0_i32 = arith.constant 0 : i32
    %c0_i32_0 = arith.constant 0 : i32
    %c0_i32_1 = arith.constant 0 : i32
    return %c0_i32, %c0_i32_0 : i32, i32
  }
  func.func @transform_4(%arg0: i32) -> (i32, i32) {
    %c0_i32 = arith.constant 0 : i32
    %c0_i32_0 = arith.constant 0 : i32
    %c0_i32_1 = arith.constant 0 : i32
    return %c0_i32, %c0_i32_0 : i32, i32
  }
  func.func @transform_5(%arg0: i32) -> (i32, i32) {
    %c0_i32 = arith.constant 0 : i32
    %c0_i32_0 = arith.constant 0 : i32
    %c0_i32_1 = arith.constant 0 : i32
    return %c0_i32, %c0_i32_0 : i32, i32
  }
  func.func @transform_6(%arg0: i32) -> (i32, i32) {
    %c0_i32 = arith.constant 0 : i32
    %c0_i32_0 = arith.constant 0 : i32
    %c0_i32_1 = arith.constant 0 : i32
    return %c0_i32, %c0_i32_0 : i32, i32
  }
  func.func @transform_7(%arg0: i32) -> (i32, i32) {
    %c0_i32 = arith.constant 0 : i32
    %c0_i32_0 = arith.constant 0 : i32
    %c0_i32_1 = arith.constant 0 : i32
    return %c0_i32, %c0_i32_0 : i32, i32
  }
  func.func @transform_8(%arg0: i32) -> (i32, i32) {
    %c0_i32 = arith.constant 0 : i32
    %c0_i32_0 = arith.constant 0 : i32
    %c0_i32_1 = arith.constant 0 : i32
    return %c0_i32, %c0_i32_0 : i32, i32
  }
  func.func @transform_9(%arg0: i32) -> (i32, i32) {
    %c0_i32 = arith.constant 0 : i32
    %c0_i32_0 = arith.constant 0 : i32
    %c0_i32_1 = arith.constant 0 : i32
    return %c0_i32, %c0_i32_0 : i32, i32
  }
  func.func @transform_10(%arg0: i32) -> (i32, i32) {
    %c0_i32 = arith.constant 0 : i32
    %c0_i32_0 = arith.constant 0 : i32
    %c0_i32_1 = arith.constant 0 : i32
    return %c0_i32, %c0_i32_0 : i32, i32
  }
  func.func @transform_11(%arg0: i32) -> (i32, i32) {
    %c0_i32 = arith.constant 0 : i32
    %c0_i32_0 = arith.constant 0 : i32
    %c0_i32_1 = arith.constant 0 : i32
    return %c0_i32, %c0_i32_0 : i32, i32
  }
  func.func @transform_12(%arg0: i32) -> (i32, i32) {
    %c0_i32 = arith.constant 0 : i32
    %c0_i32_0 = arith.constant 0 : i32
    %c0_i32_1 = arith.constant 0 : i32
    return %c0_i32, %c0_i32_0 : i32, i32
  }
  func.func @transform_13(%arg0: i32) -> (i32, i32) {
    %c0_i32 = arith.constant 0 : i32
    %c0_i32_0 = arith.constant 0 : i32
    %c0_i32_1 = arith.constant 0 : i32
    return %c0_i32, %c0_i32_0 : i32, i32
  }
  func.func @transform_14(%arg0: i32) -> (i32, i32) {
    %c0_i32 = arith.constant 0 : i32
    %c0_i32_0 = arith.constant 0 : i32
    %c0_i32_1 = arith.constant 0 : i32
    return %c0_i32, %c0_i32_0 : i32, i32
  }
  func.func @transform_15(%arg0: i32) -> (i32, i32, i32) {
    %c0_i32 = arith.constant 0 : i32
    %c0_i32_0 = arith.constant 0 : i32
    %c0_i32_1 = arith.constant 0 : i32
    %c0_i32_2 = arith.constant 0 : i32
    return %c0_i32, %c0_i32_0, %c0_i32_1 : i32, i32, i32
  }
  func.func @transform_16(%arg0: i32) -> (i32, i32) {
    %c0_i32 = arith.constant 0 : i32
    %c0_i32_0 = arith.constant 0 : i32
    %c0_i32_1 = arith.constant 0 : i32
    return %c0_i32, %c0_i32_0 : i32, i32
  }
}

</mosaic_0001>

<bundles_post_ra>
// kernel: tpu_custom_call.1
= control target key start
LH: loop header
LB: loop body
LE: loop exit
PB: predicated region body
PF: predicated region fallthrough
CT: control target
= control target key end

     0   :  { %s3987_s0 = inlined_call_operand.hbm [shape: bf16[16,32], index: 0, kind: input, shape index: {}]   ;;  %s3988_s1 = inlined_call_operand.vmem [shape: f32[8,2,1], index: 1, kind: input, shape index: {}]   ;;  %s3989_s2 = inlined_call_operand.vmem [shape: bf16[32,256], index: 2, kind: input, shape index: {}]   ;;  %s3990_s3 = inlined_call_operand.hbm [shape: f32[1,256], index: 3, kind: input, shape index: {}]   ;;  %s3991_s4 = inlined_call_operand.hbm [shape: bf16[32,128], index: 4, kind: input, shape index: {}]   ;;  %s3992_s5 = inlined_call_operand.hbm [shape: bf16[32,128], index: 5, kind: input, shape index: {}]   ;;  %s3993_s6 = inlined_call_operand.hbm [shape: bf16[2,64], index: 6, kind: input, shape index: {}]   ;;  %s3994_s7 = inlined_call_operand.vmem [shape: bf16[64,64], index: 7, kind: input, shape index: {}]   ;;  %s3995_s8 = inlined_call_operand.hbm [shape: f32[2,64], index: 8, kind: input, shape index: {}]   ;;  %s3996_s9 = inlined_call_operand.vmem [shape: bf16[64,64], index: 9, kind: input, shape index: {}]   ;;  %s3997_s10 = inlined_call_operand.hbm [shape: bf16[64,64], index: 10, kind: input, shape index: {}]   ;;  %s3998_s11 = inlined_call_operand.vmem [shape: f32[1,64], index: 11, kind: input, shape index: {}]   ;;  %s3999_s12 = inlined_call_operand.vmem [shape: bf16[64,32], index: 12, kind: input, shape index: {}]   ;;  %s4000_s13 = inlined_call_operand.vmem [shape: f32[1,32], index: 13, kind: input, shape index: {}]   ;;  %s4001_s14 = inlined_call_operand.hbm [shape: f32[2,32], index: 14, kind: output, shape index: {0}]   ;;  %s4002_s15 = inlined_call_operand.vmem [shape: f32[8,2,1], index: 15, kind: output, shape index: {1}]   ;;  %s4003_s16 = inlined_call_operand.hbm [shape: f32[2,64], index: 16, kind: output, shape index: {2}]  }
   0x1   :  { %4005 = sst [smem:[#allocation25_spill]] %s3987_s0 }
   0x2   :  { %22 = vsyncpa [#allocation5], 0 }
   0x3   :  { %23 = vsyncpa [#allocation8], 0 }
   0x4   :  { %24 = vsyncpa [#allocation11], 0 }
   0x5   :  { %25 = vsyncpa [#allocation14], 0 }
   0x6   :  { %26 = vsyncpa [#allocation6], 0 }
   0x7   :  { %27 = vsyncpa [#allocation18], 0  ;;  %s3115_s21 = smov [#allocation7]   ;;  %s2905_s25 = scalar_lea.hbm %s3990_s3, 32 }
   0x8   :  { %s50_s22 = sshll.u32 %s3115_s21, 4  ;;  %p2906_p0 = scmp.ne.s32.totalorder %s3990_s3, %s2905_s25  ;;  %s51_s22 = int_to_ptr.vmem [resolvable:$true] %s50_s22 }
   0x9   :  { %p2909_p1 = scmp.lt.u32.totalorder %s2905_s25, %s3990_s3 }
   0xb   :  { %p2911_p2 = pnand %p2909_p1, %p2906_p0 }
   0xd   :  { %2914 = shalt.err (!%p2911_p2)
}
   0xe   :  { %s2915_s30 = scalar_lea.vmem %s51_s22, 32  ;;  %p2920_p4 = scmp.lt.s32.totalorder %s51_s22, %s51_s22 }
   0xf   :  { %p2916_p3 = scmp.ne.s32.totalorder %s51_s22, %s2915_s30  ;;  %p2921_p5 = scmp.lt.s32.totalorder %s2915_s30, %s2915_s30 }
  0x11   :  { %p2922_p6 = por %p2921_p5, %p2920_p4 }
  0x13   :  { %p2923_p7 = pnand %p2922_p6, %p2916_p3 }
  0x15   :  { %2926 = shalt.err (!%p2923_p7)
}
  0x16   :  { %53 = dma.hbm_to_vmem [thread:$0]  %s3990_s3, 32, %s51_s22, [#allocation8]  }
  0x17   :  { %s3116_s18 = smov [#allocation10]   ;;  %s3117_s20 = smov [#allocation13]  }
  0x18   :  { %s71_s19 = sshll.u32 %s3116_s18, 4  ;;  %s96_s21 = sshll.u32 %s3117_s20, 4  ;;  %s72_s19 = int_to_ptr.vmem [resolvable:$true] %s71_s19  ;;  %s97_s21 = int_to_ptr.vmem [resolvable:$true] %s96_s21 }
  0x19   :  { %s2927_s25 = scalar_lea.hbm %s3992_s5, 256 }
  0x1a   :  { %p2928_p8 = scmp.ne.s32.totalorder %s3992_s5, %s2927_s25  ;;  %p2931_p9 = scmp.lt.u32.totalorder %s2927_s25, %s3992_s5 }
  0x1c   :  { %p2933_p10 = pnand %p2931_p9, %p2928_p8 }
  0x1e   :  { %2936 = shalt.err (!%p2933_p10)
}
  0x1f   :  { %s2937_s3 = scalar_lea.vmem %s72_s19, 256  ;;  %p2942_p12 = scmp.lt.s32.totalorder %s72_s19, %s72_s19 }
  0x20   :  { %p2938_p11 = scmp.ne.s32.totalorder %s72_s19, %s2937_s3  ;;  %p2943_p13 = scmp.lt.s32.totalorder %s2937_s3, %s2937_s3 }
  0x22   :  { %p2944_p0 = por %p2943_p13, %p2942_p12 }
  0x24   :  { %p2945_p1 = pnand %p2944_p0, %p2938_p11 }
  0x26   :  { %2948 = shalt.err (!%p2945_p1)
}
  0x27   :  { %s3118_s22 = smov 64   ;;  %s3119_s30 = smov 4  }
  0x28   :  { %77 = dma.hbm_to_vmem [thread:$0]  %s3992_s5, 256, %s72_s19, [#allocation11], %s3118_s22, %s3118_s22, %s3119_s30  }
  0x29   :  { %s2949_s23 = scalar_lea.hbm %s3995_s8, 32 }
  0x2a   :  { %p2950_p2 = scmp.ne.s32.totalorder %s3995_s8, %s2949_s23  ;;  %p2953_p3 = scmp.lt.u32.totalorder %s2949_s23, %s3995_s8 }
  0x2c   :  { %p2955_p4 = pnand %p2953_p3, %p2950_p2 }
  0x2e   :  { %2958 = shalt.err (!%p2955_p4)
}
  0x2f   :  { %s2959_s28 = scalar_lea.vmem %s97_s21, 32  ;;  %p2964_p6 = scmp.lt.s32.totalorder %s97_s21, %s97_s21 }
  0x30   :  { %p2960_p5 = scmp.ne.s32.totalorder %s97_s21, %s2959_s28  ;;  %p2965_p7 = scmp.lt.s32.totalorder %s2959_s28, %s2959_s28 }
  0x32   :  { %p2966_p8 = por %p2965_p7, %p2964_p6 }
  0x34   :  { %p2967_p9 = pnand %p2966_p8, %p2960_p5 }
  0x36   :  { %2970 = shalt.err (!%p2967_p9)
}
  0x37   :  { %99 = dma.hbm_to_vmem [thread:$0]  %s3995_s8, 32, %s97_s21, [#allocation14]  }
  0x38   :  { %s3120_s29 = smov [#allocation4]   ;;  %s3121_s0 = smov [#allocation9]  }
  0x39   :  { %s33_s3 = sshll.u32 %s3120_s29, 4  ;;  %s59_s17 = sshll.u32 %s3121_s0, 4  ;;  %s34_s3 = int_to_ptr.vmem [resolvable:$true] %s33_s3  ;;  %s60_s17 = int_to_ptr.vmem [resolvable:$true] %s59_s17 }
  0x3a   :  { %s4006_s23 = sld [smem:[#allocation25_spill]] }
  0x40   :  { %s2971_s24 = scalar_lea.hbm %s4006_s23, 128 }
  0x41   :  { %p2972_p10 = scmp.ne.s32.totalorder %s4006_s23, %s2971_s24  ;;  %p2975_p11 = scmp.lt.u32.totalorder %s2971_s24, %s4006_s23 }
  0x43   :  { %p2977_p12 = pnand %p2975_p11, %p2972_p10 }
  0x45   :  { %2980 = shalt.err (!%p2977_p12)
}
  0x46   :  { %s2981_s8 = scalar_lea.vmem %s34_s3, 128  ;;  %p2986_p0 = scmp.lt.s32.totalorder %s34_s3, %s34_s3 }
  0x47   :  { %p2982_p13 = scmp.ne.s32.totalorder %s34_s3, %s2981_s8  ;;  %p2987_p1 = scmp.lt.s32.totalorder %s2981_s8, %s2981_s8 }
  0x49   :  { %p2988_p2 = por %p2987_p1, %p2986_p0 }
  0x4b   :  { %p2989_p3 = pnand %p2988_p2, %p2982_p13 }
  0x4d   :  { %2992 = shalt.err (!%p2989_p3)
}
  0x4e   :  { %39 = dma.hbm_to_vmem [thread:$0]  %s4006_s23, 128, %s34_s3, [#allocation5], %s3118_s22, %s3118_s22, %s3119_s30  }
  0x4f   :  { %s2993_s0 = scalar_lea.hbm %s3991_s4, 256 }
  0x50   :  { %p2994_p4 = scmp.ne.s32.totalorder %s3991_s4, %s2993_s0  ;;  %p2997_p5 = scmp.lt.u32.totalorder %s2993_s0, %s3991_s4 }
  0x52   :  { %p2999_p6 = pnand %p2997_p5, %p2994_p4 }
  0x54   :  { %3002 = shalt.err (!%p2999_p6)
}
  0x55   :  { %s3003_s26 = scalar_lea.vmem %s60_s17, 256  ;;  %p3008_p8 = scmp.lt.s32.totalorder %s60_s17, %s60_s17 }
  0x56   :  { %p3004_p7 = scmp.ne.s32.totalorder %s60_s17, %s3003_s26  ;;  %p3009_p9 = scmp.lt.s32.totalorder %s3003_s26, %s3003_s26 }
  0x58   :  { %p3010_p10 = por %p3009_p9, %p3008_p8 }
  0x5a   :  { %p3011_p11 = pnand %p3010_p10, %p3004_p7 }
  0x5c   :  { %3014 = shalt.err (!%p3011_p11)
}
  0x5d   :  { %65 = dma.hbm_to_vmem [thread:$0]  %s3991_s4, 256, %s60_s17, [#allocation8], %s3118_s22, %s3118_s22, %s3119_s30  }
  0x5e   :  { %s3122_s27 = smov [#allocation12]   ;;  %s3123_s8 = smov [#allocation15]  }
  0x5f   :  { %s84_s28 = sshll.u32 %s3122_s27, 4  ;;  %s107_s21 = sshll.u32 %s3123_s8, 4  ;;  %s85_s28 = int_to_ptr.vmem [resolvable:$true] %s84_s28  ;;  %s108_s21 = int_to_ptr.vmem [resolvable:$true] %s107_s21 }
  0x60   :  { %s3015_s29 = scalar_lea.hbm %s3993_s6, 16 }
  0x61   :  { %p3016_p12 = scmp.ne.s32.totalorder %s3993_s6, %s3015_s29  ;;  %p3019_p13 = scmp.lt.u32.totalorder %s3015_s29, %s3993_s6 }
  0x63   :  { %p3021_p0 = pnand %p3019_p13, %p3016_p12 }
  0x65   :  { %3024 = shalt.err (!%p3021_p0)
}
  0x66   :  { %s3025_s4 = scalar_lea.vmem %s85_s28, 16  ;;  %s3029_s17 = scalar_lea.vmem %s85_s28, 32 }
  0x67   :  { %p3026_p1 = scmp.ne.s32.totalorder %s85_s28, %s3025_s4  ;;  %p3030_p2 = scmp.lt.s32.totalorder %s85_s28, %s85_s28 }
  0x68   :  { %p3031_p3 = scmp.lt.s32.totalorder %s3029_s17, %s3025_s4 }
  0x6a   :  { %p3032_p4 = por %p3031_p3, %p3030_p2 }
  0x6c   :  { %p3033_p5 = pnand %p3032_p4, %p3026_p1 }
  0x6e   :  { %3036 = shalt.err (!%p3033_p5)
}
  0x6f   :  { %87 = dma.hbm_to_vmem [thread:$0]  %s3993_s6, 16, %s85_s28, [#allocation11]  }
  0x70   :  { %s3037_s27 = scalar_lea.hbm %s3997_s10, 512 }
  0x71   :  { %p3038_p6 = scmp.ne.s32.totalorder %s3997_s10, %s3037_s27  ;;  %p3041_p7 = scmp.lt.u32.totalorder %s3037_s27, %s3997_s10 }
  0x73   :  { %p3043_p8 = pnand %p3041_p7, %p3038_p6 }
  0x75   :  { %3046 = shalt.err (!%p3043_p8)
}
  0x76   :  { %s3047_s0 = scalar_lea.vmem %s108_s21, 512  ;;  %p3052_p10 = scmp.lt.s32.totalorder %s108_s21, %s108_s21 }
  0x77   :  { %p3048_p9 = scmp.ne.s32.totalorder %s108_s21, %s3047_s0  ;;  %p3053_p11 = scmp.lt.s32.totalorder %s3047_s0, %s3047_s0 }
  0x79   :  { %p3054_p12 = por %p3053_p11, %p3052_p10 }
  0x7b   :  { %p3055_p13 = pnand %p3054_p12, %p3048_p9 }
  0x7d   :  { %3058 = shalt.err (!%p3055_p13)
}
  0x7e   :  { %113 = dma.hbm_to_vmem [thread:$0]  %s3997_s10, 512, %s108_s21, [#allocation14], %s3118_s22, %s3118_s22, %s3119_s30  }
  0x7f   :  { %3103 = dma.done.wait [#allocation5], 128  }
  0x80   :  { %3104 = vsyncadd [#allocation5], 4294967168 }
  0x81   :  { %3105 = dma.done.wait [#allocation8], 288  }
  0x82   :  { %3106 = vsyncadd [#allocation8], 4294967008 }
  0x83   :  { %3107 = dma.done.wait [#allocation11], 272  }
  0x84   :  { %3108 = vsyncadd [#allocation11], 4294967024 }
  0x85   :  { %3109 = dma.done.wait [#allocation14], 544  }
  0x86   :  { %3110 = vsyncadd [#allocation14], 4294966752  ;;  %v3124_v0 = vmov 0.0   ;;  %vm3125_vm0 = vmmov 0   ;;  %v3126_v1 = vmov 0   ;;  %v3321_v3 = vld [vmem:[#allocation9] sm:$0xff]   ;;  %v150_v9 = vlaneseq }
  0x87   :  { %2534 = vmatprep.subr.bf16.mxu1 %v3124_v0  ;;  %2538 = vmatprep.mubr.msk.bf16.mxu1 %vm3125_vm0, %v3124_v0  ;;  %v2728_v2 = vld [vmem:[%s3989_s2 + $0x4] ss:$8 sps:$4 sm:$0xff]   ;;  %v2731_v4 = vld [vmem:[%s3989_s2] ss:$8 sps:$4 sm:$0xff]   ;;  %v2732_v5 = vld [vmem:[%s3989_s2 + $0x14] ss:$8 sps:$4 sm:$0xff]  }
  0x88   :  { %221 = vmatprep.mubr.bf16.mxu0 %v3126_v1  ;;  %2726 = vset.pattern.permute.xlu0 %v3126_v1  ;;  %v3331_v6 = vld [vmem:[#allocation9 + $0x8] sm:$0xff]   ;;  %v2736_v8 = vld [vmem:[#allocation4] sm:$0xff]   ;;  %vm185_vm1 = vcmask 261120   ;;  %v151_v10 = vshrl.u32 %v150_v9, 7  ;;  %v148_v11 = vld [vmem:[#allocation7] sm:$0x3] }
  0x89   :  { %2727 = vset.pattern.permute.xlu1 %v3126_v1  ;;  %189 = vmatprep.subr.bf16.mxu0 %v2728_v2  ;;  %v2735_v7 = vld [vmem:[%s3989_s2 + $0x10] ss:$8 sps:$4 sm:$0xff]   ;;  %s3127_s2 = smov 32   ;;  %v296_v30 = vld [vmem:[%s3988_s1] sm:$0x3]  ;;  %vm1796_vm2 = vcmask 523264  }
  0x8a   :  { %2535 = vmatpush3.bf16.msra.mxu1 %v3321_v3  ;;  %190 = vmatpush1.bf16.msra.mxu0 %v2731_v4  ;;  %v156_v12 = vsub.s32 1, %v151_v10  ;;  %v152_v14 = vsub.s32 0, %v151_v10  ;;  %v2399_v48 = vld [vmem:[%s3988_s1 + $0x2] sm:$0x3]  ;;  %s3128_s24 = smov 96   ;;  %vm332_vm3 = vcmask 254976  }
  0x8b   :  { %2536 = vmatprep.subr.bf16.mxu1 %v3124_v0  ;;  %191 = vmatprep.subr.bf16.mxu0 %v2732_v5  ;;  %vm523_vm4 = vcmask 259076   ;;  %vm619_vm5 = vcmask 261126   ;;  %vm427_vm6 = vcmask 257026   ;;  %vm1932_vm12 = vcmask 1024  }
  0x8c   :  { %v157_v13 = vrot.slane %v148_v11, %v156_v12  ;;  %v153_v15 = vrot.slane %v148_v11, %v152_v14 }
  0x8e   :  { %2537 = vmatpush3.bf16.msra.mxu1 %v3331_v6  ;;  %192 = vmatpush1.bf16.msra.mxu0 %v2735_v7 }
  0x8f   :  { %2550 = vmatprep.subr.bf16.mxu1 %v3124_v0  ;;  %2542 = vmatprep.subr.bf16.mxu0 %v3124_v0 }
  0x91   :  { %2539 = vmatmul.mubr.bf16.vlgmr.msra.gmra.mrb[0].mxu1 %v3126_v1  ;;  %2394 = vmatmul.mubr.msk.bf16.vlgmr.msra.gmra.mrb[0].mxu0 %vm185_vm1, %v2736_v8 }
  0x92   :  { %2551 = vmatpush3.bf16.msra.mxu1 %v3321_v3  ;;  %2543 = vmatpush3.bf16.msra.mxu0 %v3321_v3 }
  0x93   :  { %2546 = vmatprep.mubr.msk.bf16.mxu0 %vm3125_vm0, %v3124_v0  ;;  %2544 = vmatprep.subr.bf16.mxu0 %v3124_v0 }
  0x94   :  { %2552 = vmatprep.subr.bf16.mxu1 %v3124_v0  ;;  %2554 = vmatprep.mubr.msk.bf16.mxu1 %vm3125_vm0, %v3124_v0 }
  0x96   :  { %2553 = vmatpush3.bf16.msra.mxu1 %v3331_v6  ;;  %2545 = vmatpush3.bf16.msra.mxu0 %v3331_v6 }
  0x97   :  { %2566 = vmatprep.subr.bf16.mxu1 %v3124_v0  ;;  %2558 = vmatprep.subr.bf16.mxu0 %v3124_v0 }
 0x164   :  { %v289_v16 = vpop.f32.mrb[0].mxu1  ;;  %v223_v17 = vpop.f32.mrb[0].mxu0 }
 0x165   :  { %v2540_v18 = vpop.f32.mrb[1].mxu1  ;;  %v3353_v19 = vadd.f32 %v223_v17, %v153_v15  ;;  %v225_v20 = vpop.f32.mrb[1].mxu0 }
 0x166   :  { %v292_v21 = vpop.f32.mrb[2].mxu1  ;;  %v3355_v22 = vadd.f32 %v225_v20, %v157_v13  ;;  %v227_v23 = vpop.f32.mrb[2].mxu0 }
 0x167   :  { %v2541_v24 = vpop.f32.mrb[3].mxu1  ;;  %v295_v25 = vadd.f32 %v289_v16, %v3353_v19  ;;  %v3358_v26 = vadd.f32 %v227_v23, %v153_v15  ;;  %v229_v27 = vpop.f32.mrb[3].mxu0  ;;  %v2402_v15 = vld [vmem:[%s3988_s1 + $0x4] sm:$0x3] }
 0x168   :  { %v3360_v28 = vadd.f32 %v229_v27, %v157_v13 }
 0x169   :  { %2755 = vtanh.f32 %v295_v25  ;;  %v2397_v31 = vmul.f32 -1.442695, %v295_v25 }
 0x16b   :  { %2757 = vpow2.f32 %v2397_v31 }
 0x173   :  { %v2756_v29 = vpop.eup %2755 }
 0x174   :  { %306 = vrot.lane.b32.xlu0 %v2756_v29, %s3127_s2 }
 0x175   :  { %v2758_v32 = vpop.eup %2757 }
 0x176   :  { %v300_v33 = vadd.f32 1.0, %v2758_v32 }
 0x178   :  { %317 = vperm.xlu0 %2726, %v296_v30   ;;  %2759 = vrcp.f32 %v300_v33 }
 0x182   :  { %v2760_v34 = vpop.eup %2759 }
 0x183   :  { %v304_v37 = vmul.f32 0.0, %v2760_v34 }
 0x1e6   :  { %v307_v35 = vpop.permute.xlu0 %306 }
 0x1e7   :  { %v309_v36 = vmul.f32 %v2760_v34, %v307_v35 }
 0x1e9   :  { %311 = vrot.lane.b32.xlu1 %v309_v36, %s3127_s2 }
 0x1f7   :  { %v318_v39 = vpop.permute.xlu0 %317 }
 0x25b   :  { %v312_v38 = vpop.permute.xlu1 %311 }
 0x25c   :  { %v314_v40 = vadd.f32 %v312_v38, %v304_v37 }
 0x25e   :  { %v320_v41 = vmul.f32 %v318_v39, %v314_v40 }
 0x260   :  { %2761 = vtanh.f32 %v320_v41  ;;  %v395_v63 = vrot.slane %v320_v41, 6 }
 0x26a   :  { %v2762_v42 = vpop.eup %2761 }
 0x26b   :  { %323 = vrot.lane.b32.xlu1 %v2762_v42, %s3127_s2 }
 0x2dd   :  { %v324_v43 = vpop.permute.xlu1 %323 }
 0x2de   :  { %v326_v44 = vmul.f32 %v2760_v34, %v324_v43 }
 0x2e0   :  { %v3368_v45 = vmul.f32 %v326_v44, %v318_v39 }
 0x2e2   :  { %v334_v46 = vpack.c.bf16 %v3368_v45, %v3368_v45 }
 0x2e4   :  { %336 = vrot.lane.b32.xlu1 %v334_v46, %s3118_s22 }
 0x2e8   :  { %410 = vperm.xlu1 %2727, %v2399_v48   ;;  %v2405_v48 = vld [vmem:[%s3988_s1 + $0x6] sm:$0x3] }
 0x356   :  { %v337_v47 = vpop.permute.xlu1 %336 }
 0x357   :  { %2547 = vmatmul.mubr.msk.bf16.vlgmr.msra.gmra.mrb[4].mxu0 %vm185_vm1, %v337_v47 }
 0x358   :  { %2559 = vmatpush3.bf16.msra.mxu0 %v3321_v3  ;;  %2562 = vmatprep.mubr.msk.bf16.mxu0 %vm3125_vm0, %v3124_v0 }
 0x359   :  { %2560 = vmatprep.subr.bf16.mxu0 %v3124_v0 }
 0x35c   :  { %2561 = vmatpush3.bf16.msra.mxu0 %v3331_v6 }
 0x35d   :  { %2574 = vmatprep.subr.bf16.mxu0 %v3124_v0 }
 0x367   :  { %v411_v62 = vpop.permute.xlu1 %410 }
 0x368   :  { %v412_v4 = vrot.slane %v411_v62, 6 }
 0x42a   :  { %v375_v49 = vpop.f32.mrb[4].mxu0 }
 0x42b   :  { %v382_v50 = vrot.slane %v375_v49, 6  ;;  %v2548_v51 = vpop.f32.mrb[5].mxu0 }
 0x42c   :  { %v378_v52 = vpop.f32.mrb[6].mxu0 }
 0x42d   :  { %v384_v53 = vadd.f32 %v382_v50, %v3353_v19  ;;  %v2549_v54 = vpop.f32.mrb[7].mxu0 }
 0x42f   :  { %2763 = vtanh.f32 %v384_v53  ;;  %v2400_v56 = vmul.f32 -1.442695, %v384_v53 }
 0x431   :  { %2765 = vpow2.f32 %v2400_v56 }
 0x439   :  { %v2764_v55 = vpop.eup %2763 }
 0x43a   :  { %399 = vrot.lane.b32.xlu0 %v2764_v55, %s3127_s2 }
 0x43b   :  { %v2766_v57 = vpop.eup %2765 }
 0x43c   :  { %v390_v58 = vadd.f32 1.0, %v2766_v57 }
 0x43e   :  { %2767 = vrcp.f32 %v390_v58 }
 0x448   :  { %v2768_v59 = vpop.eup %2767 }
 0x449   :  { %v397_v2 = vmul.f32 %v2768_v59, %v395_v63 }
 0x4ac   :  { %v400_v60 = vpop.permute.xlu0 %399 }
 0x4ad   :  { %v402_v61 = vmul.f32 %v2768_v59, %v400_v60 }
 0x4af   :  { %404 = vrot.lane.b32.xlu0 %v402_v61, %s3127_s2 }
 0x521   :  { %v405_v5 = vpop.permute.xlu0 %404 }
 0x522   :  { %v407_v7 = vadd.f32 %v405_v5, %v397_v2 }
 0x524   :  { %v414_v8 = vmul.f32 %v412_v4, %v407_v7 }
 0x526   :  { %2769 = vtanh.f32 %v414_v8  ;;  %v491_v34 = vrot.slane %v414_v8, 6 }
 0x530   :  { %v2770_v9 = vpop.eup %2769 }
 0x531   :  { %417 = vrot.lane.b32.xlu1 %v2770_v9, %s3127_s2 }
 0x5a3   :  { %v418_v10 = vpop.permute.xlu1 %417 }
 0x5a4   :  { %v420_v11 = vmul.f32 %v2768_v59, %v418_v10 }
 0x5a6   :  { %v3387_v12 = vmul.f32 %v420_v11, %v412_v4 }
 0x5a8   :  { %v429_v13 = vpack.c.bf16 %v3387_v12, %v3387_v12 }
 0x5aa   :  { %v431_v14 = vrot.slane %v429_v13, 1 }
 0x5ac   :  { %432 = vrot.lane.b32.xlu0 %v431_v14, %s3118_s22 }
 0x5b0   :  { %506 = vperm.xlu0 %2726, %v2402_v15  }
 0x61e   :  { %v433_v16 = vpop.permute.xlu0 %432 }
 0x61f   :  { %2555 = vmatmul.mubr.msk.bf16.vlgmr.msra.gmra.mrb[4].mxu1 %vm185_vm1, %v433_v16  ;;  %v2408_v16 = vld [vmem:[%s3988_s1 + $0x8] sm:$0x3] }
 0x620   :  { %2567 = vmatpush3.bf16.msra.mxu1 %v3321_v3  ;;  %2570 = vmatprep.mubr.msk.bf16.mxu1 %vm3125_vm0, %v3124_v0 }
 0x621   :  { %2568 = vmatprep.subr.bf16.mxu1 %v3124_v0 }
 0x624   :  { %2569 = vmatpush3.bf16.msra.mxu1 %v3331_v6 }
 0x625   :  { %2582 = vmatprep.subr.bf16.mxu1 %v3124_v0 }
 0x62f   :  { %v507_v35 = vpop.permute.xlu0 %506 }
 0x630   :  { %v508_v38 = vrot.slane %v507_v35, 4 }
 0x6f2   :  { %v471_v17 = vpop.f32.mrb[4].mxu1 }
 0x6f3   :  { %v478_v18 = vrot.slane %v471_v17, 4  ;;  %v2556_v20 = vpop.f32.mrb[5].mxu1 }
 0x6f4   :  { %v474_v21 = vpop.f32.mrb[6].mxu1 }
 0x6f5   :  { %v480_v23 = vadd.f32 %v478_v18, %v3353_v19  ;;  %v2557_v24 = vpop.f32.mrb[7].mxu1 }
 0x6f7   :  { %2771 = vtanh.f32 %v480_v23  ;;  %v2403_v27 = vmul.f32 -1.442695, %v480_v23 }
 0x6f9   :  { %2773 = vpow2.f32 %v2403_v27 }
 0x701   :  { %v2772_v25 = vpop.eup %2771 }
 0x702   :  { %495 = vrot.lane.b32.xlu1 %v2772_v25, %s3127_s2 }
 0x703   :  { %v2774_v29 = vpop.eup %2773 }
 0x704   :  { %v486_v30 = vadd.f32 1.0, %v2774_v29 }
 0x706   :  { %2775 = vrcp.f32 %v486_v30 }
 0x710   :  { %v2776_v31 = vpop.eup %2775 }
 0x711   :  { %v493_v36 = vmul.f32 %v2776_v31, %v491_v34 }
 0x774   :  { %v496_v32 = vpop.permute.xlu1 %495 }
 0x775   :  { %v498_v33 = vmul.f32 %v2776_v31, %v496_v32 }
 0x777   :  { %500 = vrot.lane.b32.xlu1 %v498_v33, %s3127_s2 }
 0x7e9   :  { %v501_v37 = vpop.permute.xlu1 %500 }
 0x7ea   :  { %v503_v39 = vadd.f32 %v501_v37, %v493_v36 }
 0x7ec   :  { %v510_v40 = vmul.f32 %v508_v38, %v503_v39 }
 0x7ee   :  { %2777 = vtanh.f32 %v510_v40  ;;  %v587_v63 = vrot.slane %v510_v40, 6 }
 0x7f8   :  { %v2778_v41 = vpop.eup %2777 }
 0x7f9   :  { %513 = vrot.lane.b32.xlu0 %v2778_v41, %s3127_s2 }
 0x86b   :  { %v514_v42 = vpop.permute.xlu0 %513 }
 0x86c   :  { %v516_v43 = vmul.f32 %v2776_v31, %v514_v42 }
 0x86e   :  { %v3406_v44 = vmul.f32 %v516_v43, %v508_v38 }
 0x870   :  { %v525_v46 = vpack.c.bf16 %v3406_v44, %v3406_v44 }
 0x872   :  { %v527_v47 = vrot.slane %v525_v46, 2 }
 0x874   :  { %528 = vrot.lane.b32.xlu1 %v527_v47, %s3118_s22  ;;  %v2411_v47 = vld [vmem:[%s3988_s1 + $0xa] sm:$0x3] }
 0x878   :  { %602 = vperm.xlu1 %2727, %v2405_v48  }
 0x8e6   :  { %v529_v49 = vpop.permute.xlu1 %528 }
 0x8e7   :  { %2563 = vmatmul.mubr.msk.bf16.vlgmr.msra.gmra.mrb[8].mxu0 %vm185_vm1, %v529_v49 }
 0x8e8   :  { %2575 = vmatpush3.bf16.msra.mxu0 %v3321_v3  ;;  %2578 = vmatprep.mubr.msk.bf16.mxu0 %vm3125_vm0, %v3124_v0 }
 0x8e9   :  { %2576 = vmatprep.subr.bf16.mxu0 %v3124_v0 }
 0x8ec   :  { %2577 = vmatpush3.bf16.msra.mxu0 %v3331_v6 }
 0x8ed   :  { %2590 = vmatprep.subr.bf16.mxu0 %v3124_v0 }
 0x8f7   :  { %v603_v2 = vpop.permute.xlu1 %602 }
 0x9ba   :  { %v567_v50 = vpop.f32.mrb[8].mxu0 }
 0x9bb   :  { %v574_v51 = vrot.slane %v567_v50, 2  ;;  %v2564_v52 = vpop.f32.mrb[9].mxu0 }
 0x9bc   :  { %v570_v53 = vpop.f32.mrb[10].mxu0 }
 0x9bd   :  { %v576_v54 = vadd.f32 %v574_v51, %v3353_v19  ;;  %v2565_v55 = vpop.f32.mrb[11].mxu0  ;;  %v604_v19 = vrot.slane %v603_v2, 2 }
 0x9bf   :  { %2779 = vtanh.f32 %v576_v54  ;;  %v2406_v57 = vmul.f32 -1.442695, %v576_v54 }
 0x9c1   :  { %2781 = vpow2.f32 %v2406_v57 }
 0x9c9   :  { %v2780_v56 = vpop.eup %2779 }
 0x9ca   :  { %591 = vrot.lane.b32.xlu0 %v2780_v56, %s3127_s2 }
 0x9cb   :  { %v2782_v58 = vpop.eup %2781 }
 0x9cc   :  { %v582_v59 = vadd.f32 1.0, %v2782_v58 }
 0x9ce   :  { %2783 = vrcp.f32 %v582_v59 }
 0x9d8   :  { %v2784_v60 = vpop.eup %2783 }
 0x9d9   :  { %v589_v4 = vmul.f32 %v2784_v60, %v587_v63 }
 0xa3c   :  { %v592_v61 = vpop.permute.xlu0 %591 }
 0xa3d   :  { %v594_v62 = vmul.f32 %v2784_v60, %v592_v61 }
 0xa3f   :  { %596 = vrot.lane.b32.xlu0 %v594_v62, %s3127_s2 }
 0xab1   :  { %v597_v5 = vpop.permute.xlu0 %596 }
 0xab2   :  { %v599_v7 = vadd.f32 %v597_v5, %v589_v4 }
 0xab4   :  { %v606_v8 = vmul.f32 %v604_v19, %v599_v7 }
 0xab6   :  { %2785 = vtanh.f32 %v606_v8  ;;  %v680_v34 = vrot.slane %v606_v8, 6 }
 0xac0   :  { %v2786_v9 = vpop.eup %2785 }
 0xac1   :  { %609 = vrot.lane.b32.xlu1 %v2786_v9, %s3127_s2 }
 0xb33   :  { %v610_v10 = vpop.permute.xlu1 %609 }
 0xb34   :  { %v612_v11 = vmul.f32 %v2784_v60, %v610_v10 }
 0xb36   :  { %v3425_v13 = vmul.f32 %v612_v11, %v604_v19 }
 0xb38   :  { %v621_v14 = vpack.c.bf16 %v3425_v13, %v3425_v13 }
 0xb3a   :  { %v623_v15 = vrot.slane %v621_v14, 3  ;;  %v3471_v14 = vld [vmem:[#allocation10] sm:$0xff]  }
 0xb3c   :  { %624 = vrot.lane.b32.xlu0 %v623_v15, %s3118_s22 }
 0xb40   :  { %695 = vperm.xlu0 %2726, %v2408_v16   ;;  %v3475_v16 = vld [vmem:[#allocation10 + $0x8] sm:$0xff]  }
 0xbae   :  { %v625_v17 = vpop.permute.xlu0 %624 }
 0xbaf   :  { %2571 = vmatmul.mubr.msk.bf16.vlgmr.msra.gmra.mrb[8].mxu1 %vm185_vm1, %v625_v17 }
 0xbb0   :  { %2583 = vmatpush3.bf16.msra.mxu1 %v3321_v3  ;;  %2586 = vmatprep.mubr.msk.bf16.mxu1 %vm3125_vm0, %v3124_v0 }
 0xbb1   :  { %2584 = vmatprep.subr.bf16.mxu1 %v3124_v0 }
 0xbb4   :  { %2585 = vmatpush3.bf16.msra.mxu1 %v3331_v6 }
 0xbb5   :  { %2598 = vmatprep.subr.bf16.mxu1 %v3124_v0 }
 0xbbf   :  { %v696_v38 = vpop.permute.xlu0 %695 }
 0xc82   :  { %v663_v18 = vpop.f32.mrb[8].mxu1 }
 0xc83   :  { %v669_v20 = vadd.f32 %v663_v18, %v3358_v26  ;;  %v2572_v21 = vpop.f32.mrb[9].mxu1 }
 0xc84   :  { %v666_v23 = vpop.f32.mrb[10].mxu1 }
 0xc85   :  { %2787 = vtanh.f32 %v669_v20  ;;  %v2573_v24 = vpop.f32.mrb[11].mxu1  ;;  %v2409_v27 = vmul.f32 -1.442695, %v669_v20 }
 0xc87   :  { %2789 = vpow2.f32 %v2409_v27 }
 0xc8f   :  { %v2788_v25 = vpop.eup %2787 }
 0xc90   :  { %684 = vrot.lane.b32.xlu1 %v2788_v25, %s3127_s2 }
 0xc91   :  { %v2790_v29 = vpop.eup %2789 }
 0xc92   :  { %v675_v30 = vadd.f32 1.0, %v2790_v29 }
 0xc94   :  { %2791 = vrcp.f32 %v675_v30 }
 0xc9e   :  { %v2792_v31 = vpop.eup %2791 }
 0xc9f   :  { %v682_v35 = vmul.f32 %v2792_v31, %v680_v34  ;;  %v2421_v34 = vld [vmem:[%s3988_s1 + $0xe] sm:$0x3] }
 0xd02   :  { %v685_v32 = vpop.permute.xlu1 %684 }
 0xd03   :  { %v687_v33 = vmul.f32 %v2792_v31, %v685_v32 }
 0xd05   :  { %689 = vrot.lane.b32.xlu1 %v687_v33, %s3127_s2  ;;  %v2414_v33 = vld [vmem:[%s3988_s1 + $0xc] sm:$0x3] }
 0xd77   :  { %v690_v36 = vpop.permute.xlu1 %689 }
 0xd78   :  { %v692_v37 = vadd.f32 %v690_v36, %v682_v35 }
 0xd7a   :  { %v698_v39 = vmul.f32 %v696_v38, %v692_v37 }
 0xd7c   :  { %2793 = vtanh.f32 %v698_v39  ;;  %v773_v60 = vrot.slane %v698_v39, 6 }
 0xd86   :  { %v2794_v40 = vpop.eup %2793 }
 0xd87   :  { %701 = vrot.lane.b32.xlu0 %v2794_v40, %s3127_s2 }
 0xdf9   :  { %v702_v41 = vpop.permute.xlu0 %701 }
 0xdfa   :  { %v704_v42 = vmul.f32 %v2792_v31, %v702_v41 }
 0xdfc   :  { %v3444_v43 = vmul.f32 %v704_v42, %v696_v38 }
 0xdfe   :  { %v712_v46 = vpack.c.bf16 %v3444_v43, %v3444_v43 }
 0xe00   :  { %714 = vrot.lane.b32.xlu1 %v712_v46, %s3118_s22 }
 0xe04   :  { %788 = vperm.xlu1 %2727, %v2411_v47  }
 0xe72   :  { %v715_v48 = vpop.permute.xlu1 %714 }
 0xe73   :  { %2579 = vmatmul.mubr.msk.bf16.vlgmr.msra.gmra.mrb[12].mxu0 %vm185_vm1, %v715_v48 }
 0xe74   :  { %2591 = vmatpush3.bf16.msra.mxu0 %v3321_v3  ;;  %2594 = vmatprep.mubr.msk.bf16.mxu0 %vm3125_vm0, %v3124_v0 }
 0xe75   :  { %2592 = vmatprep.subr.bf16.mxu0 %v3124_v0 }
 0xe78   :  { %2593 = vmatpush3.bf16.msra.mxu0 %v3331_v6 }
 0xe79   :  { %2606 = vmatprep.subr.bf16.mxu0 %v3124_v0 }
 0xe83   :  { %v789_v61 = vpop.permute.xlu1 %788 }
 0xe84   :  { %v790_v2 = vrot.slane %v789_v61, 6 }
 0xf46   :  { %v753_v49 = vpop.f32.mrb[12].mxu0 }
 0xf47   :  { %v760_v50 = vrot.slane %v753_v49, 6  ;;  %v2580_v51 = vpop.f32.mrb[13].mxu0 }
 0xf48   :  { %v756_v52 = vpop.f32.mrb[14].mxu0 }
 0xf49   :  { %v762_v53 = vadd.f32 %v760_v50, %v3358_v26  ;;  %v2581_v54 = vpop.f32.mrb[15].mxu0 }
 0xf4b   :  { %2795 = vtanh.f32 %v762_v53  ;;  %v2412_v3 = vmul.f32 -1.442695, %v762_v53 }
 0xf4d   :  { %2797 = vpow2.f32 %v2412_v3 }
 0xf55   :  { %v2796_v55 = vpop.eup %2795 }
 0xf56   :  { %777 = vrot.lane.b32.xlu0 %v2796_v55, %s3127_s2 }
 0xf57   :  { %v2798_v56 = vpop.eup %2797 }
 0xf58   :  { %v768_v57 = vadd.f32 1.0, %v2798_v56 }
 0xf5a   :  { %2799 = vrcp.f32 %v768_v57 }
 0xf64   :  { %v2800_v58 = vpop.eup %2799 }
 0xf65   :  { %v775_v62 = vmul.f32 %v2800_v58, %v773_v60 }
 0xfc8   :  { %v778_v6 = vpop.permute.xlu0 %777 }
 0xfc9   :  { %v780_v59 = vmul.f32 %v2800_v58, %v778_v6 }
 0xfcb   :  { %782 = vrot.lane.b32.xlu0 %v780_v59, %s3127_s2 }
0x103d   :  { %v783_v63 = vpop.permute.xlu0 %782 }
0x103e   :  { %v785_v4 = vadd.f32 %v783_v63, %v775_v62 }
0x1040   :  { %v3462_v5 = vmul.f32 %v790_v2, %v785_v4 }
0x1042   :  { %2801 = vtanh.f32 %v3462_v5  ;;  %v868_v51 = vrot.slane %v3462_v5, 6 }
0x104c   :  { %v2802_v19 = vpop.eup %2801 }
0x104d   :  { %795 = vrot.lane.b32.xlu1 %v2802_v19, %s3127_s2 }
0x10bf   :  { %v796_v7 = vpop.permute.xlu1 %795 }
0x10c0   :  { %v798_v8 = vmul.f32 %v2800_v58, %v796_v7 }
0x10c2   :  { %v3466_v9 = vmul.f32 %v798_v8, %v790_v2 }
0x10c4   :  { %v806_v10 = vpack.c.bf16 %v3466_v9, %v3466_v9 }
0x10c6   :  { %v808_v11 = vrot.slane %v806_v10, 1 }
0x10c8   :  { %809 = vrot.lane.b32.xlu0 %v808_v11, %s3118_s22 }
0x113a   :  { %v810_v15 = vpop.permute.xlu0 %809 }
0x113b   :  { %2587 = vmatmul.mubr.msk.bf16.vlgmr.msra.gmra.mrb[12].mxu1 %vm185_vm1, %v810_v15 }
0x113c   :  { %2599 = vmatpush3.bf16.msra.mxu1 %v3471_v14  ;;  %2602 = vmatprep.mubr.msk.bf16.mxu1 %vm3125_vm0, %v3124_v0 }
0x113d   :  { %2600 = vmatprep.subr.bf16.mxu1 %v3124_v0 }
0x1140   :  { %2601 = vmatpush3.bf16.msra.mxu1 %v3475_v16 }
0x1141   :  { %2614 = vmatprep.subr.bf16.mxu1 %v3124_v0 }
0x1143   :  { %2603 = vmatmul.mubr.bf16.vlgmr.msra.gmra.mrb[16].mxu1 %v3126_v1 }
0x1144   :  { %2615 = vmatpush3.bf16.msra.mxu1 %v3471_v14  ;;  %2618 = vmatprep.mubr.msk.bf16.mxu1 %vm3125_vm0, %v3124_v0 }
0x1145   :  { %2616 = vmatprep.subr.bf16.mxu1 %v3124_v0 }
0x1148   :  { %2617 = vmatpush3.bf16.msra.mxu1 %v3475_v16 }
0x1149   :  { %2630 = vmatprep.subr.bf16.mxu1 %v3124_v0 }
0x120e   :  { %v848_v17 = vpop.f32.mrb[12].mxu1 }
0x120f   :  { %v855_v18 = vrot.slane %v848_v17, 4  ;;  %v2588_v20 = vpop.f32.mrb[13].mxu1 }
0x1210   :  { %v851_v21 = vpop.f32.mrb[14].mxu1 }
0x1211   :  { %v857_v23 = vadd.f32 %v855_v18, %v3358_v26  ;;  %v2589_v24 = vpop.f32.mrb[15].mxu1  ;;  %v2424_v18 = vld [vmem:[%s3988_s1 + $0xc] sm:$0x3] }
0x1213   :  { %2803 = vtanh.f32 %v857_v23  ;;  %v2415_v36 = vmul.f32 -1.442695, %v857_v23 }
0x1216   :  { %v1042_v1 = vpop.f32.mrb[16].mxu1 }
0x1217   :  { %v1049_v25 = vrot.slane %v1042_v1, 2  ;;  %v2604_v27 = vpop.f32.mrb[17].mxu1 }
0x1218   :  { %v1045_v29 = vpop.f32.mrb[18].mxu1 }
0x1219   :  { %v1051_v30 = vadd.f32 %v1049_v25, %v3360_v28  ;;  %v2605_v31 = vpop.f32.mrb[19].mxu1 }
0x121b   :  { %2805 = vtanh.f32 %v1051_v30  ;;  %v2422_v37 = vmul.f32 -1.442695, %v1051_v30 }
0x121c   :  { %2807 = vpow2.f32 %v2415_v36 }
0x121d   :  { %v2804_v32 = vpop.eup %2803  ;;  %2809 = vpow2.f32 %v2422_v37 }
0x121e   :  { %872 = vrot.lane.b32.xlu1 %v2804_v32, %s3127_s2 }
0x1222   :  { %883 = vperm.xlu1 %2727, %v2414_v33  }
0x1225   :  { %v2806_v35 = vpop.eup %2805 }
0x1226   :  { %1073 = vperm.xlu1 %2727, %v2421_v34   ;;  %1062 = vrot.lane.b32.xlu0 %v2806_v35, %s3127_s2  ;;  %v2808_v38 = vpop.eup %2807 }
0x1227   :  { %v863_v39 = vadd.f32 1.0, %v2808_v38  ;;  %v2810_v40 = vpop.eup %2809 }
0x1228   :  { %v1056_v41 = vadd.f32 1.0, %v2810_v40 }
0x1229   :  { %2811 = vrcp.f32 %v863_v39 }
0x122a   :  { %2813 = vrcp.f32 %v1056_v41 }
0x1233   :  { %v2812_v42 = vpop.eup %2811 }
0x1234   :  { %v2814_v48 = vpop.eup %2813  ;;  %v870_v53 = vmul.f32 %v2812_v42, %v868_v51 }
0x1235   :  { %v1060_v58 = vmul.f32 0.0, %v2814_v48 }
0x1290   :  { %v873_v46 = vpop.permute.xlu1 %872 }
0x1291   :  { %v875_v47 = vmul.f32 %v2812_v42, %v873_v46 }
0x1293   :  { %877 = vrot.lane.b32.xlu0 %v875_v47, %s3127_s2 }
0x1298   :  { %v1063_v49 = vpop.permute.xlu0 %1062 }
0x1299   :  { %v1065_v50 = vmul.f32 %v2814_v48, %v1063_v49 }
0x129b   :  { %1067 = vrot.lane.b32.xlu0 %v1065_v50, %s3127_s2 }
0x12a1   :  { %v884_v52 = vpop.permute.xlu1 %883 }
0x12a2   :  { %v885_v55 = vrot.slane %v884_v52, 4 }
0x12a5   :  { %v1074_v57 = vpop.permute.xlu1 %1073 }
0x12a6   :  { %v1075_v59 = vrot.slane %v1074_v57, 2  ;;  %v2427_v57 = vld [vmem:[%s3988_s1 + $0xa] sm:$0x3] }
0x1305   :  { %v878_v54 = vpop.permute.xlu0 %877 }
0x1306   :  { %v880_v3 = vadd.f32 %v878_v54, %v870_v53 }
0x1308   :  { %v3502_v56 = vmul.f32 %v885_v55, %v880_v3 }
0x130a   :  { %2815 = vtanh.f32 %v3502_v56 }
0x130d   :  { %v1068_v6 = vpop.permute.xlu0 %1067 }
0x130e   :  { %v1070_v60 = vadd.f32 %v1068_v6, %v1060_v58 }
0x1310   :  { %v1077_v61 = vmul.f32 %v1075_v59, %v1070_v60 }
0x1312   :  { %2817 = vtanh.f32 %v1077_v61  ;;  %v1152_v41 = vrot.slane %v1077_v61, 2 }
0x1314   :  { %v2816_v62 = vpop.eup %2815 }
0x1315   :  { %890 = vrot.lane.b32.xlu1 %v2816_v62, %s3127_s2 }
0x131c   :  { %v2818_v63 = vpop.eup %2817 }
0x131d   :  { %1080 = vrot.lane.b32.xlu0 %v2818_v63, %s3127_s2 }
0x1387   :  { %v891_v2 = vpop.permute.xlu1 %890 }
0x1388   :  { %v893_v4 = vmul.f32 %v2812_v42, %v891_v2 }
0x138a   :  { %v3507_v5 = vmul.f32 %v893_v4, %v885_v55 }
0x138c   :  { %v901_v19 = vpack.c.bf16 %v3507_v5, %v3507_v5 }
0x138e   :  { %v903_v7 = vrot.slane %v901_v19, 2 }
0x138f   :  { %v1081_v8 = vpop.permute.xlu0 %1080 }
0x1390   :  { %v1083_v10 = vmul.f32 %v2814_v48, %v1081_v8  ;;  %904 = vrot.lane.b32.xlu1 %v903_v7, %s3118_s22 }
0x1392   :  { %v3512_v11 = vmul.f32 %v1083_v10, %v1075_v59 }
0x1394   :  { %v1091_v15 = vpack.c.bf16 %v3512_v11, %v3512_v11 }
0x1396   :  { %v1093_v17 = vrot.slane %v1091_v15, 3 }
0x1398   :  { %1094 = vrot.lane.b32.xlu0 %v1093_v17, %s3118_s22 }
0x139c   :  { %1167 = vperm.xlu0 %2726, %v2424_v18  }
0x1402   :  { %v905_v20 = vpop.permute.xlu1 %904 }
0x1403   :  { %2595 = vmatmul.mubr.msk.bf16.vlgmr.msra.gmra.mrb[16].mxu0 %vm185_vm1, %v905_v20 }
0x1404   :  { %2607 = vmatpush3.bf16.msra.mxu0 %v3471_v14  ;;  %2610 = vmatprep.mubr.msk.bf16.mxu0 %vm3125_vm0, %v3124_v0 }
0x1405   :  { %2608 = vmatprep.subr.bf16.mxu0 %v3124_v0 }
0x1408   :  { %2609 = vmatpush3.bf16.msra.mxu0 %v3475_v16 }
0x1409   :  { %2622 = vmatprep.subr.bf16.mxu0 %v3124_v0 }
0x140a   :  { %v1095_v21 = vpop.permute.xlu0 %1094 }
0x140b   :  { %2611 = vmatmul.mubr.msk.bf16.vlgmr.msra.gmra.mrb[20].mxu0 %vm185_vm1, %v1095_v21 }
0x140c   :  { %2623 = vmatpush3.bf16.msra.mxu0 %v3471_v14  ;;  %2626 = vmatprep.mubr.msk.bf16.mxu0 %vm3125_vm0, %v3124_v0 }
0x140d   :  { %2624 = vmatprep.subr.bf16.mxu0 %v3124_v0 }
0x1410   :  { %2625 = vmatpush3.bf16.msra.mxu0 %v3475_v16 }
0x1411   :  { %2638 = vmatprep.subr.bf16.mxu0 %v3124_v0 }
0x141b   :  { %v1168_v42 = vpop.permute.xlu0 %1167 }
0x141c   :  { %v1169_v48 = vrot.slane %v1168_v42, 4 }
0x14d6   :  { %v3534_v23 = vpop.f32.mrb[16].mxu0 }
0x14d7   :  { %v2596_v24 = vpop.f32.mrb[17].mxu0 }
0x14d8   :  { %v946_v1 = vpop.f32.mrb[18].mxu0 }
0x14d9   :  { %v2597_v25 = vpop.f32.mrb[19].mxu0 }
0x14de   :  { %v1133_v27 = vpop.f32.mrb[20].mxu0 }
0x14df   :  { %v1140_v29 = vrot.slane %v1133_v27, 4  ;;  %v2612_v30 = vpop.f32.mrb[21].mxu0 }
0x14e0   :  { %v1136_v31 = vpop.f32.mrb[22].mxu0 }
0x14e1   :  { %v1142_v32 = vadd.f32 %v1140_v29, %v3360_v28  ;;  %v2613_v33 = vpop.f32.mrb[23].mxu0 }
0x14e3   :  { %2819 = vtanh.f32 %v1142_v32  ;;  %v2425_v35 = vmul.f32 -1.442695, %v1142_v32 }
0x14e5   :  { %2821 = vpow2.f32 %v2425_v35 }
0x14ed   :  { %v2820_v34 = vpop.eup %2819 }
0x14ee   :  { %1156 = vrot.lane.b32.xlu1 %v2820_v34, %s3127_s2  ;;  %v2430_v34 = vld [vmem:[%s3988_s1 + $0x8] sm:$0x3] }
0x14ef   :  { %v2822_v36 = vpop.eup %2821 }
0x14f0   :  { %v1147_v37 = vadd.f32 1.0, %v2822_v36 }
0x14f2   :  { %2823 = vrcp.f32 %v1147_v37 }
0x14fc   :  { %v2824_v38 = vpop.eup %2823 }
0x14fd   :  { %v1154_v46 = vmul.f32 %v2824_v38, %v1152_v41 }
0x1560   :  { %v1157_v39 = vpop.permute.xlu1 %1156 }
0x1561   :  { %v1159_v40 = vmul.f32 %v2824_v38, %v1157_v39 }
0x1563   :  { %1161 = vrot.lane.b32.xlu1 %v1159_v40, %s3127_s2 }
0x15d5   :  { %v1162_v47 = vpop.permute.xlu1 %1161 }
0x15d6   :  { %v1164_v49 = vadd.f32 %v1162_v47, %v1154_v46 }
0x15d8   :  { %v1171_v50 = vmul.f32 %v1169_v48, %v1164_v49 }
0x15da   :  { %2825 = vtanh.f32 %v1171_v50  ;;  %v1246_v17 = vrot.slane %v1171_v50, 2 }
0x15e4   :  { %v2826_v51 = vpop.eup %2825 }
0x15e5   :  { %1174 = vrot.lane.b32.xlu0 %v2826_v51, %s3127_s2 }
0x1657   :  { %v1175_v52 = vpop.permute.xlu0 %1174 }
0x1658   :  { %v1177_v53 = vmul.f32 %v2824_v38, %v1175_v52 }
0x165a   :  { %v3540_v54 = vmul.f32 %v1177_v53, %v1169_v48 }
0x165c   :  { %v1185_v55 = vpack.c.bf16 %v3540_v54, %v3540_v54 }
0x165e   :  { %v1187_v3 = vrot.slane %v1185_v55, 2 }
0x1660   :  { %1188 = vrot.lane.b32.xlu1 %v1187_v3, %s3118_s22 }
0x1664   :  { %1261 = vperm.xlu1 %2727, %v2427_v57  }
0x16d2   :  { %v1189_v58 = vpop.permute.xlu1 %1188 }
0x16d3   :  { %2619 = vmatmul.mubr.msk.bf16.vlgmr.msra.gmra.mrb[20].mxu1 %vm185_vm1, %v1189_v58 }
0x16d4   :  { %2631 = vmatpush3.bf16.msra.mxu1 %v3471_v14  ;;  %2634 = vmatprep.mubr.msk.bf16.mxu1 %vm3125_vm0, %v3124_v0 }
0x16d5   :  { %2632 = vmatprep.subr.bf16.mxu1 %v3124_v0 }
0x16d8   :  { %2633 = vmatpush3.bf16.msra.mxu1 %v3475_v16 }
0x16d9   :  { %2646 = vmatprep.subr.bf16.mxu1 %v3124_v0 }
0x16e3   :  { %v1262_v18 = vpop.permute.xlu1 %1261 }
0x16e4   :  { %v1263_v24 = vrot.slane %v1262_v18, 6 }
0x17a6   :  { %v1227_v6 = vpop.f32.mrb[20].mxu1 }
0x17a7   :  { %v1234_v59 = vrot.slane %v1227_v6, 6  ;;  %v2620_v60 = vpop.f32.mrb[21].mxu1 }
0x17a8   :  { %v1230_v61 = vpop.f32.mrb[22].mxu1 }
0x17a9   :  { %v1236_v62 = vadd.f32 %v1234_v59, %v3360_v28  ;;  %v2621_v63 = vpop.f32.mrb[23].mxu1  ;;  %v2433_v61 = vld [vmem:[%s3988_s1 + $0x6] sm:$0x3] }
0x17ab   :  { %2827 = vtanh.f32 %v1236_v62  ;;  %v2428_v4 = vmul.f32 -1.442695, %v1236_v62 }
0x17ad   :  { %2829 = vpow2.f32 %v2428_v4 }
0x17b5   :  { %v2828_v2 = vpop.eup %2827 }
0x17b6   :  { %1250 = vrot.lane.b32.xlu0 %v2828_v2, %s3127_s2 }
0x17b7   :  { %v2830_v19 = vpop.eup %2829 }
0x17b8   :  { %v1241_v7 = vadd.f32 1.0, %v2830_v19 }
0x17ba   :  { %2831 = vrcp.f32 %v1241_v7 }
0x17c4   :  { %v2832_v8 = vpop.eup %2831 }
0x17c5   :  { %v1248_v20 = vmul.f32 %v2832_v8, %v1246_v17 }
0x1828   :  { %v1251_v10 = vpop.permute.xlu0 %1250 }
0x1829   :  { %v1253_v15 = vmul.f32 %v2832_v8, %v1251_v10 }
0x182b   :  { %1255 = vrot.lane.b32.xlu0 %v1253_v15, %s3127_s2 }
0x189d   :  { %v1256_v21 = vpop.permute.xlu0 %1255 }
0x189e   :  { %v1258_v1 = vadd.f32 %v1256_v21, %v1248_v20 }
0x18a0   :  { %v1265_v25 = vmul.f32 %v1263_v24, %v1258_v1 }
0x18a2   :  { %2833 = vtanh.f32 %v1265_v25  ;;  %v1337_v51 = vrot.slane %v1265_v25, 2 }
0x18ac   :  { %v2834_v27 = vpop.eup %2833 }
0x18ad   :  { %1268 = vrot.lane.b32.xlu1 %v2834_v27, %s3127_s2 }
0x191f   :  { %v1269_v29 = vpop.permute.xlu1 %1268 }
0x1920   :  { %v1271_v30 = vmul.f32 %v2832_v8, %v1269_v29 }
0x1922   :  { %v3559_v31 = vmul.f32 %v1271_v30, %v1263_v24 }
0x1924   :  { %v1279_v32 = vpack.c.bf16 %v3559_v31, %v3559_v31 }
0x1926   :  { %v1281_v33 = vrot.slane %v1279_v32, 1 }
0x1928   :  { %1282 = vrot.lane.b32.xlu0 %v1281_v33, %s3118_s22 }
0x192c   :  { %1352 = vperm.xlu0 %2726, %v2430_v34  }
0x199a   :  { %v1283_v35 = vpop.permute.xlu0 %1282 }
0x199b   :  { %2627 = vmatmul.mubr.msk.bf16.vlgmr.msra.gmra.mrb[24].mxu0 %vm185_vm1, %v1283_v35 }
0x199c   :  { %2639 = vmatpush3.bf16.msra.mxu0 %v3471_v14  ;;  %2642 = vmatprep.mubr.msk.bf16.mxu0 %vm3125_vm0, %v3124_v0 }
0x199d   :  { %2640 = vmatprep.subr.bf16.mxu0 %v3124_v0 }
0x19a0   :  { %2641 = vmatpush3.bf16.msra.mxu0 %v3475_v16 }
0x19a1   :  { %2654 = vmatprep.subr.bf16.mxu0 %v3124_v0 }
0x19ab   :  { %v1353_v55 = vpop.permute.xlu0 %1352 }
0x1a6e   :  { %v1321_v36 = vpop.f32.mrb[24].mxu0 }
0x1a6f   :  { %v1327_v37 = vadd.f32 %v1321_v36, %v3360_v28  ;;  %v2628_v38 = vpop.f32.mrb[25].mxu0 }
0x1a70   :  { %v1324_v39 = vpop.f32.mrb[26].mxu0 }
0x1a71   :  { %2835 = vtanh.f32 %v1327_v37  ;;  %v2629_v40 = vpop.f32.mrb[27].mxu0  ;;  %v2431_v42 = vmul.f32 -1.442695, %v1327_v37 }
0x1a72   :  { %v2436_v40 = vld [vmem:[%s3988_s1 + $0x4] sm:$0x3] }
0x1a73   :  { %2837 = vpow2.f32 %v2431_v42 }
0x1a7b   :  { %v2836_v41 = vpop.eup %2835 }
0x1a7c   :  { %1341 = vrot.lane.b32.xlu1 %v2836_v41, %s3127_s2 }
0x1a7d   :  { %v2838_v46 = vpop.eup %2837 }
0x1a7e   :  { %v1332_v47 = vadd.f32 1.0, %v2838_v46 }
0x1a80   :  { %2839 = vrcp.f32 %v1332_v47 }
0x1a8a   :  { %v2840_v48 = vpop.eup %2839 }
0x1a8b   :  { %v1339_v52 = vmul.f32 %v2840_v48, %v1337_v51 }
0x1aee   :  { %v1342_v49 = vpop.permute.xlu1 %1341 }
0x1aef   :  { %v1344_v50 = vmul.f32 %v2840_v48, %v1342_v49 }
0x1af1   :  { %1346 = vrot.lane.b32.xlu1 %v1344_v50, %s3127_s2 }
0x1b63   :  { %v1347_v28 = vpop.permute.xlu1 %1346 }
0x1b64   :  { %v1349_v53 = vadd.f32 %v1347_v28, %v1339_v52 }
0x1b66   :  { %v1355_v3 = vmul.f32 %v1353_v55, %v1349_v53 }
0x1b68   :  { %2841 = vtanh.f32 %v1355_v3  ;;  %v1429_v1 = vrot.slane %v1355_v3, 2 }
0x1b72   :  { %v2842_v57 = vpop.eup %2841 }
0x1b73   :  { %1358 = vrot.lane.b32.xlu0 %v2842_v57, %s3127_s2 }
0x1be5   :  { %v1359_v58 = vpop.permute.xlu0 %1358 }
0x1be6   :  { %v1361_v6 = vmul.f32 %v2840_v48, %v1359_v58 }
0x1be8   :  { %v3578_v59 = vmul.f32 %v1361_v6, %v1353_v55 }
0x1bea   :  { %v1369_v60 = vpack.c.bf16 %v3578_v59, %v3578_v59 }
0x1bec   :  { %1371 = vrot.lane.b32.xlu1 %v1369_v60, %s3118_s22 }
0x1bf0   :  { %1444 = vperm.xlu1 %2727, %v2433_v61  }
0x1c5e   :  { %v1372_v62 = vpop.permute.xlu1 %1371 }
0x1c5f   :  { %2635 = vmatmul.mubr.msk.bf16.vlgmr.msra.gmra.mrb[24].mxu1 %vm185_vm1, %v1372_v62 }
0x1c60   :  { %2647 = vmatpush3.bf16.msra.mxu1 %v3471_v14  ;;  %2650 = vmatprep.mubr.msk.bf16.mxu1 %vm3125_vm0, %v3124_v0 }
0x1c61   :  { %2648 = vmatprep.subr.bf16.mxu1 %v3124_v0 }
0x1c64   :  { %2649 = vmatpush3.bf16.msra.mxu1 %v3475_v16 }
0x1c65   :  { %2662 = vmatprep.subr.bf16.mxu1 %v3124_v0 }
0x1c6f   :  { %v1445_v25 = vpop.permute.xlu1 %1444 }
0x1c70   :  { %v1446_v30 = vrot.slane %v1445_v25, 2 }
0x1d32   :  { %v1410_v63 = vpop.f32.mrb[24].mxu1 }
0x1d33   :  { %v1417_v2 = vrot.slane %v1410_v63, 2  ;;  %v2636_v4 = vpop.f32.mrb[25].mxu1 }
0x1d34   :  { %v1413_v19 = vpop.f32.mrb[26].mxu1 }
0x1d35   :  { %v1419_v7 = vadd.f32 %v1417_v2, %v3355_v22  ;;  %v2637_v8 = vpop.f32.mrb[27].mxu1 }
0x1d37   :  { %2843 = vtanh.f32 %v1419_v7  ;;  %v2434_v15 = vmul.f32 -1.442695, %v1419_v7 }
0x1d39   :  { %2845 = vpow2.f32 %v2434_v15 }
0x1d41   :  { %v2844_v10 = vpop.eup %2843 }
0x1d42   :  { %1433 = vrot.lane.b32.xlu0 %v2844_v10, %s3127_s2  ;;  %v2439_v10 = vld [vmem:[%s3988_s1 + $0x2] sm:$0x3] }
0x1d43   :  { %v2846_v17 = vpop.eup %2845 }
0x1d44   :  { %v1424_v18 = vadd.f32 1.0, %v2846_v17 }
0x1d46   :  { %2847 = vrcp.f32 %v1424_v18 }
0x1d50   :  { %v2848_v20 = vpop.eup %2847 }
0x1d51   :  { %v1431_v27 = vmul.f32 %v2848_v20, %v1429_v1 }
0x1db4   :  { %v1434_v21 = vpop.permute.xlu0 %1433 }
0x1db5   :  { %v1436_v24 = vmul.f32 %v2848_v20, %v1434_v21 }
0x1db7   :  { %1438 = vrot.lane.b32.xlu0 %v1436_v24, %s3127_s2 }
0x1e29   :  { %v1439_v29 = vpop.permute.xlu0 %1438 }
0x1e2a   :  { %v1441_v32 = vadd.f32 %v1439_v29, %v1431_v27 }
0x1e2c   :  { %v1448_v33 = vmul.f32 %v1446_v30, %v1441_v32 }
0x1e2e   :  { %2849 = vtanh.f32 %v1448_v33  ;;  %v1523_v3 = vrot.slane %v1448_v33, 2 }
0x1e38   :  { %v2850_v34 = vpop.eup %2849 }
0x1e39   :  { %1451 = vrot.lane.b32.xlu1 %v2850_v34, %s3127_s2 }
0x1eab   :  { %v1452_v35 = vpop.permute.xlu1 %1451 }
0x1eac   :  { %v1454_v36 = vmul.f32 %v2848_v20, %v1452_v35  ;;  %v2739_v35 = vld [vmem:[%s3994_s7] sm:$0xff]  }
0x1eae   :  { %v3597_v37 = vmul.f32 %v1454_v36, %v1446_v30  ;;  %v2740_v36 = vld [vmem:[%s3994_s7 + $0x8] sm:$0xff]  }
0x1eb0   :  { %v1462_v38 = vpack.c.bf16 %v3597_v37, %v3597_v37 }
0x1eb2   :  { %v1464_v39 = vrot.slane %v1462_v38, 3  ;;  %v2741_v38 = vld [vmem:[%s3994_s7 + $0x10] sm:$0xff]  }
0x1eb4   :  { %1465 = vrot.lane.b32.xlu0 %v1464_v39, %s3118_s22  ;;  %v2742_v39 = vld [vmem:[%s3994_s7 + $0x18] sm:$0xff]  }
0x1eb8   :  { %1538 = vperm.xlu0 %2726, %v2436_v40   ;;  %v1763_v40 = vld [vmem:[#allocation12] sm:$0x1] }
0x1f26   :  { %v1466_v41 = vpop.permute.xlu0 %1465 }
0x1f27   :  { %2643 = vmatmul.mubr.msk.bf16.vlgmr.msra.gmra.mrb[28].mxu0 %vm185_vm1, %v1466_v41 }
0x1f28   :  { %2655 = vmatpush3.bf16.msra.mxu0 %v3471_v14  ;;  %2658 = vmatprep.mubr.msk.bf16.mxu0 %vm3125_vm0, %v3124_v0 }
0x1f29   :  { %2656 = vmatprep.subr.bf16.mxu0 %v3124_v0 }
0x1f2c   :  { %2657 = vmatpush3.bf16.msra.mxu0 %v3475_v16 }
0x1f2d   :  { %2674 = vmatprep.subr.bf16.mxu0 %v3124_v0 }
0x1f37   :  { %v1539_v57 = vpop.permute.xlu0 %1538 }
0x1f38   :  { %v1540_v60 = vrot.slane %v1539_v57, 4 }
0x1ffa   :  { %v1504_v42 = vpop.f32.mrb[28].mxu0 }
0x1ffb   :  { %v1511_v46 = vrot.slane %v1504_v42, 4  ;;  %v2644_v47 = vpop.f32.mrb[29].mxu0 }
0x1ffc   :  { %v1507_v48 = vpop.f32.mrb[30].mxu0 }
0x1ffd   :  { %v1513_v49 = vadd.f32 %v1511_v46, %v3355_v22  ;;  %v2645_v50 = vpop.f32.mrb[31].mxu0  ;;  %v950_v48 = vrot.slane %v3534_v23, 2 }
0x1fff   :  { %2851 = vtanh.f32 %v1513_v49  ;;  %v2437_v14 = vmul.f32 -1.442695, %v1513_v49 }
0x2001   :  { %2853 = vpow2.f32 %v2437_v14  ;;  %v952_v14 = vadd.f32 %v950_v48, %v3358_v26 }
0x2003   :  { %v2418_v23 = vmul.f32 -1.442695, %v952_v14 }
0x2009   :  { %v2852_v51 = vpop.eup %2851 }
0x200a   :  { %1527 = vrot.lane.b32.xlu1 %v2852_v51, %s3127_s2 }
0x200b   :  { %v2854_v52 = vpop.eup %2853 }
0x200c   :  { %v1518_v28 = vadd.f32 1.0, %v2854_v52 }
0x200e   :  { %2855 = vrcp.f32 %v1518_v28 }
0x2018   :  { %v2856_v53 = vpop.eup %2855 }
0x2019   :  { %v1525_v58 = vmul.f32 %v2856_v53, %v1523_v3 }
0x207c   :  { %v1528_v16 = vpop.permute.xlu1 %1527 }
0x207d   :  { %v1530_v55 = vmul.f32 %v2856_v53, %v1528_v16 }
0x207f   :  { %1532 = vrot.lane.b32.xlu1 %v1530_v55, %s3127_s2 }
0x20f1   :  { %v1533_v6 = vpop.permute.xlu1 %1532 }
0x20f2   :  { %v1535_v61 = vadd.f32 %v1533_v6, %v1525_v58 }
0x20f4   :  { %v1542_v62 = vmul.f32 %v1540_v60, %v1535_v61 }
0x20f6   :  { %2857 = vtanh.f32 %v1542_v62  ;;  %v1617_v41 = vrot.slane %v1542_v62, 2 }
0x2100   :  { %v2858_v63 = vpop.eup %2857 }
0x2101   :  { %1545 = vrot.lane.b32.xlu0 %v2858_v63, %s3127_s2 }
0x2173   :  { %v1546_v2 = vpop.permute.xlu0 %1545 }
0x2174   :  { %v1548_v4 = vmul.f32 %v2856_v53, %v1546_v2  ;;  %v2417_v53 = vld [vmem:[%s3988_s1 + $0xe] sm:$0x3] }
0x2176   :  { %v3616_v19 = vmul.f32 %v1548_v4, %v1540_v60 }
0x2178   :  { %v1556_v7 = vpack.c.bf16 %v3616_v19, %v3616_v19 }
0x217a   :  { %v1558_v8 = vrot.slane %v1556_v7, 2 }
0x217c   :  { %1559 = vrot.lane.b32.xlu1 %v1558_v8, %s3118_s22 }
0x2180   :  { %1632 = vperm.xlu1 %2727, %v2439_v10   ;;  %v963_v10 = vrot.slane %v3502_v56, 6 }
0x21ee   :  { %v1560_v15 = vpop.permute.xlu1 %1559 }
0x21ef   :  { %2651 = vmatmul.mubr.msk.bf16.vlgmr.msra.gmra.mrb[28].mxu1 %vm185_vm1, %v1560_v15 }
0x21f0   :  { %2670 = vmatprep.mubr.msk.bf16.mxu1 %vm3125_vm0, %v3124_v0  ;;  %2663 = vmatpush3.bf16.msra.mxu1 %v2739_v35  ;;  %v1699_v35 = vld [vmem:[%s3988_s1] sm:$0x3] }
0x21f1   :  { %2664 = vmatprep.subr.bf16.mxu1 %v3124_v0 }
0x21f4   :  { %2665 = vmatpush3.bf16.msra.mxu1 %v2740_v36 }
0x21f5   :  { %2666 = vmatprep.subr.bf16.mxu1 %v3124_v0 }
0x21f8   :  { %2667 = vmatpush3.bf16.msra.mxu1 %v2741_v38 }
0x21f9   :  { %2668 = vmatprep.subr.bf16.mxu1 %v3124_v0 }
0x21fc   :  { %2669 = vmatpush3.bf16.msra.mxu1 %v2742_v39 }
0x21fd   :  { %2686 = vmatprep.subr.bf16.mxu1 %v3124_v0 }
0x21ff   :  { %2671 = vmatmul.mubr.msk.bf16.vlgmr.msra.gmra.mrb[32].mxu1 %vm1796_vm2, %v1763_v40  ;;  %v1633_v42 = vpop.permute.xlu1 %1632 }
0x2200   :  { %2694 = vmatprep.mubr.msk.bf16.mxu1 %vm3125_vm0, %v3124_v0  ;;  %v1634_v49 = vrot.slane %v1633_v42, 6 }
0x22c2   :  { %v1598_v17 = vpop.f32.mrb[28].mxu1 }
0x22c3   :  { %v1605_v18 = vrot.slane %v1598_v17, 6  ;;  %v2652_v20 = vpop.f32.mrb[29].mxu1 }
0x22c4   :  { %v1601_v21 = vpop.f32.mrb[30].mxu1 }
0x22c5   :  { %v1607_v24 = vadd.f32 %v1605_v18, %v3355_v22  ;;  %v2653_v1 = vpop.f32.mrb[31].mxu1 }
0x22c7   :  { %2859 = vtanh.f32 %v1607_v24  ;;  %v2440_v27 = vmul.f32 -1.442695, %v1607_v24 }
0x22c9   :  { %2861 = vpow2.f32 %v2440_v27 }
0x22d1   :  { %v2860_v25 = vpop.eup %2859 }
0x22d2   :  { %1621 = vrot.lane.b32.xlu0 %v2860_v25, %s3127_s2  ;;  %v3664_v63 = vpop.f32.mrb[32].mxu1 }
0x22d3   :  { %v2862_v29 = vpop.eup %2861  ;;  %v2672_v2 = vpop.f32.mrb[33].mxu1 }
0x22d4   :  { %v1612_v30 = vadd.f32 1.0, %v2862_v29  ;;  %v1837_v4 = vpop.f32.mrb[34].mxu1 }
0x22d5   :  { %v2673_v7 = vpop.f32.mrb[35].mxu1 }
0x22d6   :  { %2863 = vrcp.f32 %v1612_v30 }
0x22e0   :  { %v2864_v32 = vpop.eup %2863 }
0x22e1   :  { %v1619_v46 = vmul.f32 %v2864_v32, %v1617_v41 }
0x2344   :  { %v1622_v33 = vpop.permute.xlu0 %1621 }
0x2345   :  { %v1624_v34 = vmul.f32 %v2864_v32, %v1622_v33 }
0x2347   :  { %1626 = vrot.lane.b32.xlu0 %v1624_v34, %s3127_s2 }
0x23b9   :  { %v1627_v47 = vpop.permute.xlu0 %1626 }
0x23ba   :  { %v1629_v50 = vadd.f32 %v1627_v47, %v1619_v46 }
0x23bc   :  { %v3650_v51 = vmul.f32 %v1634_v49, %v1629_v50 }
0x23be   :  { %2865 = vtanh.f32 %v3650_v51  ;;  %v1708_v46 = vrot.slane %v3650_v51, 2 }
0x23bf   :  { %2867 = vtanh.f32 %v952_v14 }
0x23c0   :  { %2869 = vpow2.f32 %v2418_v23 }
0x23c8   :  { %v2866_v52 = vpop.eup %2865 }
0x23c9   :  { %1639 = vrot.lane.b32.xlu1 %v2866_v52, %s3127_s2  ;;  %v2868_v28 = vpop.eup %2867 }
0x23ca   :  { %v2870_v16 = vpop.eup %2869 }
0x23cb   :  { %v958_v55 = vadd.f32 1.0, %v2870_v16 }
0x23cd   :  { %967 = vrot.lane.b32.xlu1 %v2868_v28, %s3127_s2  ;;  %2871 = vrcp.f32 %v958_v55 }
0x23d1   :  { %978 = vperm.xlu1 %2727, %v2417_v53  }
0x23d7   :  { %v3659_v58 = vpop.eup %2871 }
0x23d8   :  { %v965_v15 = vmul.f32 %v3659_v58, %v963_v10 }
0x243b   :  { %v1640_v26 = vpop.permute.xlu1 %1639 }
0x243c   :  { %v1642_v3 = vmul.f32 %v2864_v32, %v1640_v26 }
0x243e   :  { %v1643_v57 = vmul.f32 %v1642_v3, %v1634_v49 }
0x243f   :  { %v968_v6 = vpop.permute.xlu1 %967 }
0x2440   :  { %v970_v60 = vmul.f32 %v3659_v58, %v968_v6  ;;  %v1650_v61 = vpack.c.bf16 %v1643_v57, %v1643_v57 }
0x2442   :  { %972 = vrot.lane.b32.xlu1 %v970_v60, %s3127_s2  ;;  %v1652_v62 = vrot.slane %v1650_v61, 1 }
0x2444   :  { %1653 = vrot.lane.b32.xlu0 %v1652_v62, %s3118_s22 }
0x2450   :  { %v3666_v8 = vpop.permute.xlu1 %978 }
0x2451   :  { %v980_v18 = vrot.slane %v3666_v8, 2 }
0x24b4   :  { %v973_v17 = vpop.permute.xlu1 %972 }
0x24b5   :  { %v975_v20 = vadd.f32 %v973_v17, %v965_v15 }
0x24b6   :  { %v1654_v21 = vpop.permute.xlu0 %1653 }
0x24b7   :  { %v982_v24 = vmul.f32 %v980_v18, %v975_v20  ;;  %2659 = vmatmul.mubr.msk.bf16.vlgmr.msra.gmra.mrb[32].mxu0 %vm185_vm1, %v1654_v21 }
0x24b8   :  { %2682 = vmatprep.mubr.msk.bf16.mxu0 %vm3125_vm0, %v3124_v0 }
0x24b9   :  { %2873 = vtanh.f32 %v982_v24 }
0x24c3   :  { %v2874_v1 = vpop.eup %2873 }
0x24c4   :  { %985 = vrot.lane.b32.xlu1 %v2874_v1, %s3127_s2 }
0x24c8   :  { %329 = vrot.lane.b32.xlu1 %v3368_v45, %s3118_s22 }
0x24cc   :  { %519 = vrot.lane.b32.xlu1 %v3406_v44, %s3118_s22 }
0x24d0   :  { %707 = vrot.lane.b32.xlu1 %v3444_v43, %s3118_s22 }
0x24d4   :  { %896 = vrot.lane.b32.xlu1 %v3507_v5, %s3118_s22 }
0x24d8   :  { %1086 = vrot.lane.b32.xlu1 %v3512_v11, %s3118_s22 }
0x24dc   :  { %1274 = vrot.lane.b32.xlu1 %v3559_v31, %s3118_s22 }
0x24e0   :  { %1457 = vrot.lane.b32.xlu1 %v3597_v37, %s3118_s22 }
0x24e4   :  { %1645 = vrot.lane.b32.xlu1 %v1643_v57, %s3118_s22 }
0x24e8   :  { %1873 = vrot.lane.b32.xlu1 %v3664_v63, %s3128_s24 }
0x2536   :  { %v986_v45 = vpop.permute.xlu1 %985 }
0x2537   :  { %v988_v52 = vmul.f32 %v3659_v58, %v986_v45 }
0x2539   :  { %v989_v51 = vmul.f32 %v988_v52, %v980_v18 }
0x253a   :  { %v330_v44 = vpop.permute.xlu1 %329 }
0x253b   :  { %333 = vst.msk [vmem:[#allocation2] sm:$0x3] %vm332_vm3, %v330_v44 }
0x253e   :  { %v520_v43 = vpop.permute.xlu1 %519 }
0x253f   :  { %524 = vst.msk [vmem:[#allocation2] sm:$0x30] %vm523_vm4, %v520_v43 }
0x2542   :  { %v708_v56 = vpop.permute.xlu1 %707  ;;  %v3747_v2 = vld [vmem:[#allocation2] sm:$0x3] }
0x2543   :  { %711 = vst.msk [vmem:[#allocation2 + $0x8] sm:$0x3] %vm332_vm3, %v708_v56  ;;  %v1840_v4 = vmul.f32 %v3664_v63, %v3747_v2 }
0x2545   :  { %v1848_v8 = vsel %vm332_vm3, %v1840_v4, 0.0 }
0x2546   :  { %v897_v5 = vpop.permute.xlu1 %896  ;;  %v3752_v7 = vld [vmem:[#allocation2 + $0x4] sm:$0x3] }
0x2547   :  { %900 = vst.msk [vmem:[#allocation2 + $0x8] sm:$0x30] %vm523_vm4, %v897_v5  ;;  %v1842_v10 = vmul.f32 %v3664_v63, %v3752_v7 }
0x2549   :  { %v1854_v1 = vsel %vm332_vm3, %v1842_v10, 0.0  ;;  %v1758_v10 = vld [vmem:[%s3988_s1 + $0x6] sm:$0x3] }
0x254a   :  { %v1087_v11 = vpop.permute.xlu1 %1086  ;;  %vm1919_vm14 = vcmp.gt.f32.partialorder %v1758_v10, 0.5 }
0x254b   :  { %1090 = vst.msk [vmem:[#allocation3 + $0x8] sm:$0xc0] %vm619_vm5, %v1087_v11 }
0x254e   :  { %v1275_v31 = vpop.permute.xlu1 %1274  ;;  %v3738_v3 = vld [vmem:[#allocation2 + $0xc] sm:$0x3] }
0x254f   :  { %1278 = vst.msk [vmem:[#allocation3 + $0x8] sm:$0xc] %vm427_vm6, %v1275_v31  ;;  %v1846_v58 = vmul.f32 %v3664_v63, %v3738_v3 }
0x2551   :  { %v1866_v60 = vsel %vm332_vm3, %v1846_v58, 0.0 }
0x2552   :  { %v1458_v37 = vpop.permute.xlu1 %1457 }
0x2553   :  { %1461 = vst.msk [vmem:[#allocation3] sm:$0xc0] %vm619_vm5, %v1458_v37 }
0x2556   :  { %v1646_v25 = vpop.permute.xlu1 %1645 }
0x2557   :  { %1649 = vst.msk [vmem:[#allocation3] sm:$0xc] %vm427_vm6, %v1646_v25 }
0x255a   :  { %v1874_v15 = vpop.permute.xlu1 %1873 }
0x258a   :  { %v1692_v27 = vpop.f32.mrb[32].mxu0 }
0x258b   :  { %v1698_v29 = vadd.f32 %v1692_v27, %v3355_v22  ;;  %v2660_v30 = vpop.f32.mrb[33].mxu0  ;;  %v3780_v27 = vld [vmem:[#allocation3 + $0x2] sm:$0x3] }
0x258c   :  { %v1695_v32 = vpop.f32.mrb[34].mxu0  ;;  %v1877_v30 = vmul.f32 %v1874_v15, %v3780_v27 }
0x258d   :  { %2875 = vtanh.f32 %v1698_v29  ;;  %v2661_v33 = vpop.f32.mrb[35].mxu0  ;;  %v2442_v36 = vmul.f32 -1.442695, %v1698_v29  ;;  %v3784_v32 = vld [vmem:[#allocation3 + $0x6] sm:$0x3] }
0x258e   :  { %v1887_v33 = vsel %vm332_vm3, %v1877_v30, 0.0 }
0x258f   :  { %2877 = vpow2.f32 %v2442_v36 }
0x2597   :  { %v2876_v34 = vpop.eup %2875 }
0x2598   :  { %1712 = vrot.lane.b32.xlu0 %v2876_v34, %s3127_s2  ;;  %v1879_v34 = vmul.f32 %v1874_v15, %v3784_v32 }
0x2599   :  { %v2878_v38 = vpop.eup %2877 }
0x259a   :  { %v1703_v39 = vadd.f32 1.0, %v2878_v38  ;;  %v1893_v36 = vsel %vm332_vm3, %v1879_v34, 0.0  ;;  %v3792_v38 = vld [vmem:[#allocation3 + $0xe] sm:$0x3] }
0x259c   :  { %1723 = vperm.xlu0 %2726, %v1699_v35   ;;  %2879 = vrcp.f32 %v1703_v39  ;;  %v3788_v35 = vld [vmem:[#allocation3 + $0xa] sm:$0x3] }
0x25a6   :  { %v2880_v40 = vpop.eup %2879 }
0x25a7   :  { %v1710_v47 = vmul.f32 %v2880_v40, %v1708_v46 }
0x260a   :  { %v1713_v41 = vpop.permute.xlu0 %1712 }
0x260b   :  { %v1715_v22 = vmul.f32 %v2880_v40, %v1713_v41 }
0x260d   :  { %1717 = vrot.lane.b32.xlu0 %v1715_v22, %s3127_s2 }
0x261b   :  { %v1724_v42 = vpop.permute.xlu0 %1723 }
0x267f   :  { %v1718_v48 = vpop.permute.xlu0 %1717 }
0x2680   :  { %v1720_v49 = vadd.f32 %v1718_v48, %v1710_v47 }
0x2682   :  { %v1726_v50 = vmul.f32 %v1724_v42, %v1720_v49 }
0x2684   :  { %2881 = vtanh.f32 %v1726_v50 }
0x268e   :  { %v2882_v14 = vpop.eup %2881 }
0x268f   :  { %1729 = vrot.lane.b32.xlu0 %v2882_v14, %s3127_s2 }
0x2693   :  { %423 = vrot.lane.b32.xlu0 %v3387_v12, %s3118_s22 }
0x2697   :  { %615 = vrot.lane.b32.xlu0 %v3425_v13, %s3118_s22 }
0x269b   :  { %801 = vrot.lane.b32.xlu0 %v3466_v9, %s3118_s22 }
0x269f   :  { %991 = vrot.lane.b32.xlu0 %v989_v51, %s3118_s22 }
0x26a3   :  { %1180 = vrot.lane.b32.xlu0 %v3540_v54, %s3118_s22  ;;  %v3730_v54 = vld [vmem:[#allocation2 + $0x8] sm:$0x3] }
0x26a4   :  { %v1844_v55 = vmul.f32 %v3664_v63, %v3730_v54 }
0x26a6   :  { %v1860_v57 = vsel %vm332_vm3, %v1844_v55, 0.0 }
0x26a7   :  { %1364 = vrot.lane.b32.xlu0 %v3578_v59, %s3118_s22 }
0x26ab   :  { %1551 = vrot.lane.b32.xlu0 %v3616_v19, %s3118_s22 }
0x2701   :  { %v1730_v12 = vpop.permute.xlu0 %1729 }
0x2702   :  { %v1732_v13 = vmul.f32 %v2880_v40, %v1730_v12  ;;  %v1883_v40 = vmul.f32 %v1874_v15, %v3792_v38 }
0x2704   :  { %v1733_v28 = vmul.f32 %v1732_v13, %v1724_v42  ;;  %v1905_v41 = vsel %vm332_vm3, %v1883_v40, 0.0 }
0x2705   :  { %v424_v53 = vpop.permute.xlu0 %423 }
0x2706   :  { %428 = vst.msk [vmem:[#allocation2] sm:$0xc] %vm427_vm6, %v424_v53  ;;  %1735 = vrot.lane.b32.xlu0 %v1733_v28, %s3118_s22 }
0x2709   :  { %v616_v9 = vpop.permute.xlu0 %615 }
0x270a   :  { %620 = vst.msk [vmem:[#allocation2] sm:$0xc0] %vm619_vm5, %v616_v9 }
0x270d   :  { %v802_v23 = vpop.permute.xlu0 %801  ;;  %v3728_v16 = vld [vmem:[#allocation2 + $0x2] sm:$0x3] }
0x270e   :  { %805 = vst.msk [vmem:[#allocation2 + $0x8] sm:$0xc] %vm427_vm6, %v802_v23  ;;  %v1841_v59 = vmul.f32 %v3664_v63, %v3728_v16 }
0x2710   :  { %v1851_v19 = vsel %vm332_vm3, %v1841_v59, 0.0 }
0x2711   :  { %v992_v26 = vpop.permute.xlu0 %991  ;;  %1852 = vadd.xlane.f32.xlu1 %v1851_v19  ;;  %v3761_v20 = vld [vmem:[#allocation2 + $0x6] sm:$0x3] }
0x2712   :  { %995 = vst.msk [vmem:[#allocation2 + $0x8] sm:$0xc0] %vm619_vm5, %v992_v26  ;;  %v1843_v44 = vmul.f32 %v3664_v63, %v3761_v20  ;;  %v1759_v26 = vld [vmem:[%s3988_s1 + $0x8] sm:$0x3] }
0x2713   :  { %vm1920_vm7 = vcmp.gt.f32.partialorder %v1759_v26, 0.5 }
0x2714   :  { %v1857_v5 = vsel %vm332_vm3, %v1843_v44, 0.0 }
0x2715   :  { %v1181_v6 = vpop.permute.xlu0 %1180  ;;  %1861 = vadd.xlane.f32.xlu1 %v1860_v57  ;;  %v3769_v43 = vld [vmem:[#allocation2 + $0xa] sm:$0x3] }
0x2716   :  { %1184 = vst.msk [vmem:[#allocation3 + $0x8] sm:$0x30] %vm523_vm4, %v1181_v6  ;;  %v1845_v11 = vmul.f32 %v3664_v63, %v3769_v43  ;;  %v1760_v6 = vld [vmem:[%s3988_s1 + $0xa] sm:$0x3] }
0x2717   :  { %vm1921_vm8 = vcmp.gt.f32.partialorder %v1760_v6, 0.5 }
0x2718   :  { %v1863_v37 = vsel %vm332_vm3, %v1845_v11, 0.0 }
0x2719   :  { %v1365_v61 = vpop.permute.xlu0 %1364  ;;  %1867 = vadd.xlane.f32.xlu1 %v1866_v60  ;;  %v3775_v31 = vld [vmem:[#allocation2 + $0xe] sm:$0x3] }
0x271a   :  { %1368 = vst.msk [vmem:[#allocation3 + $0x8] sm:$0x3] %vm332_vm3, %v1365_v61  ;;  %v1847_v25 = vmul.f32 %v3664_v63, %v3775_v31  ;;  %v1881_v63 = vmul.f32 %v1874_v15, %v3788_v35  ;;  %v1762_v60 = vld [vmem:[%s3988_s1 + $0xe] sm:$0x3]  ;;  %v1755_v61 = vld [vmem:[%s3988_s1] sm:$0x3] }
0x271b   :  { %vm1923_vm9 = vcmp.gt.f32.partialorder %v1762_v60, 0.5  ;;  %vm1916_vm10 = vcmp.gt.f32.partialorder %v1755_v61, 0.5 }
0x271c   :  { %v1869_v29 = vsel %vm332_vm3, %v1847_v25, 0.0  ;;  %v1899_v39 = vsel %vm332_vm3, %v1881_v63, 0.0 }
0x271d   :  { %v1552_v62 = vpop.permute.xlu0 %1551  ;;  %v3800_v46 = vld [vmem:[#allocation3 + $0xc] sm:$0x3] }
0x271e   :  { %1555 = vst.msk [vmem:[#allocation3] sm:$0x30] %vm523_vm4, %v1552_v62  ;;  %v1882_v49 = vmul.f32 %v1874_v15, %v3800_v46  ;;  %v1757_v62 = vld [vmem:[%s3988_s1 + $0x4] sm:$0x3] }
0x271f   :  { %vm1918_vm11 = vcmp.gt.f32.partialorder %v1757_v62, 0.5 }
0x2720   :  { %v1902_v50 = vsel %vm332_vm3, %v1882_v49, 0.0 }
0x2721   :  { %v3759_v18 = vld [vmem:[#allocation3 + $0x8] sm:$0x3] }
0x2722   :  { %v1880_v45 = vmul.f32 %v1874_v15, %v3759_v18 }
0x2724   :  { %v1896_v56 = vsel %vm332_vm3, %v1880_v45, 0.0 }
0x2725   :  { %1849 = vadd.xlane.f32.xlu0 %v1848_v8  ;;  %v3757_v17 = vld [vmem:[#allocation3 + $0x4] sm:$0x3]  ;;  %v1756_v8 = vld [vmem:[%s3988_s1 + $0x2] sm:$0x3] }
0x2726   :  { %v1878_v21 = vmul.f32 %v1874_v15, %v3757_v17  ;;  %vm1917_vm13 = vcmp.gt.f32.partialorder %v1756_v8, 0.5 }
0x2728   :  { %v1890_v24 = vsel %vm332_vm3, %v1878_v21, 0.0 }
0x2729   :  { %1891 = vadd.xlane.f32.xlu1 %v1890_v24  ;;  %1855 = vadd.xlane.f32.xlu0 %v1854_v1 }
0x272d   :  { %1897 = vadd.xlane.f32.xlu1 %v1896_v56  ;;  %1858 = vadd.xlane.f32.xlu0 %v1857_v5  ;;  %v1761_v5 = vld [vmem:[%s3988_s1 + $0xc] sm:$0x3] }
0x272e   :  { %vm1922_vm15 = vcmp.gt.f32.partialorder %v1761_v5, 0.5 }
0x2731   :  { %1864 = vadd.xlane.f32.xlu0 %v1863_v37 }
0x2735   :  { %1870 = vadd.xlane.f32.xlu0 %v1869_v29 }
0x2739   :  { %1888 = vadd.xlane.f32.xlu0 %v1887_v33 }
0x273d   :  { %1894 = vadd.xlane.f32.xlu0 %v1893_v36 }
0x2741   :  { %1900 = vadd.xlane.f32.xlu0 %v1899_v39 }
0x2745   :  { %1906 = vadd.xlane.f32.xlu0 %v1905_v41 }
0x2778   :  { %v1736_v22 = vpop.permute.xlu0 %1735 }
0x2779   :  { %1738 = vst.msk [vmem:[#allocation3] sm:$0x3] %vm332_vm3, %v1736_v22 }
0x2780   :  { %v3798_v42 = vld [vmem:[#allocation3] sm:$0x3] }
0x2781   :  { %v1876_v47 = vmul.f32 %v1874_v15, %v3798_v42 }
0x2783   :  { %v1884_v48 = vsel %vm332_vm3, %v1876_v47, 0.0 }
0x2784   :  { %1885 = vadd.xlane.f32.xlu1 %v1884_v48 }
0x2788   :  { %1903 = vadd.xlane.f32.xlu1 %v1902_v50 }
0x279e   :  { %v1853_v28 = vpop.xlane.xlu1 %1852 }
0x27a2   :  { %v1862_v9 = vpop.xlane.xlu1 %1861 }
0x27a6   :  { %v1868_v59 = vpop.xlane.xlu1 %1867 }
0x27b2   :  { %v1850_v14 = vpop.xlane.xlu0 %1849 }
0x27b6   :  { %v1856_v52 = vpop.xlane.xlu0 %1855  ;;  %v1892_v19 = vpop.xlane.xlu1 %1891 }
0x27b7   :  { %v1910_v1 = vadd.f32 %v1892_v19, %v1856_v52 }
0x27b9   :  { %v1926_v34 = vsel %vm1918_vm11, %v1910_v1, -inf }
0x27ba   :  { %v1859_v51 = vpop.xlane.xlu0 %1858  ;;  %v1898_v57 = vpop.xlane.xlu1 %1897  ;;  %v1935_v49 = vsel %vm1932_vm12, %v1926_v34, -inf }
0x27bb   :  { %v1912_v4 = vadd.f32 %v1898_v57, %v1862_v9 }
0x27bd   :  { %v1928_v11 = vsel %vm1920_vm7, %v1912_v4, -inf }
0x27be   :  { %v1865_v12 = vpop.xlane.xlu0 %1864  ;;  %v1937_v40 = vsel %vm1932_vm12, %v1928_v11, -inf }
0x27c2   :  { %v1871_v13 = vpop.xlane.xlu0 %1870 }
0x27c6   :  { %v1889_v53 = vpop.xlane.xlu0 %1888 }
0x27c7   :  { %v1909_v45 = vadd.f32 %v1889_v53, %v1853_v28 }
0x27c9   :  { %v1925_v36 = vsel %vm1917_vm13, %v1909_v45, -inf }
0x27ca   :  { %v1895_v23 = vpop.xlane.xlu0 %1894  ;;  %v1934_v50 = vsel %vm1932_vm12, %v1925_v36, -inf }
0x27cb   :  { %v1911_v44 = vadd.f32 %v1895_v23, %v1859_v51 }
0x27cd   :  { %v1927_v63 = vsel %vm1919_vm14, %v1911_v44, -inf }
0x27ce   :  { %v1901_v55 = vpop.xlane.xlu0 %1900 }
0x27cf   :  { %v1913_v15 = vadd.f32 %v1901_v55, %v1865_v12 }
0x27d1   :  { %v1929_v37 = vsel %vm1921_vm8, %v1913_v15, -inf }
0x27d2   :  { %v1907_v58 = vpop.xlane.xlu0 %1906  ;;  %v1939_v41 = vsel %vm1932_vm12, %v1929_v37, -inf }
0x27d3   :  { %v1915_v21 = vadd.f32 %v1907_v58, %v1871_v13  ;;  %v1940_v51 = vmax.f32 %v1934_v50, %v1939_v41 }
0x27d5   :  { %v1931_v25 = vsel %vm1923_vm9, %v1915_v21, -inf }
0x27d6   :  { %v1943_v22 = vsel %vm1932_vm12, %v1931_v25, -inf }
0x2811   :  { %v1886_v24 = vpop.xlane.xlu1 %1885 }
0x2812   :  { %v1908_v56 = vadd.f32 %v1886_v24, %v1850_v14  ;;  %v1936_v14 = vsel %vm1932_vm12, %v1927_v63, -inf }
0x2813   :  { %v1944_v12 = vmax.f32 %v1936_v14, %v1943_v22 }
0x2814   :  { %v1924_v29 = vsel %vm1916_vm10, %v1908_v56, -inf }
0x2815   :  { %v1933_v30 = vsel %vm1932_vm12, %v1924_v29, -inf  ;;  %v1904_v33 = vpop.xlane.xlu1 %1903 }
0x2816   :  { %v1914_v39 = vadd.f32 %v1904_v33, %v1868_v59  ;;  %v1938_v47 = vmax.f32 %v1933_v30, %v1937_v40 }
0x2818   :  { %v1930_v48 = vsel %vm1922_vm15, %v1914_v39, -inf  ;;  %v1945_v28 = vmax.f32 %v1938_v47, %v1940_v51 }
0x2819   :  { %v1941_v52 = vsel %vm1932_vm12, %v1930_v48, -inf }
0x281a   :  { %v1942_v13 = vmax.f32 %v1935_v49, %v1941_v52 }
0x281c   :  { %v1946_v53 = vmax.f32 %v1942_v13, %v1944_v12 }
0x281e   :  { %v1947_v9 = vmax.f32 %v1945_v28, %v1946_v53 }
0x2820   :  { %v1948_v23 = vsub.f32 %v1924_v29, %v1947_v9  ;;  %v1949_v59 = vsub.f32 %v1925_v36, %v1947_v9  ;;  %v1950_v19 = vsub.f32 %v1926_v34, %v1947_v9  ;;  %v1951_v55 = vsub.f32 %v1927_v63, %v1947_v9 }
0x2821   :  { %v1952_v26 = vsub.f32 %v1928_v11, %v1947_v9  ;;  %v1953_v60 = vsub.f32 %v1929_v37, %v1947_v9  ;;  %v1954_v62 = vsub.f32 %v1930_v48, %v1947_v9  ;;  %v1955_v8 = vsub.f32 %v1931_v25, %v1947_v9 }
0x2822   :  { %v1956_v57 = vmul.f32 1.442695, %v1948_v23  ;;  %v1958_v58 = vmul.f32 1.442695, %v1949_v59  ;;  %v1960_v6 = vmul.f32 1.442695, %v1950_v19 }
0x2823   :  { %v1962_v61 = vmul.f32 1.442695, %v1951_v55  ;;  %v1964_v4 = vmul.f32 1.442695, %v1952_v26  ;;  %v1966_v10 = vmul.f32 1.442695, %v1953_v60 }
0x2824   :  { %2883 = vpow2.f32 %v1956_v57  ;;  %v1968_v15 = vmul.f32 1.442695, %v1954_v62  ;;  %v1970_v21 = vmul.f32 1.442695, %v1955_v8  ;;  %v2743_v59 = vld [vmem:[%s3996_s9] sm:$0xff]   ;;  %v2744_v19 = vld [vmem:[#allocation15] sm:$0xff]  }
0x2825   :  { %2885 = vpow2.f32 %v1958_v58  ;;  %2687 = vmatpush3.bf16.msra.mxu1 %v2743_v59  ;;  %2675 = vmatpush3.bf16.msra.mxu0 %v2744_v19  ;;  %v2745_v55 = vld [vmem:[%s3996_s9 + $0x8] sm:$0xff]   ;;  %v2746_v26 = vld [vmem:[#allocation15 + $0x8] sm:$0xff]   ;;  %v2748_v58 = vld [vmem:[#allocation15 + $0x10] sm:$0xff]  }
0x2826   :  { %2887 = vpow2.f32 %v1960_v6  ;;  %2688 = vmatprep.subr.bf16.mxu1 %v3124_v0  ;;  %2676 = vmatprep.subr.bf16.mxu0 %v3124_v0  ;;  %v2747_v57 = vld [vmem:[%s3996_s9 + $0x10] sm:$0xff]   ;;  %v2749_v6 = vld [vmem:[%s3996_s9 + $0x18] sm:$0xff]  }
0x2827   :  { %2889 = vpow2.f32 %v1962_v61 }
0x2828   :  { %2891 = vpow2.f32 %v1964_v4 }
0x2829   :  { %2893 = vpow2.f32 %v1966_v10  ;;  %2689 = vmatpush3.bf16.msra.mxu1 %v2745_v55  ;;  %2677 = vmatpush3.bf16.msra.mxu0 %v2746_v26 }
0x282a   :  { %2895 = vpow2.f32 %v1968_v15  ;;  %2690 = vmatprep.subr.bf16.mxu1 %v3124_v0  ;;  %2678 = vmatprep.subr.bf16.mxu0 %v3124_v0 }
0x282b   :  { %2897 = vpow2.f32 %v1970_v21 }
0x282d   :  { %2691 = vmatpush3.bf16.msra.mxu1 %v2747_v57  ;;  %2679 = vmatpush3.bf16.msra.mxu0 %v2748_v58 }
0x282e   :  { %v2884_v24 = vpop.eup %2883  ;;  %2692 = vmatprep.subr.bf16.mxu1 %v3124_v0  ;;  %2680 = vmatprep.subr.bf16.mxu0 %v3124_v0 }
0x282f   :  { %v2886_v1 = vpop.eup %2885  ;;  %v1972_v45 = vsel %vm1932_vm12, %v2884_v24, 0.0 }
0x2830   :  { %v2888_v44 = vpop.eup %2887  ;;  %v1973_v56 = vsel %vm1932_vm12, %v2886_v1, 0.0 }
0x2831   :  { %v2890_v5 = vpop.eup %2889  ;;  %v1974_v11 = vadd.f32 %v1973_v56, %v1972_v45  ;;  %v1975_v37 = vsel %vm1932_vm12, %v2888_v44, 0.0  ;;  %2693 = vmatpush3.bf16.msra.mxu1 %v2749_v6 }
0x2832   :  { %v2892_v25 = vpop.eup %2891  ;;  %v1977_v30 = vsel %vm1932_vm12, %v2890_v5, 0.0 }
0x2833   :  { %v1976_v29 = vadd.f32 %v1975_v37, %v1974_v11  ;;  %v2894_v33 = vpop.eup %2893  ;;  %v1979_v36 = vsel %vm1932_vm12, %v2892_v25, 0.0 }
0x2834   :  { %v2896_v63 = vpop.eup %2895  ;;  %v1981_v40 = vsel %vm1932_vm12, %v2894_v33, 0.0 }
0x2835   :  { %v1978_v34 = vadd.f32 %v1977_v30, %v1976_v29  ;;  %v2898_v41 = vpop.eup %2897  ;;  %v1983_v47 = vsel %vm1932_vm12, %v2896_v63, 0.0 }
0x2836   :  { %v1985_v49 = vsel %vm1932_vm12, %v2898_v41, 0.0 }
0x2837   :  { %v1980_v39 = vadd.f32 %v1979_v36, %v1978_v34 }
0x2839   :  { %v1982_v22 = vadd.f32 %v1981_v40, %v1980_v39 }
0x283b   :  { %v1984_v48 = vadd.f32 %v1983_v47, %v1982_v22 }
0x283d   :  { %v1986_v50 = vadd.f32 %v1985_v49, %v1984_v48 }
0x283f   :  { %2899 = vrcp.f32 %v1986_v50 }
0x2849   :  { %v2900_v14 = vpop.eup %2899 }
0x284a   :  { %v1989_v52 = vmul.f32 %v2900_v14, %v2886_v1  ;;  %v1988_v51 = vmul.f32 %v2900_v14, %v2884_v24  ;;  %v1992_v12 = vmul.f32 %v2900_v14, %v2892_v25  ;;  %v1990_v13 = vmul.f32 %v2900_v14, %v2888_v44 }
0x284b   :  { %v1994_v28 = vmul.f32 %v2900_v14, %v2896_v63  ;;  %v1991_v53 = vmul.f32 %v2900_v14, %v2890_v5  ;;  %v1993_v9 = vmul.f32 %v2900_v14, %v2894_v33  ;;  %v1995_v23 = vmul.f32 %v2900_v14, %v2898_v41  ;;  %v3912_v63 = vld [vmem:[#allocation13] sm:$0x3] }
0x284c   :  { %2003 = vperm.xlu0 %2726, %v1989_v52   ;;  %2344 = vst.msk [vmem:[%s4002_s15 + $0x2] sm:$0x3] %vm1932_vm12, %v1989_v52  ;;  %1998 = vperm.xlu1 %2727, %v1988_v51   ;;  %2343 = vst.msk [vmem:[%s4002_s15] sm:$0x3] %vm1932_vm12, %v1988_v51 }
0x284d   :  { %2347 = vst.msk [vmem:[%s4002_s15 + $0x8] sm:$0x3] %vm1932_vm12, %v1992_v12  ;;  %2345 = vst.msk [vmem:[%s4002_s15 + $0x4] sm:$0x3] %vm1932_vm12, %v1990_v13 }
0x284e   :  { %2349 = vst.msk [vmem:[%s4002_s15 + $0xc] sm:$0x3] %vm1932_vm12, %v1994_v28  ;;  %2346 = vst.msk [vmem:[%s4002_s15 + $0x6] sm:$0x3] %vm1932_vm12, %v1991_v53 }
0x284f   :  { %2348 = vst.msk [vmem:[%s4002_s15 + $0xa] sm:$0x3] %vm1932_vm12, %v1993_v9  ;;  %2350 = vst.msk [vmem:[%s4002_s15 + $0xe] sm:$0x3] %vm1932_vm12, %v1995_v23 }
0x2850   :  { %2018 = vperm.xlu0 %2726, %v1992_v12   ;;  %2008 = vperm.xlu1 %2727, %v1990_v13  }
0x2854   :  { %2028 = vperm.xlu0 %2726, %v1994_v28   ;;  %2013 = vperm.xlu1 %2727, %v1991_v53  }
0x2858   :  { %2023 = vperm.xlu1 %2727, %v1993_v9  }
0x285c   :  { %2033 = vperm.xlu1 %2727, %v1995_v23  }
0x28cb   :  { %v2004_v60 = vpop.permute.xlu0 %2003  ;;  %v1999_v61 = vpop.permute.xlu1 %1998 }
0x28cc   :  { %v2037_v62 = vmul.f32 %v2004_v60, %v3728_v16  ;;  %v2060_v4 = vmul.f32 %v2004_v60, %v3780_v27  ;;  %v2036_v8 = vmul.f32 %v1999_v61, %v3747_v2  ;;  %v2059_v10 = vmul.f32 %v1999_v61, %v3798_v42  ;;  %v2751_v61 = vld [vmem:[%s3999_s12] sm:$0xff]  }
0x28ce   :  { %v2045_v15 = vsel %vm332_vm3, %v2037_v62, 0.0  ;;  %v2044_v21 = vsel %vm332_vm3, %v2036_v8, 0.0  ;;  %v2068_v44 = vsel %vm332_vm3, %v2060_v4, 0.0  ;;  %v2067_v56 = vsel %vm332_vm3, %v2059_v10, 0.0  ;;  %v2752_v62 = vld [vmem:[%s3999_s12 + $0x8] sm:$0xff]   ;;  %v2753_v4 = vld [vmem:[%s3999_s12 + $0x10] sm:$0xff]  }
0x28cf   :  { %v2046_v24 = vadd.f32 %v2045_v15, %v2044_v21  ;;  %v2019_v1 = vpop.permute.xlu0 %2018  ;;  %v2009_v45 = vpop.permute.xlu1 %2008  ;;  %v2069_v11 = vadd.f32 %v2068_v44, %v2067_v56  ;;  %v2754_v8 = vld [vmem:[%s3999_s12 + $0x18] sm:$0xff]   ;;  %v2458_v15 = vld [vmem:[%s3998_s11] ss:$0 sm:$0xff]  ;;  %s3129_s11 = smov [#allocation17]  }
0x28d0   :  { %v2038_v5 = vmul.f32 %v2009_v45, %v3752_v7  ;;  %v2061_v16 = vmul.f32 %v2009_v45, %v3757_v17  ;;  %v2040_v27 = vmul.f32 %v2019_v1, %v3730_v54  ;;  %v2063_v37 = vmul.f32 %v2019_v1, %v3759_v18  ;;  %v2750_v7 = vld [vmem:[#allocation15 + $0x18] sm:$0xff]   ;;  %s2371_s12 = sshll.u32 %s3129_s11, 4  ;;  %s2372_s12 = int_to_ptr.vmem [resolvable:$true] %s2371_s12 }
0x28d1   :  { %2681 = vmatpush3.bf16.msra.mxu0 %v2750_v7  ;;  %s3059_s25 = scalar_lea.vmem %s2372_s12, 32  ;;  %p3064_p1 = scmp.lt.s32.totalorder %s2372_s12, %s2372_s12 }
0x28d2   :  { %v2047_v2 = vsel %vm332_vm3, %v2038_v5, 0.0  ;;  %v2070_v42 = vsel %vm332_vm3, %v2061_v16, 0.0  ;;  %v2051_v54 = vsel %vm332_vm3, %v2040_v27, 0.0  ;;  %v2074_v40 = vsel %vm332_vm3, %v2063_v37, 0.0  ;;  %2698 = vmatprep.subr.bf16.mxu0 %v3124_v0  ;;  %p3060_p0 = scmp.ne.s32.totalorder %s2372_s12, %s3059_s25  ;;  %p3065_p2 = scmp.lt.s32.totalorder %s3059_s25, %s3059_s25 }
0x28d3   :  { %v2048_v25 = vadd.f32 %v2047_v2, %v2046_v24  ;;  %v2014_v29 = vpop.permute.xlu1 %2013  ;;  %v2071_v34 = vadd.f32 %v2070_v42, %v2069_v11  ;;  %v2029_v36 = vpop.permute.xlu0 %2028 }
0x28d4   :  { %v2039_v30 = vmul.f32 %v2014_v29, %v3761_v20  ;;  %v2062_v33 = vmul.f32 %v2014_v29, %v3784_v32  ;;  %v2088_v20 = vpack.c.bf16 %v3912_v63, %v3912_v63  ;;  %v2042_v32 = vmul.f32 %v2029_v36, %v3738_v3  ;;  %p3066_p3 = por %p3065_p2, %p3064_p1 }
0x28d5   :  { %v2065_v47 = vmul.f32 %v2029_v36, %v3800_v46 }
0x28d6   :  { %v2049_v17 = vsel %vm332_vm3, %v2039_v30, 0.0  ;;  %v2072_v39 = vsel %vm332_vm3, %v2062_v33, 0.0  ;;  %2695 = vmatmul.mubr.msk.bf16.vlgmr.msra.gmra.mrb[36].mxu1 %vm1796_vm2, %v2088_v20  ;;  %v2055_v3 = vsel %vm332_vm3, %v2042_v32, 0.0  ;;  %p3067_p4 = pnand %p3066_p3, %p3060_p0 }
0x28d7   :  { %v2050_v18 = vadd.f32 %v2049_v17, %v2048_v25  ;;  %v2073_v41 = vadd.f32 %v2072_v39, %v2071_v34  ;;  %v2024_v22 = vpop.permute.xlu1 %2023  ;;  %v2078_v46 = vsel %vm332_vm3, %v2065_v47, 0.0 }
0x28d8   :  { %v2041_v48 = vmul.f32 %v2024_v22, %v3769_v43  ;;  %v2064_v49 = vmul.f32 %v2024_v22, %v3788_v35 }
0x28d9   :  { %v2052_v50 = vadd.f32 %v2051_v54, %v2050_v18  ;;  %v2075_v14 = vadd.f32 %v2074_v40, %v2073_v41 }
0x28da   :  { %v2053_v52 = vsel %vm332_vm3, %v2041_v48, 0.0  ;;  %v2076_v51 = vsel %vm332_vm3, %v2064_v49, 0.0 }
0x28db   :  { %v2054_v12 = vadd.f32 %v2053_v52, %v2052_v50  ;;  %v2077_v13 = vadd.f32 %v2076_v51, %v2075_v14  ;;  %v2034_v28 = vpop.permute.xlu1 %2033 }
0x28dc   :  { %v2043_v43 = vmul.f32 %v2034_v28, %v3775_v31  ;;  %v2066_v35 = vmul.f32 %v2034_v28, %v3792_v38 }
0x28dd   :  { %v2056_v53 = vadd.f32 %v2055_v3, %v2054_v12  ;;  %v2079_v9 = vadd.f32 %v2078_v46, %v2077_v13 }
0x28de   :  { %v2057_v23 = vsel %vm332_vm3, %v2043_v43, 0.0  ;;  %v2080_v59 = vsel %vm332_vm3, %v2066_v35, 0.0 }
0x28df   :  { %v2058_v19 = vadd.f32 %v2057_v23, %v2056_v53  ;;  %v2081_v55 = vadd.f32 %v2080_v59, %v2079_v9 }
0x28e1   :  { %2083 = vrot.lane.b32.xlu0 %v2081_v55, %s3127_s2 }
0x2953   :  { %v2084_v26 = vpop.permute.xlu0 %2083 }
0x2954   :  { %v2086_v57 = vsel %vm185_vm1, %v2058_v19, %v2084_v26 }
0x2955   :  { %v2097_v58 = vpack.c.bf16 %v2086_v57, %v2086_v57 }
0x2957   :  { %2683 = vmatmul.mubr.msk.bf16.vlgmr.msra.gmra.mrb[36].mxu0 %vm1796_vm2, %v2097_v58 }
0x2958   :  { %2706 = vmatprep.mubr.msk.bf16.mxu0 %vm3125_vm0, %v3124_v0  ;;  %2699 = vmatpush3.bf16.msra.mxu0 %v2751_v61  ;;  %vm2351_vm0 = vcmask 517120  }
0x2959   :  { %2700 = vmatprep.subr.bf16.mxu0 %v3124_v0 }
0x295c   :  { %2701 = vmatpush3.bf16.msra.mxu0 %v2752_v62 }
0x295d   :  { %2702 = vmatprep.subr.bf16.mxu0 %v3124_v0 }
0x2960   :  { %2703 = vmatpush3.bf16.msra.mxu0 %v2753_v4 }
0x2961   :  { %2704 = vmatprep.subr.bf16.mxu0 %v3124_v0 }
0x2964   :  { %2705 = vmatpush3.bf16.msra.mxu0 %v2754_v8 }
0x29a9   :  { %v2234_v31 = vpop.f32.mrb[36].mxu1 }
0x29aa   :  { %v2696_v38 = vpop.f32.mrb[37].mxu1 }
0x29ab   :  { %v2237_v6 = vpop.f32.mrb[38].mxu1 }
0x29ac   :  { %v2697_v60 = vpop.f32.mrb[39].mxu1 }
0x2a2a   :  { %v2167_v10 = vpop.f32.mrb[36].mxu0 }
0x2a2b   :  { %v2235_v21 = vadd.f32 %v2234_v31, %v2167_v10  ;;  %v2684_v24 = vpop.f32.mrb[37].mxu0 }
0x2a2c   :  { %v2170_v1 = vpop.f32.mrb[38].mxu0 }
0x2a2d   :  { %v2247_v45 = vadd.f32 %v2458_v15, %v2235_v21  ;;  %v2685_v44 = vpop.f32.mrb[39].mxu0 }
0x2a2f   :  { %v2459_v56 = vmul.f32 -1.442695, %v2247_v45 }
0x2a31   :  { %2901 = vpow2.f32 %v2459_v56 }
0x2a3b   :  { %v2902_v5 = vpop.eup %2901 }
0x2a3c   :  { %v2251_v16 = vadd.f32 1.0, %v2902_v5 }
0x2a3e   :  { %2903 = vrcp.f32 %v2251_v16 }
0x2a48   :  { %v2904_v27 = vpop.eup %2903 }
0x2a49   :  { %v2255_v2 = vsub.f32 1.0, %v2904_v27  ;;  %2352 = vst.msk [vmem:[#allocation17] sm:$0x3] %vm2351_vm0, %v2904_v27  ;;  %v2254_v0 = vmul.f32 %v2904_v27, %v3912_v63 }
0x2a4b   :  { %v2256_v42 = vmul.f32 %v2255_v2, %v2086_v57 }
0x2a4d   :  { %v2257_v11 = vadd.f32 %v2256_v42, %v2254_v0 }
0x2a4f   :  { %v2258_v37 = vpack.c.bf16 %v2257_v11, %v2257_v11 }
0x2a51   :  { %2707 = vmatmul.mubr.msk.bf16.vlgmr.msra.gmra.mrb[40].mxu0 %vm1796_vm2, %v2258_v37 }
0x2a52   :  { %3070 = shalt.err (!%p3067_p4)
}
0x2a53   :  { %s3071_s23 = scalar_lea.hbm %s4003_s16, 32 }
0x2a54   :  { %p3072_p5 = scmp.ne.s32.totalorder %s4003_s16, %s3071_s23  ;;  %p3075_p6 = scmp.lt.u32.totalorder %s3071_s23, %s4003_s16 }
0x2a56   :  { %p3077_p7 = pnand %p3075_p6, %p3072_p5 }
0x2a58   :  { %3080 = shalt.err (!%p3077_p7)
}
0x2a59   :  { %2374 = dma.vmem_to_hbm [thread:$0]  %s2372_s12, 32, %s4003_s16, [#allocation18]   ;;  %v2460_v25 = vld [vmem:[%s4000_s13] ss:$0 sm:$0xff] }
0x2a5a   :  { %s3130_s15 = smov [#allocation16]  }
0x2a5b   :  { %s2359_s10 = sshll.u32 %s3130_s15, 4  ;;  %s2360_s10 = int_to_ptr.vmem [resolvable:$true] %s2359_s10 }
0x2a5c   :  { %s3081_s30 = scalar_lea.vmem %s2360_s10, 32  ;;  %p3086_p9 = scmp.lt.s32.totalorder %s2360_s10, %s2360_s10 }
0x2a5d   :  { %p3082_p8 = scmp.ne.s32.totalorder %s2360_s10, %s3081_s30  ;;  %p3087_p10 = scmp.lt.s32.totalorder %s3081_s30, %s3081_s30 }
0x2a5f   :  { %p3088_p11 = por %p3087_p10, %p3086_p9 }
0x2a61   :  { %p3089_p12 = pnand %p3088_p11, %p3082_p8 }
0x2b24   :  { %v2335_v29 = vpop.f32.mrb[40].mxu0 }
0x2b25   :  { %v2336_v30 = vadd.f32 %v2460_v25, %v2335_v29  ;;  %v2708_v33 = vpop.f32.mrb[41].mxu0 }
0x2b26   :  { %v2338_v34 = vpop.f32.mrb[42].mxu0 }
0x2b27   :  { %v2341_v36 = vmax.f32 %v2336_v30, 0.0  ;;  %v2709_v7 = vpop.f32.mrb[43].mxu0 }
0x2b29   :  { %2342 = vst.msk [vmem:[#allocation16] sm:$0x3] %vm332_vm3, %v2341_v36 }
0x2b2a   :  { %3092 = shalt.err (!%p3089_p12)
}
0x2b2b   :  { %s3093_s21 = scalar_lea.hbm %s4001_s14, 32 }
0x2b2c   :  { %p3094_p13 = scmp.ne.s32.totalorder %s4001_s14, %s3093_s21  ;;  %p3097_p0 = scmp.lt.u32.totalorder %s3093_s21, %s4001_s14 }
0x2b2e   :  { %p3099_p1 = pnand %p3097_p0, %p3094_p13 }
0x2b30   :  { %3102 = shalt.err (!%p3099_p1)
}
0x2b31   :  { %2362 = dma.vmem_to_hbm [thread:$0]  %s2360_s10, 32, %s4001_s14, [#allocation6]  }
0x2b32   :  { %3111 = dma.done.wait [#allocation6], 32  }
0x2b33   :  { %3112 = vsyncadd [#allocation6], 4294967264 }
0x2b34   :  { %3113 = dma.done.wait [#allocation18], 32  }
0x2b35   :  { %3114 = vsyncadd [#allocation18], 4294967264 }
0x2b36   :  { %2383 = vsyncpa [#allocation5], 1 }
0x2b37   :  { %2384 = vsyncpa [#allocation8], 1 }
0x2b38   :  { %2385 = vsyncpa [#allocation11], 1 }
0x2b39   :  { %2386 = vsyncpa [#allocation14], 1 }
0x2b3a   :  { %2387 = vsyncpa [#allocation6], 1 }
0x2b3b   :  { %2388 = vsyncpa [#allocation18], 1 }

</bundles_post_ra>
